<compile_context>
chip_gen: v5e
topology: v5e:2x2
jax: 0.10.0
libtpu: 0.0.40
codegen_flags: <defaults>
</compile_context>

<pallas_src>
import functools

import jax
import jax.numpy as jnp
from jax import lax
from jax.experimental import pallas as pl
from jax.experimental.pallas import tpu as pltpu

C_IN, C_MID, C_OUT = 512, 256, 64
BN_EPS = 1e-5
LANE = 128
# Lane-tile cap.  Pass-1 live VMEM ~= (2*2KiB + 2*1KiB)*LT + 512KiB of weights
# => ~6.5 MiB at LT=1024, which fits the default scoped VMEM on v5e (16 MiB),
# v6e (32 MiB) and v7x (32 MiB scoped / 64 MiB physical) with headroom.
LT_MAX = 1024
VMEM_LIMIT_BYTES = 32 * 1024 * 1024


def _round_up(a, b):
    return (a + b - 1) // b * b


# ---------- pass 1: h1 = conv1(x); accumulate per-channel sum / sumsq --------
def _conv1_stats_kernel(x_ref, w1_ref, h1_ref, s1_ref, ss1_ref):
    @pl.when(jnp.logical_and(pl.program_id(0) == 0, pl.program_id(1) == 0))
    def _():
        s1_ref[...] = jnp.zeros_like(s1_ref)
        ss1_ref[...] = jnp.zeros_like(ss1_ref)

    x = x_ref[0]                                                # (C_IN, LT)
    h1 = jnp.dot(w1_ref[...], x,
                 preferred_element_type=jnp.float32)            # (C_MID, LT)
    h1_ref[0] = h1
    # Padded columns of x are zero and conv has no bias -> they add 0 here.
    s1_ref[...] += jnp.sum(h1, axis=1, keepdims=True)
    ss1_ref[...] += jnp.sum(h1 * h1, axis=1, keepdims=True)


# ---------- pass 2: a1 = relu(bn1(h1)); h2 = conv2(a1); accumulate h2 stats --
def _bn1_conv2_stats_kernel(h1_ref, w2_ref, sc1_ref, sh1_ref,
                            h2_ref, s2_ref, ss2_ref, *, lt, l_valid):
    @pl.when(jnp.logical_and(pl.program_id(0) == 0, pl.program_id(1) == 0))
    def _():
        s2_ref[...] = jnp.zeros_like(s2_ref)
        ss2_ref[...] = jnp.zeros_like(ss2_ref)

    h1 = h1_ref[0]                                              # (C_MID, LT)
    a1 = jnp.maximum(h1 * sc1_ref[...] + sh1_ref[...], 0.0)
    # Zero the zero-padded length columns so they do not contaminate conv2's
    # output nor the bn2 statistics.
    col = pl.program_id(1) * lt + lax.broadcasted_iota(jnp.int32, (1, lt), 1)
    a1 = jnp.where(col < l_valid, a1, 0.0)
    h2 = jnp.dot(w2_ref[...], a1,
                 preferred_element_type=jnp.float32)            # (C_OUT, LT)
    h2_ref[0] = h2
    s2_ref[...] += jnp.sum(h2, axis=1, keepdims=True)
    ss2_ref[...] += jnp.sum(h2 * h2, axis=1, keepdims=True)


# ---------- pass 3: out = relu(bn2(h2)) ---------------------------------------
def _bn2_relu_kernel(h2_ref, sc2_ref, sh2_ref, o_ref):
    o_ref[0] = jnp.maximum(h2_ref[0] * sc2_ref[...] + sh2_ref[...], 0.0)


@jax.jit
def pointer_forward(x_ncl, w1, w2, gamma1, beta1, gamma2, beta2):
    """x_ncl: (N, 512, L) float32.  Returns (N, 64, L) float32."""
    n, c, l = x_ncl.shape
    assert c == C_IN
    m = n * l  # true element count per channel for BatchNorm

    lt = min(LT_MAX, _round_up(l, LANE))
    l_pad = _round_up(l, lt)
    n_lt = l_pad // lt

    x_p = x_ncl if l_pad == l else jnp.pad(
        x_ncl, ((0, 0), (0, 0), (0, l_pad - l)))

    # PyTorch Conv1d weight is (Cout, Cin, 1) -> (Cout, Cin); no transpose.
    w1_m = w1.reshape(C_MID, C_IN).astype(jnp.float32)
    w2_m = w2.reshape(C_OUT, C_MID).astype(jnp.float32)

    grid = (n, n_lt)

    def tile_spec(ch):
        return pl.BlockSpec((1, ch, lt), lambda i, j: (i, 0, j))

    def const_spec(shp):
        return pl.BlockSpec(shp, lambda i, j: (0,) * len(shp))

    # Stats accumulate into resident output blocks -> grid must be sequential.
    cp_acc = pltpu.CompilerParams(
        dimension_semantics=("arbitrary", "arbitrary"),
        vmem_limit_bytes=VMEM_LIMIT_BYTES)
    # Pass 3 is fully independent per tile -> megacore-parallel on v7x.
    cp_par = pltpu.CompilerParams(
        dimension_semantics=("parallel", "parallel"),
        vmem_limit_bytes=VMEM_LIMIT_BYTES)

    # ---------------- pass 1 ----------------
    h1, s1, ss1 = pl.pallas_call(
        _conv1_stats_kernel,
        grid=grid,
        in_specs=[tile_spec(C_IN), const_spec((C_MID, C_IN))],
        out_specs=(tile_spec(C_MID),
                   const_spec((C_MID, 1)),
                   const_spec((C_MID, 1))),
        out_shape=(jax.ShapeDtypeStruct((n, C_MID, l_pad), jnp.float32),
                   jax.ShapeDtypeStruct((C_MID, 1), jnp.float32),
                   jax.ShapeDtypeStruct((C_MID, 1), jnp.float32)),
        compiler_params=cp_acc,
    )(x_p, w1_m)

    mean1 = s1 / m
    var1 = jnp.maximum(ss1 / m - mean1 * mean1, 0.0)
    scale1 = gamma1.reshape(C_MID, 1) * lax.rsqrt(var1 + BN_EPS)
    shift1 = beta1.reshape(C_MID, 1) - mean1 * scale1

    # ---------------- pass 2 ----------------
    h2, s2, ss2 = pl.pallas_call(
        functools.partial(_bn1_conv2_stats_kernel, lt=lt, l_valid=l),
        grid=grid,
        in_specs=[tile_spec(C_MID), const_spec((C_OUT, C_MID)),
                  const_spec((C_MID, 1)), const_spec((C_MID, 1))],
        out_specs=(tile_spec(C_OUT),
                   const_spec((C_OUT, 1)),
                   const_spec((C_OUT, 1))),
        out_shape=(jax.ShapeDtypeStruct((n, C_OUT, l_pad), jnp.float32),
                   jax.ShapeDtypeStruct((C_OUT, 1), jnp.float32),
                   jax.ShapeDtypeStruct((C_OUT, 1), jnp.float32)),
        compiler_params=cp_acc,
    )(h1, w2_m, scale1, shift1)

    mean2 = s2 / m
    var2 = jnp.maximum(ss2 / m - mean2 * mean2, 0.0)
    scale2 = gamma2.reshape(C_OUT, 1) * lax.rsqrt(var2 + BN_EPS)
    shift2 = beta2.reshape(C_OUT, 1) - mean2 * scale2

    # ---------------- pass 3 ----------------
    out_p = pl.pallas_call(
        _bn2_relu_kernel,
        grid=grid,
        in_specs=[tile_spec(C_OUT), const_spec((C_OUT, 1)),
                  const_spec((C_OUT, 1))],
        out_specs=tile_spec(C_OUT),
        out_shape=jax.ShapeDtypeStruct((n, C_OUT, l_pad), jnp.float32),
        compiler_params=cp_par,
    )(h2, scale2, shift2)

    # Strip length padding.  Padded output columns hold relu(shift2) garbage.
    return out_p[:, :, :l]


if __name__ == "__main__":
    key = jax.random.PRNGKey(0)
    k_x, k_w1, k_w2, k_g1, k_b1, k_g2, k_b2 = jax.random.split(key, 7)

    # Small shapes consistent with the module: batch=2, channels=512, seq=8.
    N, L = 2, 8
    x = jax.random.normal(k_x, (N, C_IN, L), dtype=jnp.float32)

    # Conv weights in PyTorch layout (Cout, Cin, 1), fan-in scaled.
    w1 = jax.random.uniform(k_w1, (C_MID, C_IN, 1), jnp.float32,
                            minval=-1.0, maxval=1.0) * (1.0 / C_IN) ** 0.5
    w2 = jax.random.uniform(k_w2, (C_OUT, C_MID, 1), jnp.float32,
                            minval=-1.0, maxval=1.0) * (1.0 / C_MID) ** 0.5
    # Non-trivial BN affine params to exercise the full path (PyTorch defaults
    # would be gamma=1, beta=0).
    gamma1 = 1.0 + 0.1 * jax.random.normal(k_g1, (C_MID,), jnp.float32)
    beta1 = 0.1 * jax.random.normal(k_b1, (C_MID,), jnp.float32)
    gamma2 = 1.0 + 0.1 * jax.random.normal(k_g2, (C_OUT,), jnp.float32)
    beta2 = 0.1 * jax.random.normal(k_b2, (C_OUT,), jnp.float32)

    out = pointer_forward(x, w1, w2, gamma1, beta1, gamma2, beta2)
    out = jax.block_until_ready(out)

    # Pure-JAX reference (training-mode BatchNorm with batch stats).
    def ref(x):
        h = jnp.einsum('oc,ncl->nol', w1[:, :, 0], x)
        mu = h.mean(axis=(0, 2), keepdims=True)
        var = ((h - mu) ** 2).mean(axis=(0, 2), keepdims=True)
        h = (h - mu) * lax.rsqrt(var + BN_EPS)
        h = h * gamma1.reshape(1, -1, 1) + beta1.reshape(1, -1, 1)
        h = jnp.maximum(h, 0.0)
        g = jnp.einsum('oc,ncl->nol', w2[:, :, 0], h)
        mu2 = g.mean(axis=(0, 2), keepdims=True)
        var2 = ((g - mu2) ** 2).mean(axis=(0, 2), keepdims=True)
        g = (g - mu2) * lax.rsqrt(var2 + BN_EPS)
        g = g * gamma2.reshape(1, -1, 1) + beta2.reshape(1, -1, 1)
        return jnp.maximum(g, 0.0)

    expected = ref(x)
    assert out.shape == (N, C_OUT, L)
    assert jnp.allclose(out, expected, atol=1e-4, rtol=1e-4), (
        float(jnp.max(jnp.abs(out - expected))))
    print("KERNEL_OK")
</pallas_src>

<mosaic_0001>
module attributes {stable_mosaic.version = 11 : i64} {
  func.func @_conv1_stats_kernel(%arg0: i32, %arg1: i32, %arg2: memref<1x512x128xf32, #tpu.memory_space<vmem>>, %arg3: memref<256x512xf32, #tpu.memory_space<vmem>>, %arg4: memref<1x256x128xf32, #tpu.memory_space<vmem>>, %arg5: memref<256x1xf32, #tpu.memory_space<vmem>>, %arg6: memref<256x1xf32, #tpu.memory_space<vmem>>) attributes {dimension_semantics = [#tpu.dimension_semantics<arbitrary>, #tpu.dimension_semantics<arbitrary>], iteration_bounds = array<i64: 2, 1>, scalar_prefetch = 0 : i64, scratch_operands = 0 : i64, tpu.core_type = #tpu.core_type<tc>, window_params = [{transform_indices = @transform_0, window_bounds = array<i64: 1, 512, 128>}, {pipeline_mode = #tpu.pipeline_mode<synchronous>, transform_indices = @transform_1, window_bounds = array<i64: 256, 512>}, {transform_indices = @transform_2, window_bounds = array<i64: 1, 256, 128>}, {pipeline_mode = #tpu.pipeline_mode<synchronous>, transform_indices = @transform_3, window_bounds = array<i64: 256, 1>}, {pipeline_mode = #tpu.pipeline_mode<synchronous>, transform_indices = @transform_4, window_bounds = array<i64: 256, 1>}]} {
    %c0_i32 = arith.constant 0 : i32
    %0 = arith.cmpi eq, %arg0, %c0_i32 : i32
    %c0_i32_0 = arith.constant 0 : i32
    %1 = arith.cmpi eq, %arg1, %c0_i32_0 : i32
    %2 = arith.andi %0, %1 : i1
    %3 = arith.extui %2 : i1 to i32
    %c0_i32_1 = arith.constant 0 : i32
    %4 = arith.cmpi ne, %3, %c0_i32_1 : i32
    scf.if %4 {
      %cst_19 = arith.constant 0.000000e+00 : f32
      %23 = vector.broadcast %cst_19 : f32 to vector<256x1xf32>
      %c0_20 = arith.constant 0 : index
      %c0_21 = arith.constant 0 : index
      %24 = vector.load %arg5[%c0_20, %c0_21] : memref<256x1xf32, #tpu.memory_space<vmem>>, vector<256x1xf32>
      tpu.vector_store %arg5[%c0_20, %c0_21], %23 {strides = array<i32>} : memref<256x1xf32, #tpu.memory_space<vmem>>, vector<256x1xf32>,
      %cst_22 = arith.constant 0.000000e+00 : f32
      %25 = vector.broadcast %cst_22 : f32 to vector<256x1xf32>
      %c0_23 = arith.constant 0 : index
      %c0_24 = arith.constant 0 : index
      %26 = vector.load %arg6[%c0_23, %c0_24] : memref<256x1xf32, #tpu.memory_space<vmem>>, vector<256x1xf32>
      tpu.vector_store %arg6[%c0_23, %c0_24], %25 {strides = array<i32>} : memref<256x1xf32, #tpu.memory_space<vmem>>, vector<256x1xf32>,
    } else {
    }
    %c0 = arith.constant 0 : index
    %c0_2 = arith.constant 0 : index
    %c0_3 = arith.constant 0 : index
    %5 = vector.load %arg2[%c0, %c0_2, %c0_3] : memref<1x512x128xf32, #tpu.memory_space<vmem>>, vector<1x512x128xf32>
    %6 = vector.shape_cast %5 : vector<1x512x128xf32> to vector<512x128xf32>
    %c0_4 = arith.constant 0 : index
    %c0_5 = arith.constant 0 : index
    %7 = vector.load %arg3[%c0_4, %c0_5] : memref<256x512xf32, #tpu.memory_space<vmem>>, vector<256x512xf32>
    %cst = arith.constant dense<0.000000e+00> : vector<256x128xf32>
    %8 = tpu.matmul %7, %6, %cst {dimension_numbers = #tpu.dot_dimension_numbers<[1], [0], [0], [1], [0, 0, 1, 1], [], []>} : vector<256x512xf32>, vector<512x128xf32>, vector<256x128xf32> -> vector<256x128xf32>
    %c0_6 = arith.constant 0 : index
    %c0_7 = arith.constant 0 : index
    %c0_8 = arith.constant 0 : index
    %9 = vector.load %arg4[%c0_6, %c0_7, %c0_8] : memref<1x256x128xf32, #tpu.memory_space<vmem>>, vector<1x256x128xf32>
    %10 = vector.shape_cast %9 : vector<1x256x128xf32> to vector<256x128xf32>
    %11 = vector.shape_cast %8 : vector<256x128xf32> to vector<1x256x128xf32>
    tpu.vector_store %arg4[%c0_6, %c0_7, %c0_8], %11 {strides = array<i32>} : memref<1x256x128xf32, #tpu.memory_space<vmem>>, vector<1x256x128xf32>,
    %c0_9 = arith.constant 0 : index
    %c0_10 = arith.constant 0 : index
    %12 = vector.load %arg5[%c0_9, %c0_10] : memref<256x1xf32, #tpu.memory_space<vmem>>, vector<256x1xf32>
    %cst_11 = arith.constant dense<0.000000e+00> : vector<256xf32>
    %13 = vector.multi_reduction <add>, %8, %cst_11 [1] : vector<256x128xf32> to vector<256xf32>
    %14 = vector.shape_cast %13 : vector<256xf32> to vector<256x1xf32>
    %15 = arith.addf %12, %14 : vector<256x1xf32>
    %c0_12 = arith.constant 0 : index
    %c0_13 = arith.constant 0 : index
    %16 = vector.load %arg5[%c0_12, %c0_13] : memref<256x1xf32, #tpu.memory_space<vmem>>, vector<256x1xf32>
    tpu.vector_store %arg5[%c0_12, %c0_13], %15 {strides = array<i32>} : memref<256x1xf32, #tpu.memory_space<vmem>>, vector<256x1xf32>,
    %c0_14 = arith.constant 0 : index
    %c0_15 = arith.constant 0 : index
    %17 = vector.load %arg6[%c0_14, %c0_15] : memref<256x1xf32, #tpu.memory_space<vmem>>, vector<256x1xf32>
    %18 = arith.mulf %8, %8 : vector<256x128xf32>
    %cst_16 = arith.constant dense<0.000000e+00> : vector<256xf32>
    %19 = vector.multi_reduction <add>, %18, %cst_16 [1] : vector<256x128xf32> to vector<256xf32>
    %20 = vector.shape_cast %19 : vector<256xf32> to vector<256x1xf32>
    %21 = arith.addf %17, %20 : vector<256x1xf32>
    %c0_17 = arith.constant 0 : index
    %c0_18 = arith.constant 0 : index
    %22 = vector.load %arg6[%c0_17, %c0_18] : memref<256x1xf32, #tpu.memory_space<vmem>>, vector<256x1xf32>
    tpu.vector_store %arg6[%c0_17, %c0_18], %21 {strides = array<i32>} : memref<256x1xf32, #tpu.memory_space<vmem>>, vector<256x1xf32>,
    return
  }
  func.func @transform_0(%arg0: i32, %arg1: i32) -> (i32, i32, i32) {
    %c0_i32 = arith.constant 0 : i32
    %c0_i32_0 = arith.constant 0 : i32
    return %arg0, %c0_i32, %arg1 : i32, i32, i32
  }
  func.func @transform_1(%arg0: i32, %arg1: i32) -> (i32, i32) {
    %c0_i32 = arith.constant 0 : i32
    %c0_i32_0 = arith.constant 0 : i32
    %c0_i32_1 = arith.constant 0 : i32
    return %c0_i32, %c0_i32_0 : i32, i32
  }
  func.func @transform_2(%arg0: i32, %arg1: i32) -> (i32, i32, i32) {
    %c0_i32 = arith.constant 0 : i32
    %c0_i32_0 = arith.constant 0 : i32
    return %arg0, %c0_i32, %arg1 : i32, i32, i32
  }
  func.func @transform_3(%arg0: i32, %arg1: i32) -> (i32, i32) {
    %c0_i32 = arith.constant 0 : i32
    %c0_i32_0 = arith.constant 0 : i32
    %c0_i32_1 = arith.constant 0 : i32
    return %c0_i32, %c0_i32_0 : i32, i32
  }
  func.func @transform_4(%arg0: i32, %arg1: i32) -> (i32, i32) {
    %c0_i32 = arith.constant 0 : i32
    %c0_i32_0 = arith.constant 0 : i32
    %c0_i32_1 = arith.constant 0 : i32
    return %c0_i32, %c0_i32_0 : i32, i32
  }
}

module attributes {stable_mosaic.version = 11 : i64} {
  func.func @_bn1_conv2_stats_kernel(%arg0: i32, %arg1: i32, %arg2: memref<1x256x128xf32, #tpu.memory_space<vmem>>, %arg3: memref<64x256xf32, #tpu.memory_space<vmem>>, %arg4: memref<256x1xf32, #tpu.memory_space<vmem>>, %arg5: memref<256x1xf32, #tpu.memory_space<vmem>>, %arg6: memref<1x64x128xf32, #tpu.memory_space<vmem>>, %arg7: memref<64x1xf32, #tpu.memory_space<vmem>>, %arg8: memref<64x1xf32, #tpu.memory_space<vmem>>) attributes {dimension_semantics = [#tpu.dimension_semantics<arbitrary>, #tpu.dimension_semantics<arbitrary>], iteration_bounds = array<i64: 2, 1>, scalar_prefetch = 0 : i64, scratch_operands = 0 : i64, tpu.core_type = #tpu.core_type<tc>, window_params = [{transform_indices = @transform_0, window_bounds = array<i64: 1, 256, 128>}, {pipeline_mode = #tpu.pipeline_mode<synchronous>, transform_indices = @transform_1, window_bounds = array<i64: 64, 256>}, {pipeline_mode = #tpu.pipeline_mode<synchronous>, transform_indices = @transform_2, window_bounds = array<i64: 256, 1>}, {pipeline_mode = #tpu.pipeline_mode<synchronous>, transform_indices = @transform_3, window_bounds = array<i64: 256, 1>}, {transform_indices = @transform_4, window_bounds = array<i64: 1, 64, 128>}, {pipeline_mode = #tpu.pipeline_mode<synchronous>, transform_indices = @transform_5, window_bounds = array<i64: 64, 1>}, {pipeline_mode = #tpu.pipeline_mode<synchronous>, transform_indices = @transform_6, window_bounds = array<i64: 64, 1>}]} {
    %c0_i32 = arith.constant 0 : i32
    %0 = arith.cmpi eq, %arg0, %c0_i32 : i32
    %c0_i32_0 = arith.constant 0 : i32
    %1 = arith.cmpi eq, %arg1, %c0_i32_0 : i32
    %2 = arith.andi %0, %1 : i1
    %3 = arith.extui %2 : i1 to i32
    %c0_i32_1 = arith.constant 0 : i32
    %4 = arith.cmpi ne, %3, %c0_i32_1 : i32
    scf.if %4 {
      %cst_25 = arith.constant 0.000000e+00 : f32
      %41 = vector.broadcast %cst_25 : f32 to vector<64x1xf32>
      %c0_26 = arith.constant 0 : index
      %c0_27 = arith.constant 0 : index
      %42 = vector.load %arg7[%c0_26, %c0_27] : memref<64x1xf32, #tpu.memory_space<vmem>>, vector<64x1xf32>
      tpu.vector_store %arg7[%c0_26, %c0_27], %41 {strides = array<i32>} : memref<64x1xf32, #tpu.memory_space<vmem>>, vector<64x1xf32>,
      %cst_28 = arith.constant 0.000000e+00 : f32
      %43 = vector.broadcast %cst_28 : f32 to vector<64x1xf32>
      %c0_29 = arith.constant 0 : index
      %c0_30 = arith.constant 0 : index
      %44 = vector.load %arg8[%c0_29, %c0_30] : memref<64x1xf32, #tpu.memory_space<vmem>>, vector<64x1xf32>
      tpu.vector_store %arg8[%c0_29, %c0_30], %43 {strides = array<i32>} : memref<64x1xf32, #tpu.memory_space<vmem>>, vector<64x1xf32>,
    } else {
    }
    %c0 = arith.constant 0 : index
    %c0_2 = arith.constant 0 : index
    %c0_3 = arith.constant 0 : index
    %5 = vector.load %arg2[%c0, %c0_2, %c0_3] : memref<1x256x128xf32, #tpu.memory_space<vmem>>, vector<1x256x128xf32>
    %6 = vector.shape_cast %5 : vector<1x256x128xf32> to vector<256x128xf32>
    %c0_4 = arith.constant 0 : index
    %c0_5 = arith.constant 0 : index
    %7 = vector.load %arg4[%c0_4, %c0_5] : memref<256x1xf32, #tpu.memory_space<vmem>>, vector<256x1xf32>
    %8 = vector.broadcast %7 : vector<256x1xf32> to vector<256x128xf32>
    %9 = arith.mulf %6, %8 : vector<256x128xf32>
    %c0_6 = arith.constant 0 : index
    %c0_7 = arith.constant 0 : index
    %10 = vector.load %arg5[%c0_6, %c0_7] : memref<256x1xf32, #tpu.memory_space<vmem>>, vector<256x1xf32>
    %11 = vector.broadcast %10 : vector<256x1xf32> to vector<256x128xf32>
    %12 = arith.addf %9, %11 : vector<256x128xf32>
    %cst = arith.constant 0.000000e+00 : f32
    %13 = vector.broadcast %cst : f32 to vector<256x128xf32>
    %14 = arith.maximumf %12, %13 : vector<256x128xf32>
    %c128_i32 = arith.constant 128 : i32
    %15 = arith.muli %arg1, %c128_i32 : i32
    %16 = tpu.iota {dimensions = array<i32: 1>} : vector<1x128xi32>
    %17 = vector.broadcast %15 : i32 to vector<1x128xi32>
    %18 = arith.addi %17, %16 : vector<1x128xi32>
    %c8_i32 = arith.constant 8 : i32
    %19 = vector.broadcast %c8_i32 : i32 to vector<1x128xi32>
    %20 = arith.cmpi slt, %18, %19 : vector<1x128xi32>
    %cst_8 = arith.constant 0.000000e+00 : f32
    %21 = vector.shape_cast %20 : vector<1x128xi1> to vector<1x128xi1>
    %22 = vector.broadcast %21 : vector<1x128xi1> to vector<256x128xi1>
    %23 = vector.broadcast %cst_8 : f32 to vector<256x128xf32>
    %24 = arith.select %22, %14, %23 : vector<256x128xi1>, vector<256x128xf32>
    %c0_9 = arith.constant 0 : index
    %c0_10 = arith.constant 0 : index
    %25 = vector.load %arg3[%c0_9, %c0_10] : memref<64x256xf32, #tpu.memory_space<vmem>>, vector<64x256xf32>
    %cst_11 = arith.constant dense<0.000000e+00> : vector<64x128xf32>
    %26 = tpu.matmul %25, %24, %cst_11 {dimension_numbers = #tpu.dot_dimension_numbers<[1], [0], [0], [1], [0, 0, 1, 1], [], []>} : vector<64x256xf32>, vector<256x128xf32>, vector<64x128xf32> -> vector<64x128xf32>
    %c0_12 = arith.constant 0 : index
    %c0_13 = arith.constant 0 : index
    %c0_14 = arith.constant 0 : index
    %27 = vector.load %arg6[%c0_12, %c0_13, %c0_14] : memref<1x64x128xf32, #tpu.memory_space<vmem>>, vector<1x64x128xf32>
    %28 = vector.shape_cast %27 : vector<1x64x128xf32> to vector<64x128xf32>
    %29 = vector.shape_cast %26 : vector<64x128xf32> to vector<1x64x128xf32>
    tpu.vector_store %arg6[%c0_12, %c0_13, %c0_14], %29 {strides = array<i32>} : memref<1x64x128xf32, #tpu.memory_space<vmem>>, vector<1x64x128xf32>,
    %c0_15 = arith.constant 0 : index
    %c0_16 = arith.constant 0 : index
    %30 = vector.load %arg7[%c0_15, %c0_16] : memref<64x1xf32, #tpu.memory_space<vmem>>, vector<64x1xf32>
    %cst_17 = arith.constant dense<0.000000e+00> : vector<64xf32>
    %31 = vector.multi_reduction <add>, %26, %cst_17 [1] : vector<64x128xf32> to vector<64xf32>
    %32 = vector.shape_cast %31 : vector<64xf32> to vector<64x1xf32>
    %33 = arith.addf %30, %32 : vector<64x1xf32>
    %c0_18 = arith.constant 0 : index
    %c0_19 = arith.constant 0 : index
    %34 = vector.load %arg7[%c0_18, %c0_19] : memref<64x1xf32, #tpu.memory_space<vmem>>, vector<64x1xf32>
    tpu.vector_store %arg7[%c0_18, %c0_19], %33 {strides = array<i32>} : memref<64x1xf32, #tpu.memory_space<vmem>>, vector<64x1xf32>,
    %c0_20 = arith.constant 0 : index
    %c0_21 = arith.constant 0 : index
    %35 = vector.load %arg8[%c0_20, %c0_21] : memref<64x1xf32, #tpu.memory_space<vmem>>, vector<64x1xf32>
    %36 = arith.mulf %26, %26 : vector<64x128xf32>
    %cst_22 = arith.constant dense<0.000000e+00> : vector<64xf32>
    %37 = vector.multi_reduction <add>, %36, %cst_22 [1] : vector<64x128xf32> to vector<64xf32>
    %38 = vector.shape_cast %37 : vector<64xf32> to vector<64x1xf32>
    %39 = arith.addf %35, %38 : vector<64x1xf32>
    %c0_23 = arith.constant 0 : index
    %c0_24 = arith.constant 0 : index
    %40 = vector.load %arg8[%c0_23, %c0_24] : memref<64x1xf32, #tpu.memory_space<vmem>>, vector<64x1xf32>
    tpu.vector_store %arg8[%c0_23, %c0_24], %39 {strides = array<i32>} : memref<64x1xf32, #tpu.memory_space<vmem>>, vector<64x1xf32>,
    return
  }
  func.func @transform_0(%arg0: i32, %arg1: i32) -> (i32, i32, i32) {
    %c0_i32 = arith.constant 0 : i32
    %c0_i32_0 = arith.constant 0 : i32
    return %arg0, %c0_i32, %arg1 : i32, i32, i32
  }
  func.func @transform_1(%arg0: i32, %arg1: i32) -> (i32, i32) {
    %c0_i32 = arith.constant 0 : i32
    %c0_i32_0 = arith.constant 0 : i32
    %c0_i32_1 = arith.constant 0 : i32
    return %c0_i32, %c0_i32_0 : i32, i32
  }
  func.func @transform_2(%arg0: i32, %arg1: i32) -> (i32, i32) {
    %c0_i32 = arith.constant 0 : i32
    %c0_i32_0 = arith.constant 0 : i32
    %c0_i32_1 = arith.constant 0 : i32
    return %c0_i32, %c0_i32_0 : i32, i32
  }
  func.func @transform_3(%arg0: i32, %arg1: i32) -> (i32, i32) {
    %c0_i32 = arith.constant 0 : i32
    %c0_i32_0 = arith.constant 0 : i32
    %c0_i32_1 = arith.constant 0 : i32
    return %c0_i32, %c0_i32_0 : i32, i32
  }
  func.func @transform_4(%arg0: i32, %arg1: i32) -> (i32, i32, i32) {
    %c0_i32 = arith.constant 0 : i32
    %c0_i32_0 = arith.constant 0 : i32
    return %arg0, %c0_i32, %arg1 : i32, i32, i32
  }
  func.func @transform_5(%arg0: i32, %arg1: i32) -> (i32, i32) {
    %c0_i32 = arith.constant 0 : i32
    %c0_i32_0 = arith.constant 0 : i32
    %c0_i32_1 = arith.constant 0 : i32
    return %c0_i32, %c0_i32_0 : i32, i32
  }
  func.func @transform_6(%arg0: i32, %arg1: i32) -> (i32, i32) {
    %c0_i32 = arith.constant 0 : i32
    %c0_i32_0 = arith.constant 0 : i32
    %c0_i32_1 = arith.constant 0 : i32
    return %c0_i32, %c0_i32_0 : i32, i32
  }
}

module attributes {stable_mosaic.version = 11 : i64} {
  func.func @_bn2_relu_kernel(%arg0: i32, %arg1: i32, %arg2: memref<1x64x128xf32, #tpu.memory_space<vmem>>, %arg3: memref<64x1xf32, #tpu.memory_space<vmem>>, %arg4: memref<64x1xf32, #tpu.memory_space<vmem>>, %arg5: memref<1x64x128xf32, #tpu.memory_space<vmem>>) attributes {dimension_semantics = [#tpu.dimension_semantics<parallel>, #tpu.dimension_semantics<parallel>], iteration_bounds = array<i64: 2, 1>, scalar_prefetch = 0 : i64, scratch_operands = 0 : i64, tpu.core_type = #tpu.core_type<tc>, window_params = [{transform_indices = @transform_0, window_bounds = array<i64: 1, 64, 128>}, {pipeline_mode = #tpu.pipeline_mode<synchronous>, transform_indices = @transform_1, window_bounds = array<i64: 64, 1>}, {pipeline_mode = #tpu.pipeline_mode<synchronous>, transform_indices = @transform_2, window_bounds = array<i64: 64, 1>}, {transform_indices = @transform_3, window_bounds = array<i64: 1, 64, 128>}]} {
    %c0 = arith.constant 0 : index
    %c0_0 = arith.constant 0 : index
    %c0_1 = arith.constant 0 : index
    %0 = vector.load %arg2[%c0, %c0_0, %c0_1] : memref<1x64x128xf32, #tpu.memory_space<vmem>>, vector<1x64x128xf32>
    %1 = vector.shape_cast %0 : vector<1x64x128xf32> to vector<64x128xf32>
    %c0_2 = arith.constant 0 : index
    %c0_3 = arith.constant 0 : index
    %2 = vector.load %arg3[%c0_2, %c0_3] : memref<64x1xf32, #tpu.memory_space<vmem>>, vector<64x1xf32>
    %3 = vector.broadcast %2 : vector<64x1xf32> to vector<64x128xf32>
    %4 = arith.mulf %1, %3 : vector<64x128xf32>
    %c0_4 = arith.constant 0 : index
    %c0_5 = arith.constant 0 : index
    %5 = vector.load %arg4[%c0_4, %c0_5] : memref<64x1xf32, #tpu.memory_space<vmem>>, vector<64x1xf32>
    %6 = vector.broadcast %5 : vector<64x1xf32> to vector<64x128xf32>
    %7 = arith.addf %4, %6 : vector<64x128xf32>
    %cst = arith.constant 0.000000e+00 : f32
    %8 = vector.broadcast %cst : f32 to vector<64x128xf32>
    %9 = arith.maximumf %7, %8 : vector<64x128xf32>
    %c0_6 = arith.constant 0 : index
    %c0_7 = arith.constant 0 : index
    %c0_8 = arith.constant 0 : index
    %10 = vector.load %arg5[%c0_6, %c0_7, %c0_8] : memref<1x64x128xf32, #tpu.memory_space<vmem>>, vector<1x64x128xf32>
    %11 = vector.shape_cast %10 : vector<1x64x128xf32> to vector<64x128xf32>
    %12 = vector.shape_cast %9 : vector<64x128xf32> to vector<1x64x128xf32>
    tpu.vector_store %arg5[%c0_6, %c0_7, %c0_8], %12 {strides = array<i32>} : memref<1x64x128xf32, #tpu.memory_space<vmem>>, vector<1x64x128xf32>,
    return
  }
  func.func @transform_0(%arg0: i32, %arg1: i32) -> (i32, i32, i32) {
    %c0_i32 = arith.constant 0 : i32
    %c0_i32_0 = arith.constant 0 : i32
    return %arg0, %c0_i32, %arg1 : i32, i32, i32
  }
  func.func @transform_1(%arg0: i32, %arg1: i32) -> (i32, i32) {
    %c0_i32 = arith.constant 0 : i32
    %c0_i32_0 = arith.constant 0 : i32
    %c0_i32_1 = arith.constant 0 : i32
    return %c0_i32, %c0_i32_0 : i32, i32
  }
  func.func @transform_2(%arg0: i32, %arg1: i32) -> (i32, i32) {
    %c0_i32 = arith.constant 0 : i32
    %c0_i32_0 = arith.constant 0 : i32
    %c0_i32_1 = arith.constant 0 : i32
    return %c0_i32, %c0_i32_0 : i32, i32
  }
  func.func @transform_3(%arg0: i32, %arg1: i32) -> (i32, i32, i32) {
    %c0_i32 = arith.constant 0 : i32
    %c0_i32_0 = arith.constant 0 : i32
    return %arg0, %c0_i32, %arg1 : i32, i32, i32
  }
}

</mosaic_0001>

<bundles_post_ra>
// kernel: pointer_forward.5
= control target key start
LH: loop header
LB: loop body
LE: loop exit
PB: predicated region body
PF: predicated region fallthrough
CT: control target
= control target key end

     0   :  { %s507_s12 = smov 0   ;;  %s509_s13 = smov 0   ;;  %s612_s0 = inlined_call_operand.vmem [shape: f32[2,64,128], index: 0, kind: input, shape index: {}]   ;;  %s613_s1 = inlined_call_operand.vmem [shape: f32[64,1], index: 1, kind: input, shape index: {}]   ;;  %s614_s2 = inlined_call_operand.vmem [shape: f32[64,1], index: 2, kind: input, shape index: {}]   ;;  %s615_s3 = inlined_call_operand.vmem [shape: f32[2,64,128], index: 3, kind: output, shape index: {}]  }
   0x1   :  { %s511_s14 = smov 0  }
   0x2 LB: > { %s25_s15 = sadd.s32 1, %s480_s13  ;;  %p425_p0 = scmp.ge.s32.totalorder %s484_s14, 1  ;;  %s484_s14 = sphi %s511_s14, %s13_s14   ;;  %s480_s13 = sphi %s509_s13, %s617_s13   ;;  %s476_s12 = sphi %s507_s12, %s616_s12  }
   0x3   : > { %p27_p1 = scmp.ge.s32.totalorder %s25_s15, 2  ;;  %p156_p2 = scmp.lt.s32.totalorder %s484_s14, 3 }
   0x5   : > { %s619_s15 = smov (%p27_p1, %s25_s15), 0  ;;  %p157_p3 = pnand %p425_p0, %p156_p2 }
   0x6   : > { %p186_p4 = scmp.lt.s32.totalorder (!%p157_p3), %s476_s12, 1 }
   0x7   : > { %160 = sbr.rel (%p157_p3) target bundleno = 175 (0xaf), region = 32 }
   0xc   : > { %v214_v0 = vld [vmem:[%s613_s1 + $0x20] sm:$0xff]  ;;  %v212_v1 = vld [vmem:[%s613_s1 + $0x10] sm:$0xff]  ;;  %v486_v3 = vmov 0   ;;  %v215_v4 = vld [vmem:[%s613_s1 + $0x28] sm:$0xff]  ;;  %s621_s12 = smov (!%p186_p4, %s476_s12), 1 }
   0xd   : > { %v210_v2 = vld [vmem:[%s613_s1] sm:$0xff]  ;;  %461 = vset.pattern.permute.xlu2 %v486_v3  ;;  %460 = vset.pattern.permute.xlu1 %v486_v3  ;;  %v213_v5 = vld [vmem:[%s613_s1 + $0x18] sm:$0xff]  ;;  %v211_v6 = vld [vmem:[%s613_s1 + $0x8] sm:$0xff]  ;;  %s432_s25 = sshll.u32 %s621_s12, 6 }
   0xe   : > { %459 = vset.pattern.permute.xlu0 %v486_v3  ;;  %240 = vperm.xlu2 %461, %v214_v0   ;;  %v266_v7 = vld [vmem:[%s614_s2] sm:$0xff]  ;;  %v217_v8 = vld [vmem:[%s613_s1 + $0x38] sm:$0xff]  ;;  %v216_v9 = vld [vmem:[%s613_s1 + $0x30] sm:$0xff]  ;;  %s580_s28 = scalar_lea.vmem %s612_s0, %s432_s25  ;;  %s586_s4 = scalar_lea.vmem %s615_s3, %s432_s25 }
   0xf   : > { %230 = vperm.xlu1 %460, %v212_v1   ;;  %220 = vperm.xlu0 %459, %v210_v2   ;;  %v269_v10 = vld [vmem:[%s614_s2 + $0x18] sm:$0xff]  ;;  %v268_v11 = vld [vmem:[%s614_s2 + $0x10] sm:$0xff]  ;;  %v267_v12 = vld [vmem:[%s614_s2 + $0x8] sm:$0xff] }
  0x10   : > { %v272_v13 = vld [vmem:[%s614_s2 + $0x30] sm:$0xff]  ;;  %v271_v14 = vld [vmem:[%s614_s2 + $0x28] sm:$0xff]  ;;  %v270_v15 = vld [vmem:[%s614_s2 + $0x20] sm:$0xff] }
  0x11   : > { %v273_v16 = vld [vmem:[%s614_s2 + $0x38] sm:$0xff]  ;;  %v202_v20 = vld [vmem:[%s580_s28] sm:$0xff]  ;;  %v208_v33 = vld [vmem:[%s580_s28 + $0x30] sm:$0xff] }
  0x12   : > { %v205_v26 = vld [vmem:[%s580_s28 + $0x18] sm:$0xff]  ;;  %v204_v39 = vld [vmem:[%s580_s28 + $0x10] sm:$0xff]  ;;  %v203_v40 = vld [vmem:[%s580_s28 + $0x8] sm:$0xff] }
  0x13   : > { %v206_v50 = vld [vmem:[%s580_s28 + $0x20] sm:$0xff]  ;;  %v207_v51 = vld [vmem:[%s580_s28 + $0x28] sm:$0xff]  ;;  %v209_v60 = vld [vmem:[%s580_s28 + $0x38] sm:$0xff] }
  0x16   : > { %245 = vperm.xlu2 %461, %v215_v4  }
  0x17   : > { %235 = vperm.xlu1 %460, %v213_v5   ;;  %225 = vperm.xlu0 %459, %v211_v6  }
  0x1e   : > { %276 = vperm.xlu2 %461, %v266_v7  }
  0x1f   : > { %255 = vperm.xlu1 %460, %v217_v8   ;;  %250 = vperm.xlu0 %459, %v216_v9  }
  0x26   : > { %291 = vperm.xlu2 %461, %v269_v10  }
  0x27   : > { %286 = vperm.xlu1 %460, %v268_v11   ;;  %281 = vperm.xlu0 %459, %v267_v12  }
  0x2e   : > { %306 = vperm.xlu2 %461, %v272_v13  }
  0x2f   : > { %301 = vperm.xlu1 %460, %v271_v14   ;;  %296 = vperm.xlu0 %459, %v270_v15  }
  0x37   : > { %311 = vperm.xlu0 %459, %v273_v16  }
  0x68   : > { %v241_v17 = vpop.permute.xlu2 %240 }
  0x69   : > { %v262_v52 = vmul.f32 %v241_v17, %v206_v50 }
  0x70   : > { %v246_v18 = vpop.permute.xlu2 %245 }
  0x71   : > { %v263_v53 = vmul.f32 %v246_v18, %v207_v51 }
  0x78   : > { %v277_v19 = vpop.permute.xlu2 %276 }
  0x80   : > { %v292_v27 = vpop.permute.xlu2 %291 }
  0x81   : > { %v231_v21 = vpop.permute.xlu1 %230  ;;  %v221_v22 = vpop.permute.xlu0 %220 }
  0x82   : > { %v258_v23 = vmul.f32 %v221_v22, %v202_v20  ;;  %v260_v42 = vmul.f32 %v231_v21, %v204_v39 }
  0x84   : > { %v314_v24 = vadd.f32 %v277_v19, %v258_v23 }
  0x86   : > { %v322_v25 = vmax.f32 %v314_v24, 0.0 }
  0x88   : > { %330 = vst [vmem:[%s586_s4] sm:$0xff] %v322_v25  ;;  %v307_v37 = vpop.permute.xlu2 %306 }
  0x89   : > { %v236_v28 = vpop.permute.xlu1 %235  ;;  %v226_v29 = vpop.permute.xlu0 %225 }
  0x8a   : > { %v261_v30 = vmul.f32 %v236_v28, %v205_v26  ;;  %v259_v43 = vmul.f32 %v226_v29, %v203_v40 }
  0x8c   : > { %v317_v31 = vadd.f32 %v292_v27, %v261_v30 }
  0x8e   : > { %v325_v32 = vmax.f32 %v317_v31, 0.0 }
  0x90   : > { %333 = vst [vmem:[%s586_s4 + $0x18] sm:$0xff] %v325_v32 }
  0x91   : > { %v256_v34 = vpop.permute.xlu1 %255  ;;  %v251_v35 = vpop.permute.xlu0 %250 }
  0x92   : > { %v264_v36 = vmul.f32 %v251_v35, %v208_v33  ;;  %v265_v61 = vmul.f32 %v256_v34, %v209_v60 }
  0x94   : > { %v320_v38 = vadd.f32 %v307_v37, %v264_v36 }
  0x96   : > { %v328_v41 = vmax.f32 %v320_v38, 0.0 }
  0x98   : > { %336 = vst [vmem:[%s586_s4 + $0x30] sm:$0xff] %v328_v41 }
  0x99   : > { %v287_v44 = vpop.permute.xlu1 %286  ;;  %v282_v45 = vpop.permute.xlu0 %281 }
  0x9a   : > { %v316_v46 = vadd.f32 %v287_v44, %v260_v42  ;;  %v315_v47 = vadd.f32 %v282_v45, %v259_v43 }
  0x9c   : > { %v324_v48 = vmax.f32 %v316_v46, 0.0  ;;  %v323_v49 = vmax.f32 %v315_v47, 0.0 }
  0x9e   : > { %332 = vst [vmem:[%s586_s4 + $0x10] sm:$0xff] %v324_v48 }
  0x9f   : > { %331 = vst [vmem:[%s586_s4 + $0x8] sm:$0xff] %v323_v49 }
  0xa1   : > { %v302_v54 = vpop.permute.xlu1 %301  ;;  %v297_v55 = vpop.permute.xlu0 %296 }
  0xa2   : > { %v319_v56 = vadd.f32 %v302_v54, %v263_v53  ;;  %v318_v57 = vadd.f32 %v297_v55, %v262_v52 }
  0xa4   : > { %v327_v58 = vmax.f32 %v319_v56, 0.0  ;;  %v326_v59 = vmax.f32 %v318_v57, 0.0 }
  0xa6   : > { %335 = vst [vmem:[%s586_s4 + $0x28] sm:$0xff] %v327_v58 }
  0xa7   : > { %334 = vst [vmem:[%s586_s4 + $0x20] sm:$0xff] %v326_v59 }
  0xa9   : > { %v312_v62 = vpop.permute.xlu0 %311 }
  0xaa   : > { %v321_v63 = vadd.f32 %v312_v62, %v265_v61 }
  0xac   : > { %v329_v0 = vmax.f32 %v321_v63, 0.0 }
  0xae   : > { %337 = vst [vmem:[%s586_s4 + $0x38] sm:$0xff] %v329_v0 }
  0xaf PF: > { %s13_s14 = sadd.s32 1, %s484_s14   ;;  %s616_s12 = smov %s480_s13 }
  0xb0   : > { %p10_p5 = scmp.ge.s32.totalorder %s13_s14, 4   ;;  %s617_s13 = smov %s619_s15 }
  0xb2   :  { %12 = sbr.rel (!%p10_p5) target bundleno = 2 (0x2), region = 62 }

// kernel: pointer_forward.3
= control target key start
LH: loop header
LB: loop body
LE: loop exit
PB: predicated region body
PF: predicated region fallthrough
CT: control target
= control target key end

     0   :  { %s1509_s15 = smov 0   ;;  %s1511_s16 = smov 0   ;;  %s2794_s0 = inlined_call_operand.vmem [shape: f32[2,512,128], index: 0, kind: input, shape index: {}]   ;;  %s2795_s1 = inlined_call_operand.vmem [shape: f32[256,512], index: 1, kind: input, shape index: {}]   ;;  %s2796_s2 = inlined_call_operand.vmem [shape: f32[2,256,128], index: 2, kind: output, shape index: {0}]   ;;  %s2797_s3 = inlined_call_operand.vmem [shape: f32[256,1], index: 3, kind: output, shape index: {1}]   ;;  %s2798_s4 = inlined_call_operand.vmem [shape: f32[256,1], index: 4, kind: output, shape index: {2}]  }
   0x1   :  { %s1513_s17 = smov 0  }
   0x2 LB: > { %s27_s18 = sadd.s32 1, %s1477_s16  ;;  %p1423_p0 = scmp.ge.s32.totalorder %s1481_s17, 1  ;;  %s1481_s17 = sphi %s1513_s17, %s15_s17   ;;  %s1477_s16 = sphi %s1511_s16, %s2800_s16   ;;  %s1473_s15 = sphi %s1509_s15, %s2799_s15  }
   0x3   : > { %p29_p1 = scmp.ge.s32.totalorder %s27_s18, 2  ;;  %p176_p2 = scmp.lt.s32.totalorder %s1481_s17, 3 }
   0x5   : > { %s2802_s18 = smov (%p29_p1, %s27_s18), 0  ;;  %p177_p3 = pnand %p1423_p0, %p176_p2 }
   0x6   : > { %p208_p4 = scmp.lt.s32.totalorder (!%p177_p3), %s1473_s15, 1  ;;  %p224_p5 = scmp.eq.s32.totalorder (!%p177_p3), %s1473_s15, 0 }
   0x7   : > { %180 = sbr.rel (%p177_p3) target bundleno = 621 (0x26d), region = 28 }
   0xc   : > { %s2804_s15 = smov (!%p208_p4, %s1473_s15), 1  ;;  %229 = sbr.rel (!%p224_p5) target bundleno = 77 (0x4d), region = 32  ;;  %vm230_vm0 = vcmask (%p224_p5), 7168   ;;  %v1483_v0 = vmov (%p224_p5), 0.0  }
   0xd   : > { %s1431_s19 = sshll.u32 %s2804_s15, 9  ;;  %s1432_s20 = sshll.u32 %s2804_s15, 8  ;;  %231 = vst.msk [vmem:[%s2797_s3] sm:$0xff] (%p224_p5), %vm230_vm0, %v1483_v0 }
   0xe   : > { %s1530_s23 = scalar_lea.vmem %s2794_s0, %s1431_s19  ;;  %s1535_s26 = scalar_lea.vmem %s2796_s2, %s1432_s20  ;;  %232 = vst.msk [vmem:[%s2797_s3 + $0x8] sm:$0xff] (%p224_p5), %vm230_vm0, %v1483_v0 }
   0xf   : > { %233 = vst.msk [vmem:[%s2797_s3 + $0x10] sm:$0xff] (%p224_p5), %vm230_vm0, %v1483_v0 }
  0x10   : > { %234 = vst.msk [vmem:[%s2797_s3 + $0x18] sm:$0xff] (%p224_p5), %vm230_vm0, %v1483_v0 }
  0x11   : > { %235 = vst.msk [vmem:[%s2797_s3 + $0x20] sm:$0xff] %vm230_vm0, %v1483_v0 }
  0x12   : > { %236 = vst.msk [vmem:[%s2797_s3 + $0x28] sm:$0xff] %vm230_vm0, %v1483_v0 }
  0x13   : > { %237 = vst.msk [vmem:[%s2797_s3 + $0x30] sm:$0xff] %vm230_vm0, %v1483_v0 }
  0x14   : > { %238 = vst.msk [vmem:[%s2797_s3 + $0x38] sm:$0xff] %vm230_vm0, %v1483_v0 }
  0x15   : > { %239 = vst.msk [vmem:[%s2797_s3 + $0x40] sm:$0xff] %vm230_vm0, %v1483_v0 }
  0x16   : > { %240 = vst.msk [vmem:[%s2797_s3 + $0x48] sm:$0xff] %vm230_vm0, %v1483_v0 }
  0x17   : > { %241 = vst.msk [vmem:[%s2797_s3 + $0x50] sm:$0xff] %vm230_vm0, %v1483_v0 }
  0x18   : > { %242 = vst.msk [vmem:[%s2797_s3 + $0x58] sm:$0xff] %vm230_vm0, %v1483_v0 }
  0x19   : > { %243 = vst.msk [vmem:[%s2797_s3 + $0x60] sm:$0xff] %vm230_vm0, %v1483_v0 }
  0x1a   : > { %244 = vst.msk [vmem:[%s2797_s3 + $0x68] sm:$0xff] %vm230_vm0, %v1483_v0 }
  0x1b   : > { %245 = vst.msk [vmem:[%s2797_s3 + $0x70] sm:$0xff] %vm230_vm0, %v1483_v0 }
  0x1c   : > { %246 = vst.msk [vmem:[%s2797_s3 + $0x78] sm:$0xff] %vm230_vm0, %v1483_v0 }
  0x1d   : > { %247 = vst.msk [vmem:[%s2797_s3 + $0x80] sm:$0xff] %vm230_vm0, %v1483_v0 }
  0x1e   : > { %248 = vst.msk [vmem:[%s2797_s3 + $0x88] sm:$0xff] %vm230_vm0, %v1483_v0 }
  0x1f   : > { %249 = vst.msk [vmem:[%s2797_s3 + $0x90] sm:$0xff] %vm230_vm0, %v1483_v0 }
  0x20   : > { %250 = vst.msk [vmem:[%s2797_s3 + $0x98] sm:$0xff] %vm230_vm0, %v1483_v0 }
  0x21   : > { %251 = vst.msk [vmem:[%s2797_s3 + $0xa0] sm:$0xff] %vm230_vm0, %v1483_v0 }
  0x22   : > { %252 = vst.msk [vmem:[%s2797_s3 + $0xa8] sm:$0xff] %vm230_vm0, %v1483_v0 }
  0x23   : > { %253 = vst.msk [vmem:[%s2797_s3 + $0xb0] sm:$0xff] %vm230_vm0, %v1483_v0 }
  0x24   : > { %254 = vst.msk [vmem:[%s2797_s3 + $0xb8] sm:$0xff] %vm230_vm0, %v1483_v0 }
  0x25   : > { %255 = vst.msk [vmem:[%s2797_s3 + $0xc0] sm:$0xff] %vm230_vm0, %v1483_v0 }
  0x26   : > { %256 = vst.msk [vmem:[%s2797_s3 + $0xc8] sm:$0xff] %vm230_vm0, %v1483_v0 }
  0x27   : > { %257 = vst.msk [vmem:[%s2797_s3 + $0xd0] sm:$0xff] %vm230_vm0, %v1483_v0 }
  0x28   : > { %258 = vst.msk [vmem:[%s2797_s3 + $0xd8] sm:$0xff] %vm230_vm0, %v1483_v0 }
  0x29   : > { %259 = vst.msk [vmem:[%s2797_s3 + $0xe0] sm:$0xff] %vm230_vm0, %v1483_v0 }
  0x2a   : > { %260 = vst.msk [vmem:[%s2797_s3 + $0xe8] sm:$0xff] %vm230_vm0, %v1483_v0 }
  0x2b   : > { %261 = vst.msk [vmem:[%s2797_s3 + $0xf0] sm:$0xff] %vm230_vm0, %v1483_v0 }
  0x2c   : > { %262 = vst.msk [vmem:[%s2797_s3 + $0xf8] sm:$0xff] %vm230_vm0, %v1483_v0 }
  0x2d   : > { %263 = vst.msk [vmem:[%s2798_s4] sm:$0xff] %vm230_vm0, %v1483_v0 }
  0x2e   : > { %264 = vst.msk [vmem:[%s2798_s4 + $0x8] sm:$0xff] %vm230_vm0, %v1483_v0 }
  0x2f   : > { %265 = vst.msk [vmem:[%s2798_s4 + $0x10] sm:$0xff] %vm230_vm0, %v1483_v0 }
  0x30   : > { %266 = vst.msk [vmem:[%s2798_s4 + $0x18] sm:$0xff] %vm230_vm0, %v1483_v0 }
  0x31   : > { %267 = vst.msk [vmem:[%s2798_s4 + $0x20] sm:$0xff] %vm230_vm0, %v1483_v0 }
  0x32   : > { %268 = vst.msk [vmem:[%s2798_s4 + $0x28] sm:$0xff] %vm230_vm0, %v1483_v0 }
  0x33   : > { %269 = vst.msk [vmem:[%s2798_s4 + $0x30] sm:$0xff] %vm230_vm0, %v1483_v0 }
  0x34   : > { %270 = vst.msk [vmem:[%s2798_s4 + $0x38] sm:$0xff] %vm230_vm0, %v1483_v0 }
  0x35   : > { %271 = vst.msk [vmem:[%s2798_s4 + $0x40] sm:$0xff] %vm230_vm0, %v1483_v0 }
  0x36   : > { %272 = vst.msk [vmem:[%s2798_s4 + $0x48] sm:$0xff] %vm230_vm0, %v1483_v0 }
  0x37   : > { %273 = vst.msk [vmem:[%s2798_s4 + $0x50] sm:$0xff] %vm230_vm0, %v1483_v0 }
  0x38   : > { %274 = vst.msk [vmem:[%s2798_s4 + $0x58] sm:$0xff] %vm230_vm0, %v1483_v0 }
  0x39   : > { %275 = vst.msk [vmem:[%s2798_s4 + $0x60] sm:$0xff] %vm230_vm0, %v1483_v0 }
  0x3a   : > { %276 = vst.msk [vmem:[%s2798_s4 + $0x68] sm:$0xff] %vm230_vm0, %v1483_v0 }
  0x3b   : > { %277 = vst.msk [vmem:[%s2798_s4 + $0x70] sm:$0xff] %vm230_vm0, %v1483_v0 }
  0x3c   : > { %278 = vst.msk [vmem:[%s2798_s4 + $0x78] sm:$0xff] %vm230_vm0, %v1483_v0 }
  0x3d   : > { %279 = vst.msk [vmem:[%s2798_s4 + $0x80] sm:$0xff] %vm230_vm0, %v1483_v0 }
  0x3e   : > { %280 = vst.msk [vmem:[%s2798_s4 + $0x88] sm:$0xff] %vm230_vm0, %v1483_v0 }
  0x3f   : > { %281 = vst.msk [vmem:[%s2798_s4 + $0x90] sm:$0xff] %vm230_vm0, %v1483_v0 }
  0x40   : > { %282 = vst.msk [vmem:[%s2798_s4 + $0x98] sm:$0xff] %vm230_vm0, %v1483_v0 }
  0x41   : > { %283 = vst.msk [vmem:[%s2798_s4 + $0xa0] sm:$0xff] %vm230_vm0, %v1483_v0 }
  0x42   : > { %284 = vst.msk [vmem:[%s2798_s4 + $0xa8] sm:$0xff] %vm230_vm0, %v1483_v0 }
  0x43   : > { %285 = vst.msk [vmem:[%s2798_s4 + $0xb0] sm:$0xff] %vm230_vm0, %v1483_v0 }
  0x44   : > { %286 = vst.msk [vmem:[%s2798_s4 + $0xb8] sm:$0xff] %vm230_vm0, %v1483_v0 }
  0x45   : > { %287 = vst.msk [vmem:[%s2798_s4 + $0xc0] sm:$0xff] %vm230_vm0, %v1483_v0 }
  0x46   : > { %288 = vst.msk [vmem:[%s2798_s4 + $0xc8] sm:$0xff] %vm230_vm0, %v1483_v0 }
  0x47   : > { %289 = vst.msk [vmem:[%s2798_s4 + $0xd0] sm:$0xff] %vm230_vm0, %v1483_v0 }
  0x48   : > { %290 = vst.msk [vmem:[%s2798_s4 + $0xd8] sm:$0xff] %vm230_vm0, %v1483_v0 }
  0x49   : > { %291 = vst.msk [vmem:[%s2798_s4 + $0xe0] sm:$0xff] %vm230_vm0, %v1483_v0 }
  0x4a   : > { %292 = vst.msk [vmem:[%s2798_s4 + $0xe8] sm:$0xff] %vm230_vm0, %v1483_v0 }
  0x4b   : > { %293 = vst.msk [vmem:[%s2798_s4 + $0xf0] sm:$0xff] %vm230_vm0, %v1483_v0 }
  0x4c   : > { %294 = vst.msk [vmem:[%s2798_s4 + $0xf8] sm:$0xff] %vm230_vm0, %v1483_v0 }
  0x4d PF: > { %v342_v1 = vld [vmem:[%s1530_s23 + $0x178] sm:$0xff]  ;;  %v341_v2 = vld [vmem:[%s1530_s23 + $0x170] sm:$0xff]  ;;  %v340_v6 = vld [vmem:[%s1530_s23 + $0x168] sm:$0xff]  ;;  %vm1099_vm1 = vcmask 7168  }
  0x4e   : > { %v358_v3 = vld [vmem:[%s1530_s23 + $0x1f8] sm:$0xff]  ;;  %713 = vmatpush.msra.mxu2 %v342_v1  ;;  %v357_v7 = vld [vmem:[%s1530_s23 + $0x1f0] sm:$0xff]  ;;  %v356_v10 = vld [vmem:[%s1530_s23 + $0x1e8] sm:$0xff] }
  0x4f   : > { %826 = vmatpush.msra.mxu3 %v358_v3  ;;  %v310_v4 = vld [vmem:[%s1530_s23 + $0x78] sm:$0xff]  ;;  %v309_v8 = vld [vmem:[%s1530_s23 + $0x70] sm:$0xff]  ;;  %v308_v11 = vld [vmem:[%s1530_s23 + $0x68] sm:$0xff] }
  0x50   : > { %v326_v5 = vld [vmem:[%s1530_s23 + $0xf8] sm:$0xff]  ;;  %487 = vmatpush.msra.mxu0 %v310_v4  ;;  %v325_v9 = vld [vmem:[%s1530_s23 + $0xf0] sm:$0xff]  ;;  %714 = vmatpush.msra.mxu2 %v341_v2  ;;  %v339_v12 = vld [vmem:[%s1530_s23 + $0x160] sm:$0xff] }
  0x51   : > { %600 = vmatpush.msra.mxu1 %v326_v5  ;;  %827 = vmatpush.msra.mxu3 %v357_v7  ;;  %v324_v13 = vld [vmem:[%s1530_s23 + $0xe8] sm:$0xff]  ;;  %v355_v14 = vld [vmem:[%s1530_s23 + $0x1e0] sm:$0xff]  ;;  %v338_v17 = vld [vmem:[%s1530_s23 + $0x158] sm:$0xff] }
  0x52   : > { %488 = vmatpush.msra.mxu0 %v309_v8  ;;  %715 = vmatpush.msra.mxu2 %v340_v6  ;;  %v307_v15 = vld [vmem:[%s1530_s23 + $0x60] sm:$0xff]  ;;  %v354_v18 = vld [vmem:[%s1530_s23 + $0x1d8] sm:$0xff]  ;;  %v337_v21 = vld [vmem:[%s1530_s23 + $0x150] sm:$0xff] }
  0x53   : > { %601 = vmatpush.msra.mxu1 %v325_v9  ;;  %828 = vmatpush.msra.mxu3 %v356_v10  ;;  %v323_v16 = vld [vmem:[%s1530_s23 + $0xe0] sm:$0xff]  ;;  %v306_v19 = vld [vmem:[%s1530_s23 + $0x58] sm:$0xff]  ;;  %v353_v22 = vld [vmem:[%s1530_s23 + $0x1d0] sm:$0xff] }
  0x54   : > { %489 = vmatpush.msra.mxu0 %v308_v11  ;;  %716 = vmatpush.msra.mxu2 %v339_v12  ;;  %v322_v20 = vld [vmem:[%s1530_s23 + $0xd8] sm:$0xff]  ;;  %v305_v23 = vld [vmem:[%s1530_s23 + $0x50] sm:$0xff]  ;;  %v336_v25 = vld [vmem:[%s1530_s23 + $0x148] sm:$0xff] }
  0x55   : > { %602 = vmatpush.msra.mxu1 %v324_v13  ;;  %829 = vmatpush.msra.mxu3 %v355_v14  ;;  %v321_v24 = vld [vmem:[%s1530_s23 + $0xd0] sm:$0xff]  ;;  %v352_v26 = vld [vmem:[%s1530_s23 + $0x1c8] sm:$0xff]  ;;  %v335_v29 = vld [vmem:[%s1530_s23 + $0x140] sm:$0xff] }
  0x56   : > { %490 = vmatpush.msra.mxu0 %v307_v15  ;;  %717 = vmatpush.msra.mxu2 %v338_v17  ;;  %v304_v27 = vld [vmem:[%s1530_s23 + $0x48] sm:$0xff]  ;;  %v351_v30 = vld [vmem:[%s1530_s23 + $0x1c0] sm:$0xff]  ;;  %v334_v33 = vld [vmem:[%s1530_s23 + $0x138] sm:$0xff] }
  0x57   : > { %603 = vmatpush.msra.mxu1 %v323_v16  ;;  %830 = vmatpush.msra.mxu3 %v354_v18  ;;  %v320_v28 = vld [vmem:[%s1530_s23 + $0xc8] sm:$0xff]  ;;  %v303_v31 = vld [vmem:[%s1530_s23 + $0x40] sm:$0xff]  ;;  %v350_v34 = vld [vmem:[%s1530_s23 + $0x1b8] sm:$0xff] }
  0x58   : > { %491 = vmatpush.msra.mxu0 %v306_v19  ;;  %718 = vmatpush.msra.mxu2 %v337_v21  ;;  %v319_v32 = vld [vmem:[%s1530_s23 + $0xc0] sm:$0xff]  ;;  %v302_v35 = vld [vmem:[%s1530_s23 + $0x38] sm:$0xff]  ;;  %v333_v37 = vld [vmem:[%s1530_s23 + $0x130] sm:$0xff] }
  0x59   : > { %604 = vmatpush.msra.mxu1 %v322_v20  ;;  %831 = vmatpush.msra.mxu3 %v353_v22  ;;  %v318_v36 = vld [vmem:[%s1530_s23 + $0xb8] sm:$0xff]  ;;  %v349_v38 = vld [vmem:[%s1530_s23 + $0x1b0] sm:$0xff]  ;;  %v332_v41 = vld [vmem:[%s1530_s23 + $0x128] sm:$0xff] }
  0x5a   : > { %492 = vmatpush.msra.mxu0 %v305_v23  ;;  %719 = vmatpush.msra.mxu2 %v336_v25  ;;  %v301_v39 = vld [vmem:[%s1530_s23 + $0x30] sm:$0xff]  ;;  %v348_v42 = vld [vmem:[%s1530_s23 + $0x1a8] sm:$0xff]  ;;  %v331_v45 = vld [vmem:[%s1530_s23 + $0x120] sm:$0xff] }
  0x5b   : > { %605 = vmatpush.msra.mxu1 %v321_v24  ;;  %832 = vmatpush.msra.mxu3 %v352_v26  ;;  %v317_v40 = vld [vmem:[%s1530_s23 + $0xb0] sm:$0xff]  ;;  %v300_v43 = vld [vmem:[%s1530_s23 + $0x28] sm:$0xff]  ;;  %v347_v46 = vld [vmem:[%s1530_s23 + $0x1a0] sm:$0xff] }
  0x5c   : > { %493 = vmatpush.msra.mxu0 %v304_v27  ;;  %720 = vmatpush.msra.mxu2 %v335_v29  ;;  %v316_v44 = vld [vmem:[%s1530_s23 + $0xa8] sm:$0xff]  ;;  %v299_v47 = vld [vmem:[%s1530_s23 + $0x20] sm:$0xff]  ;;  %v330_v49 = vld [vmem:[%s1530_s23 + $0x118] sm:$0xff] }
  0x5d   : > { %606 = vmatpush.msra.mxu1 %v320_v28  ;;  %833 = vmatpush.msra.mxu3 %v351_v30  ;;  %v315_v48 = vld [vmem:[%s1530_s23 + $0xa0] sm:$0xff]  ;;  %v346_v50 = vld [vmem:[%s1530_s23 + $0x198] sm:$0xff]  ;;  %v329_v53 = vld [vmem:[%s1530_s23 + $0x110] sm:$0xff] }
  0x5e   : > { %494 = vmatpush.msra.mxu0 %v303_v31  ;;  %721 = vmatpush.msra.mxu2 %v334_v33  ;;  %v298_v51 = vld [vmem:[%s1530_s23 + $0x18] sm:$0xff]  ;;  %v345_v54 = vld [vmem:[%s1530_s23 + $0x190] sm:$0xff]  ;;  %v328_v57 = vld [vmem:[%s1530_s23 + $0x108] sm:$0xff] }
  0x5f   : > { %607 = vmatpush.msra.mxu1 %v319_v32  ;;  %834 = vmatpush.msra.mxu3 %v350_v34  ;;  %v314_v52 = vld [vmem:[%s1530_s23 + $0x98] sm:$0xff]  ;;  %v297_v55 = vld [vmem:[%s1530_s23 + $0x10] sm:$0xff]  ;;  %v344_v58 = vld [vmem:[%s1530_s23 + $0x188] sm:$0xff] }
  0x60   : > { %495 = vmatpush.msra.mxu0 %v302_v35  ;;  %722 = vmatpush.msra.mxu2 %v333_v37  ;;  %v313_v56 = vld [vmem:[%s1530_s23 + $0x90] sm:$0xff]  ;;  %v296_v59 = vld [vmem:[%s1530_s23 + $0x8] sm:$0xff]  ;;  %v327_v61 = vld [vmem:[%s1530_s23 + $0x100] sm:$0xff] }
  0x61   : > { %608 = vmatpush.msra.mxu1 %v318_v36  ;;  %835 = vmatpush.msra.mxu3 %v349_v38  ;;  %v312_v60 = vld [vmem:[%s1530_s23 + $0x88] sm:$0xff]  ;;  %v343_v62 = vld [vmem:[%s1530_s23 + $0x180] sm:$0xff]  ;;  %v361_v63 = vld [vmem:[%s2795_s1 + $0x10] sm:$0xff] }
  0x62   : > { %496 = vmatpush.msra.mxu0 %v301_v39  ;;  %723 = vmatpush.msra.mxu2 %v332_v41  ;;  %v362_v0 = vld [vmem:[%s2795_s1 + $0x18] sm:$0xff]  ;;  %v295_v1 = vld [vmem:[%s1530_s23] sm:$0xff]  ;;  %v360_v4 = vld [vmem:[%s2795_s1 + $0x8] sm:$0xff] }
  0x63   : > { %609 = vmatpush.msra.mxu1 %v317_v40  ;;  %836 = vmatpush.msra.mxu3 %v348_v42  ;;  %v311_v2 = vld [vmem:[%s1530_s23 + $0x80] sm:$0xff]  ;;  %v365_v5 = vld [vmem:[%s2795_s1 + $0x30] sm:$0xff]  ;;  %v366_v6 = vld [vmem:[%s2795_s1 + $0x38] sm:$0xff] }
  0x64   : > { %497 = vmatpush.msra.mxu0 %v300_v43  ;;  %724 = vmatpush.msra.mxu2 %v331_v45  ;;  %v359_v3 = vld [vmem:[%s2795_s1] sm:$0xff]  ;;  %v364_v8 = vld [vmem:[%s2795_s1 + $0x28] sm:$0xff]  ;;  %v369_v9 = vld [vmem:[%s2795_s1 + $0x50] sm:$0xff] }
  0x65   : > { %610 = vmatpush.msra.mxu1 %v316_v44  ;;  %837 = vmatpush.msra.mxu3 %v347_v46  ;;  %v363_v7 = vld [vmem:[%s2795_s1 + $0x20] sm:$0xff]  ;;  %v370_v10 = vld [vmem:[%s2795_s1 + $0x58] sm:$0xff]  ;;  %v368_v12 = vld [vmem:[%s2795_s1 + $0x48] sm:$0xff] }
  0x66   : > { %498 = vmatpush.msra.mxu0 %v299_v47  ;;  %725 = vmatpush.msra.mxu2 %v330_v49  ;;  %v367_v11 = vld [vmem:[%s2795_s1 + $0x40] sm:$0xff]  ;;  %v373_v13 = vld [vmem:[%s2795_s1 + $0x70] sm:$0xff]  ;;  %v374_v14 = vld [vmem:[%s2795_s1 + $0x78] sm:$0xff] }
  0x67   : > { %611 = vmatpush.msra.mxu1 %v315_v48  ;;  %838 = vmatpush.msra.mxu3 %v346_v50  ;;  %v371_v15 = vld [vmem:[%s2795_s1 + $0x60] sm:$0xff]  ;;  %v372_v16 = vld [vmem:[%s2795_s1 + $0x68] sm:$0xff]  ;;  %v377_v17 = vld [vmem:[%s2795_s1 + $0x90] sm:$0xff] }
  0x68   : > { %499 = vmatpush.msra.mxu0 %v298_v51  ;;  %726 = vmatpush.msra.mxu2 %v329_v53  ;;  %v378_v18 = vld [vmem:[%s2795_s1 + $0x98] sm:$0xff]  ;;  %v375_v19 = vld [vmem:[%s2795_s1 + $0x80] sm:$0xff]  ;;  %v376_v20 = vld [vmem:[%s2795_s1 + $0x88] sm:$0xff] }
  0x69   : > { %612 = vmatpush.msra.mxu1 %v314_v52  ;;  %839 = vmatpush.msra.mxu3 %v345_v54  ;;  %v381_v21 = vld [vmem:[%s2795_s1 + $0xb0] sm:$0xff]  ;;  %v382_v22 = vld [vmem:[%s2795_s1 + $0xb8] sm:$0xff]  ;;  %v379_v23 = vld [vmem:[%s2795_s1 + $0xa0] sm:$0xff] }
  0x6a   : > { %500 = vmatpush.msra.mxu0 %v297_v55  ;;  %727 = vmatpush.msra.mxu2 %v328_v57  ;;  %v380_v24 = vld [vmem:[%s2795_s1 + $0xa8] sm:$0xff]  ;;  %v385_v25 = vld [vmem:[%s2795_s1 + $0xd0] sm:$0xff]  ;;  %v386_v26 = vld [vmem:[%s2795_s1 + $0xd8] sm:$0xff] }
  0x6b   : > { %613 = vmatpush.msra.mxu1 %v313_v56  ;;  %840 = vmatpush.msra.mxu3 %v344_v58  ;;  %v383_v27 = vld [vmem:[%s2795_s1 + $0xc0] sm:$0xff]  ;;  %v384_v28 = vld [vmem:[%s2795_s1 + $0xc8] sm:$0xff]  ;;  %v389_v29 = vld [vmem:[%s2795_s1 + $0xf0] sm:$0xff] }
  0x6c   : > { %501 = vmatpush.msra.mxu0 %v296_v59  ;;  %728 = vmatpush.msra.mxu2 %v327_v61  ;;  %v390_v30 = vld [vmem:[%s2795_s1 + $0xf8] sm:$0xff]  ;;  %v387_v31 = vld [vmem:[%s2795_s1 + $0xe0] sm:$0xff]  ;;  %v388_v32 = vld [vmem:[%s2795_s1 + $0xe8] sm:$0xff] }
  0x6d   : > { %614 = vmatpush.msra.mxu1 %v312_v60  ;;  %841 = vmatpush.msra.mxu3 %v343_v62  ;;  %v393_v33 = vld [vmem:[%s2795_s1 + $0x110] sm:$0xff]  ;;  %v394_v34 = vld [vmem:[%s2795_s1 + $0x118] sm:$0xff]  ;;  %v391_v35 = vld [vmem:[%s2795_s1 + $0x100] sm:$0xff] }
  0x6e   : > { %729 = vmatmul.f32.vlgmr.msra.gmra.mxu2 %v361_v63  ;;  %842 = vmatmul.f32.vlgmr.msra.gmra.mxu3 %v362_v0  ;;  %v392_v36 = vld [vmem:[%s2795_s1 + $0x108] sm:$0xff]  ;;  %v397_v37 = vld [vmem:[%s2795_s1 + $0x130] sm:$0xff]  ;;  %v398_v38 = vld [vmem:[%s2795_s1 + $0x138] sm:$0xff] }
  0x6f   : > { %502 = vmatpush.msra.mxu0 %v295_v1  ;;  %615 = vmatpush.msra.mxu1 %v311_v2  ;;  %v395_v39 = vld [vmem:[%s2795_s1 + $0x120] sm:$0xff]  ;;  %v396_v40 = vld [vmem:[%s2795_s1 + $0x128] sm:$0xff]  ;;  %v401_v41 = vld [vmem:[%s2795_s1 + $0x150] sm:$0xff] }
  0x70   : > { %503 = vmatmul.f32.vlgmr.msra.gmra.mxu0 %v359_v3  ;;  %616 = vmatmul.f32.vlgmr.msra.gmra.mxu1 %v360_v4  ;;  %v402_v42 = vld [vmem:[%s2795_s1 + $0x158] sm:$0xff]  ;;  %v399_v43 = vld [vmem:[%s2795_s1 + $0x140] sm:$0xff]  ;;  %v400_v44 = vld [vmem:[%s2795_s1 + $0x148] sm:$0xff] }
  0x71   : > { %v405_v45 = vld [vmem:[%s2795_s1 + $0x170] sm:$0xff]  ;;  %v406_v46 = vld [vmem:[%s2795_s1 + $0x178] sm:$0xff]  ;;  %v403_v47 = vld [vmem:[%s2795_s1 + $0x160] sm:$0xff] }
  0x72   : > { %v404_v48 = vld [vmem:[%s2795_s1 + $0x168] sm:$0xff]  ;;  %v409_v49 = vld [vmem:[%s2795_s1 + $0x190] sm:$0xff]  ;;  %v410_v50 = vld [vmem:[%s2795_s1 + $0x198] sm:$0xff] }
  0x73   : > { %v407_v51 = vld [vmem:[%s2795_s1 + $0x180] sm:$0xff]  ;;  %v408_v52 = vld [vmem:[%s2795_s1 + $0x188] sm:$0xff]  ;;  %v413_v53 = vld [vmem:[%s2795_s1 + $0x1b0] sm:$0xff] }
  0x74   : > { %v414_v54 = vld [vmem:[%s2795_s1 + $0x1b8] sm:$0xff]  ;;  %v411_v55 = vld [vmem:[%s2795_s1 + $0x1a0] sm:$0xff]  ;;  %v412_v56 = vld [vmem:[%s2795_s1 + $0x1a8] sm:$0xff] }
  0x75   : > { %v417_v57 = vld [vmem:[%s2795_s1 + $0x1d0] sm:$0xff]  ;;  %v418_v58 = vld [vmem:[%s2795_s1 + $0x1d8] sm:$0xff]  ;;  %v415_v59 = vld [vmem:[%s2795_s1 + $0x1c0] sm:$0xff] }
  0x76   : > { %732 = vmatmul.f32.gmra.mxu2 %v365_v5  ;;  %845 = vmatmul.f32.gmra.mxu3 %v366_v6  ;;  %v416_v60 = vld [vmem:[%s2795_s1 + $0x1c8] sm:$0xff]  ;;  %v421_v61 = vld [vmem:[%s2795_s1 + $0x1f0] sm:$0xff]  ;;  %v422_v62 = vld [vmem:[%s2795_s1 + $0x1f8] sm:$0xff] }
  0x77   : > { %v419_v63 = vld [vmem:[%s2795_s1 + $0x1e0] sm:$0xff]  ;;  %v420_v0 = vld [vmem:[%s2795_s1 + $0x1e8] sm:$0xff]  ;;  %v425_v1 = vld [vmem:[%s2795_s1 + $0x210] sm:$0xff] }
  0x78   : > { %506 = vmatmul.f32.gmra.mxu0 %v363_v7  ;;  %619 = vmatmul.f32.gmra.mxu1 %v364_v8  ;;  %v426_v2 = vld [vmem:[%s2795_s1 + $0x218] sm:$0xff]  ;;  %v423_v5 = vld [vmem:[%s2795_s1 + $0x200] sm:$0xff]  ;;  %v424_v6 = vld [vmem:[%s2795_s1 + $0x208] sm:$0xff] }
  0x7e   : > { %735 = vmatmul.f32.gmra.mxu2 %v369_v9  ;;  %848 = vmatmul.f32.gmra.mxu3 %v370_v10 }
  0x80   : > { %509 = vmatmul.f32.gmra.mxu0 %v367_v11  ;;  %622 = vmatmul.f32.gmra.mxu1 %v368_v12  ;;  %v429_v11 = vld [vmem:[%s2795_s1 + $0x230] sm:$0xff] }
  0x86   : > { %738 = vmatmul.f32.gmra.mxu2 %v373_v13  ;;  %851 = vmatmul.f32.gmra.mxu3 %v374_v14  ;;  %v430_v13 = vld [vmem:[%s2795_s1 + $0x238] sm:$0xff] }
  0x88   : > { %512 = vmatmul.f32.gmra.mxu0 %v371_v15  ;;  %625 = vmatmul.f32.gmra.mxu1 %v372_v16  ;;  %v427_v16 = vld [vmem:[%s2795_s1 + $0x220] sm:$0xff] }
  0x8e   : > { %741 = vmatmul.f32.gmra.mxu2 %v377_v17  ;;  %854 = vmatmul.f32.gmra.mxu3 %v378_v18 }
  0x90   : > { %515 = vmatmul.f32.gmra.mxu0 %v375_v19  ;;  %628 = vmatmul.f32.gmra.mxu1 %v376_v20  ;;  %v428_v19 = vld [vmem:[%s2795_s1 + $0x228] sm:$0xff] }
  0x96   : > { %744 = vmatmul.f32.gmra.mxu2 %v381_v21  ;;  %857 = vmatmul.f32.gmra.mxu3 %v382_v22 }
  0x98   : > { %518 = vmatmul.f32.gmra.mxu0 %v379_v23  ;;  %631 = vmatmul.f32.gmra.mxu1 %v380_v24  ;;  %v433_v23 = vld [vmem:[%s2795_s1 + $0x250] sm:$0xff] }
  0x9e   : > { %747 = vmatmul.f32.gmra.mxu2 %v385_v25  ;;  %860 = vmatmul.f32.gmra.mxu3 %v386_v26  ;;  %v434_v25 = vld [vmem:[%s2795_s1 + $0x258] sm:$0xff] }
  0xa0   : > { %521 = vmatmul.f32.gmra.mxu0 %v383_v27  ;;  %634 = vmatmul.f32.gmra.mxu1 %v384_v28  ;;  %v431_v28 = vld [vmem:[%s2795_s1 + $0x240] sm:$0xff] }
  0xa6   : > { %750 = vmatmul.f32.gmra.mxu2 %v389_v29  ;;  %863 = vmatmul.f32.gmra.mxu3 %v390_v30  ;;  %v432_v30 = vld [vmem:[%s2795_s1 + $0x248] sm:$0xff] }
  0xa8   : > { %524 = vmatmul.f32.gmra.mxu0 %v387_v31  ;;  %637 = vmatmul.f32.gmra.mxu1 %v388_v32 }
  0xae   : > { %753 = vmatmul.f32.gmra.mxu2 %v393_v33  ;;  %866 = vmatmul.f32.gmra.mxu3 %v394_v34  ;;  %v437_v34 = vld [vmem:[%s2795_s1 + $0x270] sm:$0xff] }
  0xb0   : > { %527 = vmatmul.f32.gmra.mxu0 %v391_v35  ;;  %640 = vmatmul.f32.gmra.mxu1 %v392_v36 }
  0xb6   : > { %756 = vmatmul.f32.gmra.mxu2 %v397_v37  ;;  %869 = vmatmul.f32.gmra.mxu3 %v398_v38  ;;  %v438_v37 = vld [vmem:[%s2795_s1 + $0x278] sm:$0xff] }
  0xb8   : > { %530 = vmatmul.f32.gmra.mxu0 %v395_v39  ;;  %643 = vmatmul.f32.gmra.mxu1 %v396_v40  ;;  %v435_v40 = vld [vmem:[%s2795_s1 + $0x260] sm:$0xff] }
  0xbe   : > { %759 = vmatmul.f32.gmra.mxu2 %v401_v41  ;;  %872 = vmatmul.f32.gmra.mxu3 %v402_v42  ;;  %v436_v42 = vld [vmem:[%s2795_s1 + $0x268] sm:$0xff] }
  0xc0   : > { %533 = vmatmul.f32.gmra.mxu0 %v399_v43  ;;  %646 = vmatmul.f32.gmra.mxu1 %v400_v44 }
  0xc6   : > { %762 = vmatmul.f32.gmra.mxu2 %v405_v45  ;;  %875 = vmatmul.f32.gmra.mxu3 %v406_v46  ;;  %v441_v46 = vld [vmem:[%s2795_s1 + $0x290] sm:$0xff] }
  0xc8   : > { %536 = vmatmul.f32.gmra.mxu0 %v403_v47  ;;  %649 = vmatmul.f32.gmra.mxu1 %v404_v48  ;;  %v442_v48 = vld [vmem:[%s2795_s1 + $0x298] sm:$0xff] }
  0xce   : > { %765 = vmatmul.f32.gmra.mxu2 %v409_v49  ;;  %878 = vmatmul.f32.gmra.mxu3 %v410_v50 }
  0xd0   : > { %539 = vmatmul.f32.gmra.mxu0 %v407_v51  ;;  %652 = vmatmul.f32.gmra.mxu1 %v408_v52  ;;  %v439_v52 = vld [vmem:[%s2795_s1 + $0x280] sm:$0xff] }
  0xd6   : > { %768 = vmatmul.f32.gmra.mxu2 %v413_v53  ;;  %881 = vmatmul.f32.gmra.mxu3 %v414_v54 }
  0xd8   : > { %542 = vmatmul.f32.gmra.mxu0 %v411_v55  ;;  %655 = vmatmul.f32.gmra.mxu1 %v412_v56  ;;  %v440_v55 = vld [vmem:[%s2795_s1 + $0x288] sm:$0xff] }
  0xde   : > { %771 = vmatmul.f32.gmra.mxu2 %v417_v57  ;;  %884 = vmatmul.f32.gmra.mxu3 %v418_v58 }
  0xe0   : > { %545 = vmatmul.f32.gmra.mxu0 %v415_v59  ;;  %658 = vmatmul.f32.gmra.mxu1 %v416_v60  ;;  %v445_v59 = vld [vmem:[%s2795_s1 + $0x2b0] sm:$0xff] }
  0xe6   : > { %774 = vmatmul.f32.gmra.mxu2 %v421_v61  ;;  %887 = vmatmul.f32.gmra.mxu3 %v422_v62  ;;  %v446_v61 = vld [vmem:[%s2795_s1 + $0x2b8] sm:$0xff] }
  0xe8   : > { %548 = vmatmul.f32.gmra.mxu0 %v419_v63  ;;  %661 = vmatmul.f32.gmra.mxu1 %v420_v0 }
  0xed   : > { %v504_v3 = vpop.f32.mrf.mxu0  ;;  %v617_v4 = vpop.f32.mrf.mxu1 }
  0xee   : > { %777 = vmatmul.f32.gmra.mxu2 %v425_v1  ;;  %v618_v7 = vadd.f32 %v617_v4, %v504_v3  ;;  %890 = vmatmul.f32.gmra.mxu3 %v426_v2  ;;  %v443_v2 = vld [vmem:[%s2795_s1 + $0x2a0] sm:$0xff]  ;;  %v444_v3 = vld [vmem:[%s2795_s1 + $0x2a8] sm:$0xff] }
  0xf0   : > { %551 = vmatmul.f32.gmra.mxu0 %v423_v5  ;;  %664 = vmatmul.f32.gmra.mxu1 %v424_v6 }
  0xf1   : > { %v730_v8 = vpop.f32.mrf.mxu2  ;;  %v843_v9 = vpop.f32.mrf.mxu3 }
  0xf2   : > { %v731_v10 = vadd.f32 %v730_v8, %v618_v7  ;;  %v449_v7 = vld [vmem:[%s2795_s1 + $0x2d0] sm:$0xff] }
  0xf4   : > { %v844_v12 = vadd.f32 %v843_v9, %v731_v10  ;;  %v450_v9 = vld [vmem:[%s2795_s1 + $0x2d8] sm:$0xff] }
  0xf5   : > { %v507_v14 = vpop.f32.mrf.mxu0  ;;  %v620_v15 = vpop.f32.mrf.mxu1 }
  0xf6   : > { %939 = vst [vmem:[%s1535_s26] sm:$0xff] %v844_v12  ;;  %780 = vmatmul.f32.gmra.mxu2 %v429_v11  ;;  %1003 = vadd.xlane.f32.xlu0 %v844_v12  ;;  %v621_v17 = vadd.f32 %v620_v15, %v507_v14  ;;  %v1164_v18 = vmul.f32 %v844_v12, %v844_v12  ;;  %v447_v14 = vld [vmem:[%s2795_s1 + $0x2c0] sm:$0xff]  ;;  %v448_v15 = vld [vmem:[%s2795_s1 + $0x2c8] sm:$0xff] }
  0xf7   : > { %893 = vmatmul.f32.gmra.mxu3 %v430_v13 }
  0xf8   : > { %1196 = vadd.xlane.f32.xlu2 %v1164_v18  ;;  %554 = vmatmul.f32.gmra.mxu0 %v427_v16 }
  0xf9   : > { %v733_v20 = vpop.f32.mrf.mxu2  ;;  %667 = vmatmul.f32.gmra.mxu1 %v428_v19  ;;  %v846_v21 = vpop.f32.mrf.mxu3  ;;  %v453_v19 = vld [vmem:[%s2795_s1 + $0x2f0] sm:$0xff] }
  0xfa   : > { %v734_v22 = vadd.f32 %v733_v20, %v621_v17 }
  0xfc   : > { %v847_v24 = vadd.f32 %v846_v21, %v734_v22  ;;  %v454_v21 = vld [vmem:[%s2795_s1 + $0x2f8] sm:$0xff] }
  0xfd   : > { %v510_v26 = vpop.f32.mrf.mxu0  ;;  %v623_v27 = vpop.f32.mrf.mxu1 }
  0xfe   : > { %940 = vst [vmem:[%s1535_s26 + $0x8] sm:$0xff] %v847_v24  ;;  %783 = vmatmul.f32.gmra.mxu2 %v433_v23  ;;  %1005 = vadd.xlane.f32.xlu0 %v847_v24  ;;  %v624_v29 = vadd.f32 %v623_v27, %v510_v26  ;;  %v1165_v36 = vmul.f32 %v847_v24, %v847_v24  ;;  %v451_v26 = vld [vmem:[%s2795_s1 + $0x2e0] sm:$0xff]  ;;  %v452_v27 = vld [vmem:[%s2795_s1 + $0x2e8] sm:$0xff] }
  0xff   : > { %896 = vmatmul.f32.gmra.mxu3 %v434_v25 }
 0x100   : > { %557 = vmatmul.f32.gmra.mxu0 %v431_v28 }
 0x101   : > { %v736_v31 = vpop.f32.mrf.mxu2  ;;  %670 = vmatmul.f32.gmra.mxu1 %v432_v30  ;;  %v849_v32 = vpop.f32.mrf.mxu3 }
 0x102   : > { %v737_v33 = vadd.f32 %v736_v31, %v624_v29  ;;  %v457_v31 = vld [vmem:[%s2795_s1 + $0x310] sm:$0xff] }
 0x104   : > { %v850_v35 = vadd.f32 %v849_v32, %v737_v33  ;;  %v458_v33 = vld [vmem:[%s2795_s1 + $0x318] sm:$0xff] }
 0x105   : > { %v513_v38 = vpop.f32.mrf.mxu0  ;;  %v626_v39 = vpop.f32.mrf.mxu1 }
 0x106   : > { %941 = vst [vmem:[%s1535_s26 + $0x10] sm:$0xff] %v850_v35  ;;  %786 = vmatmul.f32.gmra.mxu2 %v437_v34  ;;  %1198 = vadd.xlane.f32.xlu0 %v1165_v36  ;;  %v627_v41 = vadd.f32 %v626_v39, %v513_v38  ;;  %v1166_v49 = vmul.f32 %v850_v35, %v850_v35  ;;  %v455_v38 = vld [vmem:[%s2795_s1 + $0x300] sm:$0xff]  ;;  %v456_v39 = vld [vmem:[%s2795_s1 + $0x308] sm:$0xff] }
 0x107   : > { %1007 = vadd.xlane.f32.xlu1 %v850_v35  ;;  %899 = vmatmul.f32.gmra.mxu3 %v438_v37 }
 0x108   : > { %560 = vmatmul.f32.gmra.mxu0 %v435_v40 }
 0x109   : > { %v739_v43 = vpop.f32.mrf.mxu2  ;;  %673 = vmatmul.f32.gmra.mxu1 %v436_v42  ;;  %v852_v44 = vpop.f32.mrf.mxu3 }
 0x10a   : > { %v740_v45 = vadd.f32 %v739_v43, %v627_v41  ;;  %v461_v43 = vld [vmem:[%s2795_s1 + $0x330] sm:$0xff] }
 0x10c   : > { %v853_v47 = vadd.f32 %v852_v44, %v740_v45  ;;  %v462_v45 = vld [vmem:[%s2795_s1 + $0x338] sm:$0xff] }
 0x10d   : > { %v516_v50 = vpop.f32.mrf.mxu0  ;;  %v629_v51 = vpop.f32.mrf.mxu1 }
 0x10e   : > { %942 = vst [vmem:[%s1535_s26 + $0x18] sm:$0xff] %v853_v47  ;;  %789 = vmatmul.f32.gmra.mxu2 %v441_v46  ;;  %v630_v53 = vadd.f32 %v629_v51, %v516_v50  ;;  %v1167_v54 = vmul.f32 %v853_v47, %v853_v47  ;;  %v459_v50 = vld [vmem:[%s2795_s1 + $0x320] sm:$0xff]  ;;  %v460_v51 = vld [vmem:[%s2795_s1 + $0x328] sm:$0xff] }
 0x10f   : > { %1200 = vadd.xlane.f32.xlu1 %v1166_v49  ;;  %902 = vmatmul.f32.gmra.mxu3 %v442_v48 }
 0x110   : > { %1202 = vadd.xlane.f32.xlu2 %v1167_v54  ;;  %563 = vmatmul.f32.gmra.mxu0 %v439_v52 }
 0x111   : > { %v742_v56 = vpop.f32.mrf.mxu2  ;;  %676 = vmatmul.f32.gmra.mxu1 %v440_v55  ;;  %v855_v57 = vpop.f32.mrf.mxu3  ;;  %v465_v55 = vld [vmem:[%s2795_s1 + $0x350] sm:$0xff] }
 0x112   : > { %v743_v58 = vadd.f32 %v742_v56, %v630_v53 }
 0x114   : > { %v856_v60 = vadd.f32 %v855_v57, %v743_v58  ;;  %v466_v57 = vld [vmem:[%s2795_s1 + $0x358] sm:$0xff] }
 0x115   : > { %v519_v62 = vpop.f32.mrf.mxu0  ;;  %v632_v63 = vpop.f32.mrf.mxu1 }
 0x116   : > { %943 = vst [vmem:[%s1535_s26 + $0x20] sm:$0xff] %v856_v60  ;;  %792 = vmatmul.f32.gmra.mxu2 %v445_v59  ;;  %v633_v0 = vadd.f32 %v632_v63, %v519_v62  ;;  %v1168_v1 = vmul.f32 %v856_v60, %v856_v60  ;;  %v463_v62 = vld [vmem:[%s2795_s1 + $0x340] sm:$0xff]  ;;  %v464_v63 = vld [vmem:[%s2795_s1 + $0x348] sm:$0xff] }
 0x117   : > { %1009 = vadd.xlane.f32.xlu1 %v853_v47  ;;  %905 = vmatmul.f32.gmra.mxu3 %v446_v61 }
 0x118   : > { %1011 = vadd.xlane.f32.xlu2 %v856_v60  ;;  %1204 = vadd.xlane.f32.xlu0 %v1168_v1 }
 0x119   : > { %v745_v4 = vpop.f32.mrf.mxu2  ;;  %566 = vmatmul.f32.gmra.mxu0 %v443_v2  ;;  %679 = vmatmul.f32.gmra.mxu1 %v444_v3  ;;  %v858_v5 = vpop.f32.mrf.mxu3  ;;  %v469_v3 = vld [vmem:[%s2795_s1 + $0x370] sm:$0xff] }
 0x11a   : > { %v746_v6 = vadd.f32 %v745_v4, %v633_v0 }
 0x11c   : > { %v859_v8 = vadd.f32 %v858_v5, %v746_v6  ;;  %v470_v5 = vld [vmem:[%s2795_s1 + $0x378] sm:$0xff] }
 0x11d   : > { %v522_v10 = vpop.f32.mrf.mxu0  ;;  %v635_v11 = vpop.f32.mrf.mxu1 }
 0x11e   : > { %944 = vst [vmem:[%s1535_s26 + $0x28] sm:$0xff] %v859_v8  ;;  %795 = vmatmul.f32.gmra.mxu2 %v449_v7  ;;  %v636_v12 = vadd.f32 %v635_v11, %v522_v10  ;;  %v1169_v13 = vmul.f32 %v859_v8, %v859_v8  ;;  %v467_v10 = vld [vmem:[%s2795_s1 + $0x360] sm:$0xff]  ;;  %v468_v11 = vld [vmem:[%s2795_s1 + $0x368] sm:$0xff] }
 0x11f   : > { %908 = vmatmul.f32.gmra.mxu3 %v450_v9 }
 0x120   : > { %1013 = vadd.xlane.f32.xlu2 %v859_v8  ;;  %1206 = vadd.xlane.f32.xlu1 %v1169_v13 }
 0x121   : > { %v748_v16 = vpop.f32.mrf.mxu2  ;;  %569 = vmatmul.f32.gmra.mxu0 %v447_v14  ;;  %682 = vmatmul.f32.gmra.mxu1 %v448_v15  ;;  %v861_v17 = vpop.f32.mrf.mxu3  ;;  %v473_v15 = vld [vmem:[%s2795_s1 + $0x390] sm:$0xff] }
 0x122   : > { %v749_v18 = vadd.f32 %v748_v16, %v636_v12 }
 0x124   : > { %v862_v20 = vadd.f32 %v861_v17, %v749_v18  ;;  %v474_v17 = vld [vmem:[%s2795_s1 + $0x398] sm:$0xff] }
 0x125   : > { %v525_v22 = vpop.f32.mrf.mxu0  ;;  %v638_v23 = vpop.f32.mrf.mxu1 }
 0x126   : > { %945 = vst [vmem:[%s1535_s26 + $0x30] sm:$0xff] %v862_v20  ;;  %798 = vmatmul.f32.gmra.mxu2 %v453_v19  ;;  %1015 = vadd.xlane.f32.xlu0 %v862_v20  ;;  %v639_v24 = vadd.f32 %v638_v23, %v525_v22  ;;  %v1170_v25 = vmul.f32 %v862_v20, %v862_v20  ;;  %v471_v22 = vld [vmem:[%s2795_s1 + $0x380] sm:$0xff]  ;;  %v472_v23 = vld [vmem:[%s2795_s1 + $0x388] sm:$0xff] }
 0x127   : > { %911 = vmatmul.f32.gmra.mxu3 %v454_v21 }
 0x128   : > { %1208 = vadd.xlane.f32.xlu2 %v1170_v25 }
 0x129   : > { %v751_v28 = vpop.f32.mrf.mxu2  ;;  %572 = vmatmul.f32.gmra.mxu0 %v451_v26  ;;  %685 = vmatmul.f32.gmra.mxu1 %v452_v27  ;;  %v864_v29 = vpop.f32.mrf.mxu3  ;;  %v477_v27 = vld [vmem:[%s2795_s1 + $0x3b0] sm:$0xff] }
 0x12a   : > { %v752_v30 = vadd.f32 %v751_v28, %v639_v24 }
 0x12c   : > { %v865_v32 = vadd.f32 %v864_v29, %v752_v30  ;;  %v478_v29 = vld [vmem:[%s2795_s1 + $0x3b8] sm:$0xff] }
 0x12d   : > { %v528_v34 = vpop.f32.mrf.mxu0  ;;  %v641_v35 = vpop.f32.mrf.mxu1 }
 0x12e   : > { %946 = vst [vmem:[%s1535_s26 + $0x38] sm:$0xff] %v865_v32  ;;  %801 = vmatmul.f32.gmra.mxu2 %v457_v31  ;;  %1017 = vadd.xlane.f32.xlu1 %v865_v32  ;;  %v642_v36 = vadd.f32 %v641_v35, %v528_v34  ;;  %v1171_v37 = vmul.f32 %v865_v32, %v865_v32  ;;  %v475_v34 = vld [vmem:[%s2795_s1 + $0x3a0] sm:$0xff]  ;;  %v476_v35 = vld [vmem:[%s2795_s1 + $0x3a8] sm:$0xff] }
 0x12f   : > { %914 = vmatmul.f32.gmra.mxu3 %v458_v33 }
 0x130   : > { %1210 = vadd.xlane.f32.xlu0 %v1171_v37 }
 0x131   : > { %v754_v40 = vpop.f32.mrf.mxu2  ;;  %575 = vmatmul.f32.gmra.mxu0 %v455_v38  ;;  %688 = vmatmul.f32.gmra.mxu1 %v456_v39  ;;  %v867_v41 = vpop.f32.mrf.mxu3  ;;  %v481_v39 = vld [vmem:[%s2795_s1 + $0x3d0] sm:$0xff] }
 0x132   : > { %v755_v42 = vadd.f32 %v754_v40, %v642_v36 }
 0x134   : > { %v868_v44 = vadd.f32 %v867_v41, %v755_v42  ;;  %v482_v41 = vld [vmem:[%s2795_s1 + $0x3d8] sm:$0xff] }
 0x135   : > { %v531_v46 = vpop.f32.mrf.mxu0  ;;  %v644_v47 = vpop.f32.mrf.mxu1 }
 0x136   : > { %947 = vst [vmem:[%s1535_s26 + $0x40] sm:$0xff] %v868_v44  ;;  %804 = vmatmul.f32.gmra.mxu2 %v461_v43  ;;  %1019 = vadd.xlane.f32.xlu2 %v868_v44  ;;  %v645_v48 = vadd.f32 %v644_v47, %v531_v46  ;;  %v1172_v49 = vmul.f32 %v868_v44, %v868_v44  ;;  %v479_v46 = vld [vmem:[%s2795_s1 + $0x3c0] sm:$0xff]  ;;  %v480_v47 = vld [vmem:[%s2795_s1 + $0x3c8] sm:$0xff] }
 0x137   : > { %917 = vmatmul.f32.gmra.mxu3 %v462_v45 }
 0x138   : > { %1212 = vadd.xlane.f32.xlu1 %v1172_v49 }
 0x139   : > { %v757_v52 = vpop.f32.mrf.mxu2  ;;  %578 = vmatmul.f32.gmra.mxu0 %v459_v50  ;;  %691 = vmatmul.f32.gmra.mxu1 %v460_v51  ;;  %v870_v53 = vpop.f32.mrf.mxu3  ;;  %v485_v51 = vld [vmem:[%s2795_s1 + $0x3f0] sm:$0xff] }
 0x13a   : > { %v758_v54 = vadd.f32 %v757_v52, %v645_v48 }
 0x13c   : > { %v871_v56 = vadd.f32 %v870_v53, %v758_v54  ;;  %v486_v53 = vld [vmem:[%s2795_s1 + $0x3f8] sm:$0xff] }
 0x13d   : > { %v534_v58 = vpop.f32.mrf.mxu0  ;;  %v647_v59 = vpop.f32.mrf.mxu1 }
 0x13e   : > { %948 = vst [vmem:[%s1535_s26 + $0x48] sm:$0xff] %v871_v56  ;;  %807 = vmatmul.f32.gmra.mxu2 %v465_v55  ;;  %1021 = vadd.xlane.f32.xlu0 %v871_v56  ;;  %v648_v60 = vadd.f32 %v647_v59, %v534_v58  ;;  %v1173_v61 = vmul.f32 %v871_v56, %v871_v56  ;;  %v483_v58 = vld [vmem:[%s2795_s1 + $0x3e0] sm:$0xff]  ;;  %v484_v59 = vld [vmem:[%s2795_s1 + $0x3e8] sm:$0xff] }
 0x13f   : > { %920 = vmatmul.f32.gmra.mxu3 %v466_v57 }
 0x140   : > { %1214 = vadd.xlane.f32.xlu2 %v1173_v61 }
 0x141   : > { %v760_v0 = vpop.f32.mrf.mxu2  ;;  %581 = vmatmul.f32.gmra.mxu0 %v463_v62  ;;  %694 = vmatmul.f32.gmra.mxu1 %v464_v63  ;;  %v873_v1 = vpop.f32.mrf.mxu3  ;;  %v1132_v63 = vld [vmem:[%s2798_s4] sm:$0xff] }
 0x142   : > { %v761_v2 = vadd.f32 %v760_v0, %v648_v60  ;;  %v971_v60 = vld [vmem:[%s2797_s3] sm:$0xff] }
 0x144   : > { %v874_v4 = vadd.f32 %v873_v1, %v761_v2 }
 0x145   : > { %v537_v6 = vpop.f32.mrf.mxu0  ;;  %v650_v7 = vpop.f32.mrf.mxu1 }
 0x146   : > { %949 = vst [vmem:[%s1535_s26 + $0x50] sm:$0xff] %v874_v4  ;;  %810 = vmatmul.f32.gmra.mxu2 %v469_v3  ;;  %1023 = vadd.xlane.f32.xlu1 %v874_v4  ;;  %v651_v8 = vadd.f32 %v650_v7, %v537_v6  ;;  %v1174_v9 = vmul.f32 %v874_v4, %v874_v4 }
 0x147   : > { %923 = vmatmul.f32.gmra.mxu3 %v470_v5 }
 0x148   : > { %1216 = vadd.xlane.f32.xlu0 %v1174_v9 }
 0x149   : > { %v763_v12 = vpop.f32.mrf.mxu2  ;;  %584 = vmatmul.f32.gmra.mxu0 %v467_v10  ;;  %697 = vmatmul.f32.gmra.mxu1 %v468_v11  ;;  %v876_v13 = vpop.f32.mrf.mxu3  ;;  %v972_v10 = vld [vmem:[%s2797_s3 + $0x8] sm:$0xff] }
 0x14a   : > { %v764_v14 = vadd.f32 %v763_v12, %v651_v8 }
 0x14c   : > { %v877_v16 = vadd.f32 %v876_v13, %v764_v14 }
 0x14d   : > { %v540_v18 = vpop.f32.mrf.mxu0  ;;  %v653_v19 = vpop.f32.mrf.mxu1 }
 0x14e   : > { %950 = vst [vmem:[%s1535_s26 + $0x58] sm:$0xff] %v877_v16  ;;  %813 = vmatmul.f32.gmra.mxu2 %v473_v15  ;;  %1025 = vadd.xlane.f32.xlu2 %v877_v16  ;;  %v654_v20 = vadd.f32 %v653_v19, %v540_v18  ;;  %v1175_v21 = vmul.f32 %v877_v16, %v877_v16 }
 0x14f   : > { %926 = vmatmul.f32.gmra.mxu3 %v474_v17 }
 0x150   : > { %1218 = vadd.xlane.f32.xlu1 %v1175_v21  ;;  %v1133_v21 = vld [vmem:[%s2798_s4 + $0x8] sm:$0xff] }
 0x151   : > { %v766_v24 = vpop.f32.mrf.mxu2  ;;  %587 = vmatmul.f32.gmra.mxu0 %v471_v22  ;;  %700 = vmatmul.f32.gmra.mxu1 %v472_v23  ;;  %v879_v25 = vpop.f32.mrf.mxu3  ;;  %v973_v22 = vld [vmem:[%s2797_s3 + $0x10] sm:$0xff] }
 0x152   : > { %v767_v26 = vadd.f32 %v766_v24, %v654_v20 }
 0x154   : > { %v880_v28 = vadd.f32 %v879_v25, %v767_v26 }
 0x155   : > { %v543_v30 = vpop.f32.mrf.mxu0  ;;  %v656_v31 = vpop.f32.mrf.mxu1 }
 0x156   : > { %951 = vst [vmem:[%s1535_s26 + $0x60] sm:$0xff] %v880_v28  ;;  %816 = vmatmul.f32.gmra.mxu2 %v477_v27  ;;  %1027 = vadd.xlane.f32.xlu0 %v880_v28  ;;  %v657_v32 = vadd.f32 %v656_v31, %v543_v30  ;;  %v1176_v33 = vmul.f32 %v880_v28, %v880_v28 }
 0x157   : > { %929 = vmatmul.f32.gmra.mxu3 %v478_v29 }
 0x158   : > { %1220 = vadd.xlane.f32.xlu2 %v1176_v33 }
 0x159   : > { %v769_v36 = vpop.f32.mrf.mxu2  ;;  %590 = vmatmul.f32.gmra.mxu0 %v475_v34  ;;  %703 = vmatmul.f32.gmra.mxu1 %v476_v35  ;;  %v882_v37 = vpop.f32.mrf.mxu3  ;;  %v1134_v35 = vld [vmem:[%s2798_s4 + $0x10] sm:$0xff] }
 0x15a   : > { %v770_v38 = vadd.f32 %v769_v36, %v657_v32 }
 0x15c   : > { %v883_v40 = vadd.f32 %v882_v37, %v770_v38  ;;  %v1135_v37 = vld [vmem:[%s2798_s4 + $0x18] sm:$0xff] }
 0x15d   : > { %v546_v42 = vpop.f32.mrf.mxu0  ;;  %v659_v43 = vpop.f32.mrf.mxu1 }
 0x15e   : > { %952 = vst [vmem:[%s1535_s26 + $0x68] sm:$0xff] %v883_v40  ;;  %819 = vmatmul.f32.gmra.mxu2 %v481_v39  ;;  %1029 = vadd.xlane.f32.xlu1 %v883_v40  ;;  %v660_v44 = vadd.f32 %v659_v43, %v546_v42  ;;  %v1177_v45 = vmul.f32 %v883_v40, %v883_v40 }
 0x15f   : > { %932 = vmatmul.f32.gmra.mxu3 %v482_v41 }
 0x160   : > { %1222 = vadd.xlane.f32.xlu0 %v1177_v45 }
 0x161   : > { %v772_v48 = vpop.f32.mrf.mxu2  ;;  %593 = vmatmul.f32.gmra.mxu0 %v479_v46  ;;  %706 = vmatmul.f32.gmra.mxu1 %v480_v47  ;;  %v885_v49 = vpop.f32.mrf.mxu3 }
 0x162   : > { %v773_v50 = vadd.f32 %v772_v48, %v660_v44 }
 0x164   : > { %v886_v52 = vadd.f32 %v885_v49, %v773_v50  ;;  %v974_v49 = vld [vmem:[%s2797_s3 + $0x18] sm:$0xff] }
 0x165   : > { %v549_v54 = vpop.f32.mrf.mxu0  ;;  %v662_v55 = vpop.f32.mrf.mxu1 }
 0x166   : > { %953 = vst [vmem:[%s1535_s26 + $0x70] sm:$0xff] %v886_v52  ;;  %822 = vmatmul.f32.gmra.mxu2 %v485_v51  ;;  %1031 = vadd.xlane.f32.xlu2 %v886_v52  ;;  %v663_v56 = vadd.f32 %v662_v55, %v549_v54  ;;  %v1178_v57 = vmul.f32 %v886_v52, %v886_v52  ;;  %v975_v51 = vld [vmem:[%s2797_s3 + $0x20] sm:$0xff] }
 0x167   : > { %935 = vmatmul.f32.gmra.mxu3 %v486_v53  ;;  %v1136_v52 = vld [vmem:[%s2798_s4 + $0x20] sm:$0xff] }
 0x168   : > { %1224 = vadd.xlane.f32.xlu1 %v1178_v57 }
 0x169   : > { %v775_v61 = vpop.f32.mrf.mxu2  ;;  %v1004_v62 = vpop.xlane.xlu0 %1003  ;;  %596 = vmatmul.f32.gmra.mxu0 %v483_v58  ;;  %709 = vmatmul.f32.gmra.mxu1 %v484_v59 }
 0x16a   : > { %v776_v0 = vadd.f32 %v775_v61, %v663_v56  ;;  %v1067_v1 = vadd.f32 %v1004_v62, %v971_v60  ;;  %v888_v2 = vpop.f32.mrf.mxu3 }
 0x16b   : > { %v1197_v3 = vpop.xlane.xlu2 %1196 }
 0x16c   : > { %1100 = vst.msk [vmem:[%s2797_s3] sm:$0xff] %vm1099_vm1, %v1067_v1  ;;  %v889_v4 = vadd.f32 %v888_v2, %v776_v0  ;;  %v1260_v5 = vadd.f32 %v1197_v3, %v1132_v63  ;;  %v976_v3 = vld [vmem:[%s2797_s3 + $0x28] sm:$0xff] }
 0x16d   : > { %v552_v6 = vpop.f32.mrf.mxu0  ;;  %v665_v7 = vpop.f32.mrf.mxu1 }
 0x16e   : > { %954 = vst [vmem:[%s1535_s26 + $0x78] sm:$0xff] %v889_v4  ;;  %1033 = vadd.xlane.f32.xlu0 %v889_v4  ;;  %v666_v8 = vadd.f32 %v665_v7, %v552_v6  ;;  %v1179_v9 = vmul.f32 %v889_v4, %v889_v4  ;;  %v1137_v4 = vld [vmem:[%s2798_s4 + $0x28] sm:$0xff] }
 0x16f   : > { %1292 = vst.msk [vmem:[%s2798_s4] sm:$0xff] %vm1099_vm1, %v1260_v5 }
 0x170   : > { %1226 = vadd.xlane.f32.xlu2 %v1179_v9 }
 0x171   : > { %v778_v11 = vpop.f32.mrf.mxu2  ;;  %v1006_v12 = vpop.xlane.xlu0 %1005 }
 0x172   : > { %v779_v13 = vadd.f32 %v778_v11, %v666_v8  ;;  %v1068_v14 = vadd.f32 %v1006_v12, %v972_v10  ;;  %v891_v15 = vpop.f32.mrf.mxu3 }
 0x174   : > { %1101 = vst.msk [vmem:[%s2797_s3 + $0x8] sm:$0xff] %vm1099_vm1, %v1068_v14  ;;  %v892_v16 = vadd.f32 %v891_v15, %v779_v13 }
 0x175   : > { %v555_v17 = vpop.f32.mrf.mxu0 }
 0x176   : > { %955 = vst [vmem:[%s1535_s26 + $0x80] sm:$0xff] %v892_v16  ;;  %1035 = vadd.xlane.f32.xlu1 %v892_v16  ;;  %v668_v18 = vpop.f32.mrf.mxu1  ;;  %v1180_v19 = vmul.f32 %v892_v16, %v892_v16  ;;  %v977_v16 = vld [vmem:[%s2797_s3 + $0x30] sm:$0xff] }
 0x177   : > { %v669_v20 = vadd.f32 %v668_v18, %v555_v17 }
 0x178   : > { %1228 = vadd.xlane.f32.xlu0 %v1180_v19  ;;  %v1138_v19 = vld [vmem:[%s2798_s4 + $0x30] sm:$0xff] }
 0x179   : > { %v781_v23 = vpop.f32.mrf.mxu2  ;;  %v1199_v24 = vpop.xlane.xlu0 %1198 }
 0x17a   : > { %v782_v25 = vadd.f32 %v781_v23, %v669_v20  ;;  %v1261_v26 = vadd.f32 %v1199_v24, %v1133_v21  ;;  %v1008_v27 = vpop.xlane.xlu1 %1007  ;;  %v894_v28 = vpop.f32.mrf.mxu3 }
 0x17b   : > { %v1069_v29 = vadd.f32 %v1008_v27, %v973_v22 }
 0x17c   : > { %1293 = vst.msk [vmem:[%s2798_s4 + $0x8] sm:$0xff] %vm1099_vm1, %v1261_v26  ;;  %v895_v30 = vadd.f32 %v894_v28, %v782_v25 }
 0x17d   : > { %1102 = vst.msk [vmem:[%s2797_s3 + $0x10] sm:$0xff] %vm1099_vm1, %v1069_v29  ;;  %v558_v31 = vpop.f32.mrf.mxu0 }
 0x17e   : > { %956 = vst [vmem:[%s1535_s26 + $0x88] sm:$0xff] %v895_v30  ;;  %1037 = vadd.xlane.f32.xlu2 %v895_v30  ;;  %v671_v32 = vpop.f32.mrf.mxu1  ;;  %v1181_v33 = vmul.f32 %v895_v30, %v895_v30  ;;  %v978_v30 = vld [vmem:[%s2797_s3 + $0x38] sm:$0xff] }
 0x17f   : > { %v672_v34 = vadd.f32 %v671_v32, %v558_v31 }
 0x180   : > { %1230 = vadd.xlane.f32.xlu1 %v1181_v33  ;;  %v1139_v33 = vld [vmem:[%s2798_s4 + $0x38] sm:$0xff] }
 0x181   : > { %v784_v36 = vpop.f32.mrf.mxu2 }
 0x182   : > { %v785_v38 = vadd.f32 %v784_v36, %v672_v34  ;;  %v1201_v39 = vpop.xlane.xlu1 %1200  ;;  %v897_v40 = vpop.f32.mrf.mxu3 }
 0x183   : > { %v1262_v41 = vadd.f32 %v1201_v39, %v1134_v35  ;;  %v1203_v42 = vpop.xlane.xlu2 %1202 }
 0x184   : > { %v898_v43 = vadd.f32 %v897_v40, %v785_v38  ;;  %v1263_v44 = vadd.f32 %v1203_v42, %v1135_v37 }
 0x185   : > { %1294 = vst.msk [vmem:[%s2798_s4 + $0x10] sm:$0xff] %vm1099_vm1, %v1262_v41  ;;  %v561_v45 = vpop.f32.mrf.mxu0 }
 0x186   : > { %957 = vst [vmem:[%s1535_s26 + $0x90] sm:$0xff] %v898_v43  ;;  %1039 = vadd.xlane.f32.xlu0 %v898_v43  ;;  %v674_v46 = vpop.f32.mrf.mxu1  ;;  %v1182_v47 = vmul.f32 %v898_v43, %v898_v43 }
 0x187   : > { %1295 = vst.msk [vmem:[%s2798_s4 + $0x18] sm:$0xff] %vm1099_vm1, %v1263_v44  ;;  %v675_v48 = vadd.f32 %v674_v46, %v561_v45  ;;  %v979_v44 = vld [vmem:[%s2797_s3 + $0x40] sm:$0xff] }
 0x188   : > { %1232 = vadd.xlane.f32.xlu2 %v1182_v47  ;;  %v1140_v47 = vld [vmem:[%s2798_s4 + $0x40] sm:$0xff] }
 0x189   : > { %v787_v50 = vpop.f32.mrf.mxu2 }
 0x18a   : > { %v788_v53 = vadd.f32 %v787_v50, %v675_v48  ;;  %v1010_v54 = vpop.xlane.xlu1 %1009  ;;  %v900_v55 = vpop.f32.mrf.mxu3 }
 0x18b   : > { %v1070_v56 = vadd.f32 %v1010_v54, %v974_v49  ;;  %v1012_v57 = vpop.xlane.xlu2 %1011  ;;  %v1205_v58 = vpop.xlane.xlu0 %1204 }
 0x18c   : > { %v901_v59 = vadd.f32 %v900_v55, %v788_v53  ;;  %v1071_v60 = vadd.f32 %v1012_v57, %v975_v51  ;;  %v1264_v61 = vadd.f32 %v1205_v58, %v1136_v52  ;;  %v980_v58 = vld [vmem:[%s2797_s3 + $0x48] sm:$0xff] }
 0x18d   : > { %1103 = vst.msk [vmem:[%s2797_s3 + $0x18] sm:$0xff] %vm1099_vm1, %v1070_v56  ;;  %v564_v62 = vpop.f32.mrf.mxu0 }
 0x18e   : > { %958 = vst [vmem:[%s1535_s26 + $0x98] sm:$0xff] %v901_v59  ;;  %1041 = vadd.xlane.f32.xlu1 %v901_v59  ;;  %v677_v63 = vpop.f32.mrf.mxu1  ;;  %v1183_v0 = vmul.f32 %v901_v59, %v901_v59 }
 0x18f   : > { %1104 = vst.msk [vmem:[%s2797_s3 + $0x20] sm:$0xff] %vm1099_vm1, %v1071_v60  ;;  %v678_v1 = vadd.f32 %v677_v63, %v564_v62 }
 0x190   : > { %1296 = vst.msk [vmem:[%s2798_s4 + $0x20] sm:$0xff] %vm1099_vm1, %v1264_v61  ;;  %1234 = vadd.xlane.f32.xlu0 %v1183_v0  ;;  %v1141_v61 = vld [vmem:[%s2798_s4 + $0x48] sm:$0xff] }
 0x191   : > { %v790_v2 = vpop.f32.mrf.mxu2 }
 0x192   : > { %v791_v5 = vadd.f32 %v790_v2, %v678_v1  ;;  %v903_v6 = vpop.f32.mrf.mxu3 }
 0x193   : > { %v1014_v7 = vpop.xlane.xlu2 %1013  ;;  %v1207_v8 = vpop.xlane.xlu1 %1206 }
 0x194   : > { %v904_v9 = vadd.f32 %v903_v6, %v791_v5  ;;  %v1072_v10 = vadd.f32 %v1014_v7, %v976_v3  ;;  %v1265_v11 = vadd.f32 %v1207_v8, %v1137_v4  ;;  %v981_v8 = vld [vmem:[%s2797_s3 + $0x50] sm:$0xff] }
 0x196   : > { %959 = vst [vmem:[%s1535_s26 + $0xa0] sm:$0xff] %v904_v9  ;;  %1043 = vadd.xlane.f32.xlu2 %v904_v9  ;;  %v567_v12 = vpop.f32.mrf.mxu0  ;;  %v680_v13 = vpop.f32.mrf.mxu1  ;;  %v1184_v14 = vmul.f32 %v904_v9, %v904_v9 }
 0x197   : > { %1105 = vst.msk [vmem:[%s2797_s3 + $0x28] sm:$0xff] %vm1099_vm1, %v1072_v10  ;;  %v681_v15 = vadd.f32 %v680_v13, %v567_v12 }
 0x198   : > { %1297 = vst.msk [vmem:[%s2798_s4 + $0x28] sm:$0xff] %vm1099_vm1, %v1265_v11  ;;  %1236 = vadd.xlane.f32.xlu1 %v1184_v14  ;;  %v1142_v11 = vld [vmem:[%s2798_s4 + $0x50] sm:$0xff] }
 0x199   : > { %v793_v17 = vpop.f32.mrf.mxu2  ;;  %v1016_v18 = vpop.xlane.xlu0 %1015 }
 0x19a   : > { %v794_v20 = vadd.f32 %v793_v17, %v681_v15  ;;  %v1073_v21 = vadd.f32 %v1016_v18, %v977_v16  ;;  %v906_v22 = vpop.f32.mrf.mxu3 }
 0x19b   : > { %v1209_v23 = vpop.xlane.xlu2 %1208 }
 0x19c   : > { %1106 = vst.msk [vmem:[%s2797_s3 + $0x30] sm:$0xff] %vm1099_vm1, %v1073_v21  ;;  %v907_v24 = vadd.f32 %v906_v22, %v794_v20  ;;  %v1266_v25 = vadd.f32 %v1209_v23, %v1138_v19  ;;  %v982_v22 = vld [vmem:[%s2797_s3 + $0x58] sm:$0xff] }
 0x19e   : > { %960 = vst [vmem:[%s1535_s26 + $0xa8] sm:$0xff] %v907_v24  ;;  %1045 = vadd.xlane.f32.xlu0 %v907_v24  ;;  %v570_v26 = vpop.f32.mrf.mxu0  ;;  %v683_v27 = vpop.f32.mrf.mxu1  ;;  %v1185_v28 = vmul.f32 %v907_v24, %v907_v24 }
 0x19f   : > { %1298 = vst.msk [vmem:[%s2798_s4 + $0x30] sm:$0xff] %vm1099_vm1, %v1266_v25  ;;  %v684_v29 = vadd.f32 %v683_v27, %v570_v26  ;;  %v1143_v25 = vld [vmem:[%s2798_s4 + $0x58] sm:$0xff] }
 0x1a0   : > { %1238 = vadd.xlane.f32.xlu2 %v1185_v28 }
 0x1a1   : > { %v796_v31 = vpop.f32.mrf.mxu2  ;;  %v1018_v32 = vpop.xlane.xlu1 %1017 }
 0x1a2   : > { %v797_v34 = vadd.f32 %v796_v31, %v684_v29  ;;  %v1074_v35 = vadd.f32 %v1018_v32, %v978_v30  ;;  %v909_v36 = vpop.f32.mrf.mxu3 }
 0x1a3   : > { %v1211_v37 = vpop.xlane.xlu0 %1210 }
 0x1a4   : > { %1107 = vst.msk [vmem:[%s2797_s3 + $0x38] sm:$0xff] %vm1099_vm1, %v1074_v35  ;;  %v910_v38 = vadd.f32 %v909_v36, %v797_v34  ;;  %v1267_v39 = vadd.f32 %v1211_v37, %v1139_v33  ;;  %v983_v36 = vld [vmem:[%s2797_s3 + $0x60] sm:$0xff] }
 0x1a6   : > { %961 = vst [vmem:[%s1535_s26 + $0xb0] sm:$0xff] %v910_v38  ;;  %1047 = vadd.xlane.f32.xlu1 %v910_v38  ;;  %v573_v40 = vpop.f32.mrf.mxu0  ;;  %v686_v41 = vpop.f32.mrf.mxu1  ;;  %v1186_v42 = vmul.f32 %v910_v38, %v910_v38 }
 0x1a7   : > { %1299 = vst.msk [vmem:[%s2798_s4 + $0x38] sm:$0xff] %vm1099_vm1, %v1267_v39  ;;  %v687_v43 = vadd.f32 %v686_v41, %v573_v40  ;;  %v1144_v39 = vld [vmem:[%s2798_s4 + $0x60] sm:$0xff] }
 0x1a8   : > { %1240 = vadd.xlane.f32.xlu0 %v1186_v42 }
 0x1a9   : > { %v799_v45 = vpop.f32.mrf.mxu2  ;;  %v1020_v46 = vpop.xlane.xlu2 %1019 }
 0x1aa   : > { %v800_v48 = vadd.f32 %v799_v45, %v687_v43  ;;  %v1075_v49 = vadd.f32 %v1020_v46, %v979_v44  ;;  %v912_v50 = vpop.f32.mrf.mxu3 }
 0x1ab   : > { %v1213_v51 = vpop.xlane.xlu1 %1212 }
 0x1ac   : > { %1108 = vst.msk [vmem:[%s2797_s3 + $0x40] sm:$0xff] %vm1099_vm1, %v1075_v49  ;;  %v913_v52 = vadd.f32 %v912_v50, %v800_v48  ;;  %v1268_v53 = vadd.f32 %v1213_v51, %v1140_v47  ;;  %v984_v50 = vld [vmem:[%s2797_s3 + $0x68] sm:$0xff] }
 0x1ae   : > { %962 = vst [vmem:[%s1535_s26 + $0xb8] sm:$0xff] %v913_v52  ;;  %1049 = vadd.xlane.f32.xlu2 %v913_v52  ;;  %v576_v54 = vpop.f32.mrf.mxu0  ;;  %v689_v55 = vpop.f32.mrf.mxu1  ;;  %v1187_v56 = vmul.f32 %v913_v52, %v913_v52 }
 0x1af   : > { %1300 = vst.msk [vmem:[%s2798_s4 + $0x40] sm:$0xff] %vm1099_vm1, %v1268_v53  ;;  %v690_v57 = vadd.f32 %v689_v55, %v576_v54  ;;  %v1145_v53 = vld [vmem:[%s2798_s4 + $0x68] sm:$0xff] }
 0x1b0   : > { %1242 = vadd.xlane.f32.xlu1 %v1187_v56 }
 0x1b1   : > { %v802_v59 = vpop.f32.mrf.mxu2  ;;  %v1022_v60 = vpop.xlane.xlu0 %1021 }
 0x1b2   : > { %v803_v62 = vadd.f32 %v802_v59, %v690_v57  ;;  %v1076_v63 = vadd.f32 %v1022_v60, %v980_v58  ;;  %v915_v0 = vpop.f32.mrf.mxu3 }
 0x1b3   : > { %v1215_v1 = vpop.xlane.xlu2 %1214 }
 0x1b4   : > { %1109 = vst.msk [vmem:[%s2797_s3 + $0x48] sm:$0xff] %vm1099_vm1, %v1076_v63  ;;  %v916_v2 = vadd.f32 %v915_v0, %v803_v62  ;;  %v1269_v3 = vadd.f32 %v1215_v1, %v1141_v61  ;;  %v985_v0 = vld [vmem:[%s2797_s3 + $0x70] sm:$0xff] }
 0x1b6   : > { %963 = vst [vmem:[%s1535_s26 + $0xc0] sm:$0xff] %v916_v2  ;;  %1051 = vadd.xlane.f32.xlu0 %v916_v2  ;;  %v579_v4 = vpop.f32.mrf.mxu0  ;;  %v692_v5 = vpop.f32.mrf.mxu1  ;;  %v1188_v6 = vmul.f32 %v916_v2, %v916_v2 }
 0x1b7   : > { %1301 = vst.msk [vmem:[%s2798_s4 + $0x48] sm:$0xff] %vm1099_vm1, %v1269_v3  ;;  %v693_v7 = vadd.f32 %v692_v5, %v579_v4  ;;  %v1146_v3 = vld [vmem:[%s2798_s4 + $0x70] sm:$0xff] }
 0x1b8   : > { %1244 = vadd.xlane.f32.xlu2 %v1188_v6 }
 0x1b9   : > { %v805_v9 = vpop.f32.mrf.mxu2  ;;  %v1024_v10 = vpop.xlane.xlu1 %1023 }
 0x1ba   : > { %v806_v12 = vadd.f32 %v805_v9, %v693_v7  ;;  %v1077_v13 = vadd.f32 %v1024_v10, %v981_v8  ;;  %v918_v14 = vpop.f32.mrf.mxu3 }
 0x1bb   : > { %v1217_v15 = vpop.xlane.xlu0 %1216 }
 0x1bc   : > { %1110 = vst.msk [vmem:[%s2797_s3 + $0x50] sm:$0xff] %vm1099_vm1, %v1077_v13  ;;  %v919_v16 = vadd.f32 %v918_v14, %v806_v12  ;;  %v1270_v17 = vadd.f32 %v1217_v15, %v1142_v11  ;;  %v986_v13 = vld [vmem:[%s2797_s3 + $0x78] sm:$0xff] }
 0x1be   : > { %964 = vst [vmem:[%s1535_s26 + $0xc8] sm:$0xff] %v919_v16  ;;  %1053 = vadd.xlane.f32.xlu1 %v919_v16  ;;  %v582_v18 = vpop.f32.mrf.mxu0  ;;  %v695_v19 = vpop.f32.mrf.mxu1  ;;  %v1189_v20 = vmul.f32 %v919_v16, %v919_v16  ;;  %v1147_v16 = vld [vmem:[%s2798_s4 + $0x78] sm:$0xff] }
 0x1bf   : > { %1302 = vst.msk [vmem:[%s2798_s4 + $0x50] sm:$0xff] %vm1099_vm1, %v1270_v17  ;;  %v696_v21 = vadd.f32 %v695_v19, %v582_v18 }
 0x1c0   : > { %1246 = vadd.xlane.f32.xlu0 %v1189_v20 }
 0x1c1   : > { %v808_v23 = vpop.f32.mrf.mxu2  ;;  %v1026_v24 = vpop.xlane.xlu2 %1025 }
 0x1c2   : > { %v809_v26 = vadd.f32 %v808_v23, %v696_v21  ;;  %v1078_v27 = vadd.f32 %v1026_v24, %v982_v22  ;;  %v921_v28 = vpop.f32.mrf.mxu3 }
 0x1c3   : > { %v1219_v29 = vpop.xlane.xlu1 %1218 }
 0x1c4   : > { %1111 = vst.msk [vmem:[%s2797_s3 + $0x58] sm:$0xff] %vm1099_vm1, %v1078_v27  ;;  %v922_v30 = vadd.f32 %v921_v28, %v809_v26  ;;  %v1271_v31 = vadd.f32 %v1219_v29, %v1143_v25  ;;  %v987_v27 = vld [vmem:[%s2797_s3 + $0x80] sm:$0xff] }
 0x1c6   : > { %965 = vst [vmem:[%s1535_s26 + $0xd0] sm:$0xff] %v922_v30  ;;  %1055 = vadd.xlane.f32.xlu2 %v922_v30  ;;  %v585_v32 = vpop.f32.mrf.mxu0  ;;  %v698_v33 = vpop.f32.mrf.mxu1  ;;  %v1190_v34 = vmul.f32 %v922_v30, %v922_v30  ;;  %v1148_v30 = vld [vmem:[%s2798_s4 + $0x80] sm:$0xff] }
 0x1c7   : > { %1303 = vst.msk [vmem:[%s2798_s4 + $0x58] sm:$0xff] %vm1099_vm1, %v1271_v31  ;;  %v699_v35 = vadd.f32 %v698_v33, %v585_v32 }
 0x1c8   : > { %1248 = vadd.xlane.f32.xlu1 %v1190_v34 }
 0x1c9   : > { %v811_v37 = vpop.f32.mrf.mxu2  ;;  %v1028_v38 = vpop.xlane.xlu0 %1027 }
 0x1ca   : > { %v812_v40 = vadd.f32 %v811_v37, %v699_v35  ;;  %v1079_v41 = vadd.f32 %v1028_v38, %v983_v36  ;;  %v924_v42 = vpop.f32.mrf.mxu3  ;;  %v988_v38 = vld [vmem:[%s2797_s3 + $0x88] sm:$0xff] }
 0x1cb   : > { %v1221_v43 = vpop.xlane.xlu2 %1220 }
 0x1cc   : > { %1112 = vst.msk [vmem:[%s2797_s3 + $0x60] sm:$0xff] %vm1099_vm1, %v1079_v41  ;;  %v925_v44 = vadd.f32 %v924_v42, %v812_v40  ;;  %v1272_v45 = vadd.f32 %v1221_v43, %v1144_v39  ;;  %v1149_v40 = vld [vmem:[%s2798_s4 + $0x88] sm:$0xff] }
 0x1ce   : > { %966 = vst [vmem:[%s1535_s26 + $0xd8] sm:$0xff] %v925_v44  ;;  %1057 = vadd.xlane.f32.xlu0 %v925_v44  ;;  %v588_v46 = vpop.f32.mrf.mxu0  ;;  %v701_v47 = vpop.f32.mrf.mxu1  ;;  %v1191_v48 = vmul.f32 %v925_v44, %v925_v44 }
 0x1cf   : > { %1304 = vst.msk [vmem:[%s2798_s4 + $0x60] sm:$0xff] %vm1099_vm1, %v1272_v45  ;;  %v702_v49 = vadd.f32 %v701_v47, %v588_v46  ;;  %v989_v45 = vld [vmem:[%s2797_s3 + $0x90] sm:$0xff] }
 0x1d0   : > { %1250 = vadd.xlane.f32.xlu2 %v1191_v48  ;;  %v1150_v47 = vld [vmem:[%s2798_s4 + $0x90] sm:$0xff] }
 0x1d1   : > { %v814_v51 = vpop.f32.mrf.mxu2  ;;  %v1030_v52 = vpop.xlane.xlu1 %1029 }
 0x1d2   : > { %v815_v54 = vadd.f32 %v814_v51, %v702_v49  ;;  %v1080_v55 = vadd.f32 %v1030_v52, %v984_v50  ;;  %v927_v56 = vpop.f32.mrf.mxu3  ;;  %v990_v51 = vld [vmem:[%s2797_s3 + $0x98] sm:$0xff] }
 0x1d3   : > { %v1223_v57 = vpop.xlane.xlu0 %1222 }
 0x1d4   : > { %1113 = vst.msk [vmem:[%s2797_s3 + $0x68] sm:$0xff] %vm1099_vm1, %v1080_v55  ;;  %v928_v58 = vadd.f32 %v927_v56, %v815_v54  ;;  %v1273_v59 = vadd.f32 %v1223_v57, %v1145_v53  ;;  %v1151_v53 = vld [vmem:[%s2798_s4 + $0x98] sm:$0xff]  ;;  %v991_v57 = vld [vmem:[%s2797_s3 + $0xa0] sm:$0xff] }
 0x1d6   : > { %967 = vst [vmem:[%s1535_s26 + $0xe0] sm:$0xff] %v928_v58  ;;  %1059 = vadd.xlane.f32.xlu1 %v928_v58  ;;  %v591_v60 = vpop.f32.mrf.mxu0  ;;  %v704_v61 = vpop.f32.mrf.mxu1  ;;  %v1192_v62 = vmul.f32 %v928_v58, %v928_v58 }
 0x1d7   : > { %1305 = vst.msk [vmem:[%s2798_s4 + $0x68] sm:$0xff] %vm1099_vm1, %v1273_v59  ;;  %v705_v63 = vadd.f32 %v704_v61, %v591_v60  ;;  %v1152_v59 = vld [vmem:[%s2798_s4 + $0xa0] sm:$0xff] }
 0x1d8   : > { %1252 = vadd.xlane.f32.xlu0 %v1192_v62 }
 0x1d9   : > { %v817_v1 = vpop.f32.mrf.mxu2  ;;  %v1032_v2 = vpop.xlane.xlu2 %1031 }
 0x1da   : > { %v818_v4 = vadd.f32 %v817_v1, %v705_v63  ;;  %v1081_v5 = vadd.f32 %v1032_v2, %v985_v0  ;;  %v930_v6 = vpop.f32.mrf.mxu3  ;;  %v992_v63 = vld [vmem:[%s2797_s3 + $0xa8] sm:$0xff] }
 0x1db   : > { %v1225_v7 = vpop.xlane.xlu1 %1224  ;;  %v1153_v1 = vld [vmem:[%s2798_s4 + $0xa8] sm:$0xff] }
 0x1dc   : > { %1114 = vst.msk [vmem:[%s2797_s3 + $0x70] sm:$0xff] %vm1099_vm1, %v1081_v5  ;;  %v931_v8 = vadd.f32 %v930_v6, %v818_v4  ;;  %v1274_v9 = vadd.f32 %v1225_v7, %v1146_v3  ;;  %v993_v5 = vld [vmem:[%s2797_s3 + $0xb0] sm:$0xff] }
 0x1dd   : > { %v1154_v7 = vld [vmem:[%s2798_s4 + $0xb0] sm:$0xff] }
 0x1de   : > { %968 = vst [vmem:[%s1535_s26 + $0xe8] sm:$0xff] %v931_v8  ;;  %1061 = vadd.xlane.f32.xlu2 %v931_v8  ;;  %v594_v10 = vpop.f32.mrf.mxu0  ;;  %v707_v11 = vpop.f32.mrf.mxu1  ;;  %v1193_v44 = vmul.f32 %v931_v8, %v931_v8 }
 0x1df   : > { %1306 = vst.msk [vmem:[%s2798_s4 + $0x70] sm:$0xff] %vm1099_vm1, %v1274_v9  ;;  %v708_v12 = vadd.f32 %v707_v11, %v594_v10  ;;  %v994_v11 = vld [vmem:[%s2797_s3 + $0xb8] sm:$0xff] }
 0x1e1   : > { %v820_v14 = vpop.f32.mrf.mxu2  ;;  %v1034_v15 = vpop.xlane.xlu0 %1033 }
 0x1e2   : > { %v821_v17 = vadd.f32 %v820_v14, %v708_v12  ;;  %v1082_v18 = vadd.f32 %v1034_v15, %v986_v13  ;;  %v933_v19 = vpop.f32.mrf.mxu3  ;;  %v1155_v13 = vld [vmem:[%s2798_s4 + $0xb8] sm:$0xff] }
 0x1e3   : > { %v1227_v20 = vpop.xlane.xlu2 %1226 }
 0x1e4   : > { %1115 = vst.msk [vmem:[%s2797_s3 + $0x78] sm:$0xff] %vm1099_vm1, %v1082_v18  ;;  %v934_v21 = vadd.f32 %v933_v19, %v821_v17  ;;  %v1275_v22 = vadd.f32 %v1227_v20, %v1147_v16  ;;  %v995_v17 = vld [vmem:[%s2797_s3 + $0xc0] sm:$0xff] }
 0x1e5   : > { %v1156_v19 = vld [vmem:[%s2798_s4 + $0xc0] sm:$0xff] }
 0x1e6   : > { %969 = vst [vmem:[%s1535_s26 + $0xf0] sm:$0xff] %v934_v21  ;;  %1063 = vadd.xlane.f32.xlu0 %v934_v21  ;;  %v597_v23 = vpop.f32.mrf.mxu0  ;;  %v710_v24 = vpop.f32.mrf.mxu1  ;;  %v1194_v25 = vmul.f32 %v934_v21, %v934_v21 }
 0x1e7   : > { %1307 = vst.msk [vmem:[%s2798_s4 + $0x78] sm:$0xff] %vm1099_vm1, %v1275_v22  ;;  %v711_v26 = vadd.f32 %v710_v24, %v597_v23  ;;  %v996_v23 = vld [vmem:[%s2797_s3 + $0xc8] sm:$0xff] }
 0x1e8   : > { %1256 = vadd.xlane.f32.xlu2 %v1194_v25  ;;  %v1157_v25 = vld [vmem:[%s2798_s4 + $0xc8] sm:$0xff] }
 0x1e9   : > { %v823_v28 = vpop.f32.mrf.mxu2  ;;  %v1036_v29 = vpop.xlane.xlu1 %1035 }
 0x1ea   : > { %v824_v31 = vadd.f32 %v823_v28, %v711_v26  ;;  %v1083_v32 = vadd.f32 %v1036_v29, %v987_v27  ;;  %v936_v33 = vpop.f32.mrf.mxu3  ;;  %v997_v29 = vld [vmem:[%s2797_s3 + $0xd0] sm:$0xff] }
 0x1eb   : > { %v1229_v34 = vpop.xlane.xlu0 %1228 }
 0x1ec   : > { %1116 = vst.msk [vmem:[%s2797_s3 + $0x80] sm:$0xff] %vm1099_vm1, %v1083_v32  ;;  %v937_v35 = vadd.f32 %v936_v33, %v824_v31  ;;  %v1276_v36 = vadd.f32 %v1229_v34, %v1148_v30  ;;  %v1158_v31 = vld [vmem:[%s2798_s4 + $0xd0] sm:$0xff] }
 0x1ee   : > { %970 = vst [vmem:[%s1535_s26 + $0xf8] sm:$0xff] %v937_v35  ;;  %1065 = vadd.xlane.f32.xlu1 %v937_v35  ;;  %v1195_v37 = vmul.f32 %v937_v35, %v937_v35  ;;  %v998_v35 = vld [vmem:[%s2797_s3 + $0xd8] sm:$0xff] }
 0x1ef   : > { %1308 = vst.msk [vmem:[%s2798_s4 + $0x80] sm:$0xff] %vm1099_vm1, %v1276_v36 }
 0x1f0   : > { %1258 = vadd.xlane.f32.xlu0 %v1195_v37  ;;  %v1159_v37 = vld [vmem:[%s2798_s4 + $0xd8] sm:$0xff] }
 0x1f1   : > { %v1038_v39 = vpop.xlane.xlu2 %1037 }
 0x1f2   : > { %v1084_v41 = vadd.f32 %v1038_v39, %v988_v38 }
 0x1f3   : > { %v1231_v42 = vpop.xlane.xlu1 %1230 }
 0x1f4   : > { %1117 = vst.msk [vmem:[%s2797_s3 + $0x88] sm:$0xff] %vm1099_vm1, %v1084_v41  ;;  %v1277_v43 = vadd.f32 %v1231_v42, %v1149_v40  ;;  %v999_v41 = vld [vmem:[%s2797_s3 + $0xe0] sm:$0xff] }
 0x1f6   : > { %1309 = vst.msk [vmem:[%s2798_s4 + $0x88] sm:$0xff] %vm1099_vm1, %v1277_v43  ;;  %1254 = vadd.xlane.f32.xlu1 %v1193_v44  ;;  %v1160_v43 = vld [vmem:[%s2798_s4 + $0xe0] sm:$0xff] }
 0x1f9   : > { %v1040_v46 = vpop.xlane.xlu0 %1039 }
 0x1fa   : > { %v1085_v48 = vadd.f32 %v1040_v46, %v989_v45 }
 0x1fb   : > { %v1233_v49 = vpop.xlane.xlu2 %1232 }
 0x1fc   : > { %1118 = vst.msk [vmem:[%s2797_s3 + $0x90] sm:$0xff] %vm1099_vm1, %v1085_v48  ;;  %v1278_v50 = vadd.f32 %v1233_v49, %v1150_v47  ;;  %v1000_v47 = vld [vmem:[%s2797_s3 + $0xe8] sm:$0xff] }
 0x1fe   : > { %1310 = vst.msk [vmem:[%s2798_s4 + $0x90] sm:$0xff] %vm1099_vm1, %v1278_v50  ;;  %v1001_v50 = vld [vmem:[%s2797_s3 + $0xf0] sm:$0xff] }
 0x201   : > { %v1042_v52 = vpop.xlane.xlu1 %1041 }
 0x202   : > { %v1086_v54 = vadd.f32 %v1042_v52, %v990_v51  ;;  %v1162_v52 = vld [vmem:[%s2798_s4 + $0xf0] sm:$0xff] }
 0x203   : > { %v1235_v55 = vpop.xlane.xlu0 %1234 }
 0x204   : > { %1119 = vst.msk [vmem:[%s2797_s3 + $0x98] sm:$0xff] %vm1099_vm1, %v1086_v54  ;;  %v1279_v56 = vadd.f32 %v1235_v55, %v1151_v53 }
 0x206   : > { %1311 = vst.msk [vmem:[%s2798_s4 + $0x98] sm:$0xff] %vm1099_vm1, %v1279_v56  ;;  %v1002_v56 = vld [vmem:[%s2797_s3 + $0xf8] sm:$0xff] }
 0x209   : > { %v1044_v58 = vpop.xlane.xlu2 %1043 }
 0x20a   : > { %v1087_v60 = vadd.f32 %v1044_v58, %v991_v57  ;;  %v1163_v58 = vld [vmem:[%s2798_s4 + $0xf8] sm:$0xff] }
 0x20b   : > { %v1237_v61 = vpop.xlane.xlu1 %1236 }
 0x20c   : > { %1120 = vst.msk [vmem:[%s2797_s3 + $0xa0] sm:$0xff] %vm1099_vm1, %v1087_v60  ;;  %v1280_v62 = vadd.f32 %v1237_v61, %v1152_v59 }
 0x20e   : > { %1312 = vst.msk [vmem:[%s2798_s4 + $0xa0] sm:$0xff] %vm1099_vm1, %v1280_v62  ;;  %v1161_v62 = vld [vmem:[%s2798_s4 + $0xe8] sm:$0xff] }
 0x211   : > { %v1046_v0 = vpop.xlane.xlu0 %1045 }
 0x212   : > { %v1088_v2 = vadd.f32 %v1046_v0, %v992_v63 }
 0x213   : > { %v1239_v3 = vpop.xlane.xlu2 %1238 }
 0x214   : > { %1121 = vst.msk [vmem:[%s2797_s3 + $0xa8] sm:$0xff] %vm1099_vm1, %v1088_v2  ;;  %v1281_v4 = vadd.f32 %v1239_v3, %v1153_v1 }
 0x216   : > { %1313 = vst.msk [vmem:[%s2798_s4 + $0xa8] sm:$0xff] %vm1099_vm1, %v1281_v4 }
 0x219   : > { %v1048_v6 = vpop.xlane.xlu1 %1047 }
 0x21a   : > { %v1089_v8 = vadd.f32 %v1048_v6, %v993_v5 }
 0x21b   : > { %v1241_v9 = vpop.xlane.xlu0 %1240 }
 0x21c   : > { %1122 = vst.msk [vmem:[%s2797_s3 + $0xb0] sm:$0xff] %vm1099_vm1, %v1089_v8  ;;  %v1282_v10 = vadd.f32 %v1241_v9, %v1154_v7 }
 0x21e   : > { %1314 = vst.msk [vmem:[%s2798_s4 + $0xb0] sm:$0xff] %vm1099_vm1, %v1282_v10 }
 0x221   : > { %v1050_v12 = vpop.xlane.xlu2 %1049 }
 0x222   : > { %v1090_v14 = vadd.f32 %v1050_v12, %v994_v11 }
 0x223   : > { %v1243_v15 = vpop.xlane.xlu1 %1242 }
 0x224   : > { %1123 = vst.msk [vmem:[%s2797_s3 + $0xb8] sm:$0xff] %vm1099_vm1, %v1090_v14  ;;  %v1283_v16 = vadd.f32 %v1243_v15, %v1155_v13 }
 0x226   : > { %1315 = vst.msk [vmem:[%s2798_s4 + $0xb8] sm:$0xff] %vm1099_vm1, %v1283_v16 }
 0x229   : > { %v1052_v18 = vpop.xlane.xlu0 %1051 }
 0x22a   : > { %v1091_v20 = vadd.f32 %v1052_v18, %v995_v17 }
 0x22b   : > { %v1245_v21 = vpop.xlane.xlu2 %1244 }
 0x22c   : > { %1124 = vst.msk [vmem:[%s2797_s3 + $0xc0] sm:$0xff] %vm1099_vm1, %v1091_v20  ;;  %v1284_v22 = vadd.f32 %v1245_v21, %v1156_v19 }
 0x22e   : > { %1316 = vst.msk [vmem:[%s2798_s4 + $0xc0] sm:$0xff] %vm1099_vm1, %v1284_v22 }
 0x231   : > { %v1054_v24 = vpop.xlane.xlu1 %1053 }
 0x232   : > { %v1092_v26 = vadd.f32 %v1054_v24, %v996_v23 }
 0x233   : > { %v1247_v27 = vpop.xlane.xlu0 %1246 }
 0x234   : > { %1125 = vst.msk [vmem:[%s2797_s3 + $0xc8] sm:$0xff] %vm1099_vm1, %v1092_v26  ;;  %v1285_v28 = vadd.f32 %v1247_v27, %v1157_v25 }
 0x236   : > { %1317 = vst.msk [vmem:[%s2798_s4 + $0xc8] sm:$0xff] %vm1099_vm1, %v1285_v28 }
 0x239   : > { %v1056_v30 = vpop.xlane.xlu2 %1055 }
 0x23a   : > { %v1093_v32 = vadd.f32 %v1056_v30, %v997_v29 }
 0x23b   : > { %v1249_v33 = vpop.xlane.xlu1 %1248 }
 0x23c   : > { %1126 = vst.msk [vmem:[%s2797_s3 + $0xd0] sm:$0xff] %vm1099_vm1, %v1093_v32  ;;  %v1286_v34 = vadd.f32 %v1249_v33, %v1158_v31 }
 0x23e   : > { %1318 = vst.msk [vmem:[%s2798_s4 + $0xd0] sm:$0xff] %vm1099_vm1, %v1286_v34 }
 0x241   : > { %v1058_v36 = vpop.xlane.xlu0 %1057 }
 0x242   : > { %v1094_v38 = vadd.f32 %v1058_v36, %v998_v35 }
 0x243   : > { %v1251_v39 = vpop.xlane.xlu2 %1250 }
 0x244   : > { %1127 = vst.msk [vmem:[%s2797_s3 + $0xd8] sm:$0xff] %vm1099_vm1, %v1094_v38  ;;  %v1287_v40 = vadd.f32 %v1251_v39, %v1159_v37 }
 0x246   : > { %1319 = vst.msk [vmem:[%s2798_s4 + $0xd8] sm:$0xff] %vm1099_vm1, %v1287_v40 }
 0x249   : > { %v1060_v42 = vpop.xlane.xlu1 %1059 }
 0x24a   : > { %v1095_v44 = vadd.f32 %v1060_v42, %v999_v41 }
 0x24b   : > { %v1253_v45 = vpop.xlane.xlu0 %1252 }
 0x24c   : > { %1128 = vst.msk [vmem:[%s2797_s3 + $0xe0] sm:$0xff] %vm1099_vm1, %v1095_v44  ;;  %v1288_v46 = vadd.f32 %v1253_v45, %v1160_v43 }
 0x24e   : > { %1320 = vst.msk [vmem:[%s2798_s4 + $0xe0] sm:$0xff] %vm1099_vm1, %v1288_v46 }
 0x251   : > { %v1062_v48 = vpop.xlane.xlu2 %1061 }
 0x252   : > { %v1096_v49 = vadd.f32 %v1062_v48, %v1000_v47 }
 0x254   : > { %1129 = vst.msk [vmem:[%s2797_s3 + $0xe8] sm:$0xff] %vm1099_vm1, %v1096_v49 }
 0x259   : > { %v1064_v51 = vpop.xlane.xlu0 %1063 }
 0x25a   : > { %v1097_v53 = vadd.f32 %v1064_v51, %v1001_v50 }
 0x25b   : > { %v1257_v54 = vpop.xlane.xlu2 %1256 }
 0x25c   : > { %1130 = vst.msk [vmem:[%s2797_s3 + $0xf0] sm:$0xff] %vm1099_vm1, %v1097_v53  ;;  %v1290_v55 = vadd.f32 %v1257_v54, %v1162_v52 }
 0x25e   : > { %1322 = vst.msk [vmem:[%s2798_s4 + $0xf0] sm:$0xff] %vm1099_vm1, %v1290_v55 }
 0x261   : > { %v1066_v57 = vpop.xlane.xlu1 %1065 }
 0x262   : > { %v1098_v59 = vadd.f32 %v1066_v57, %v1002_v56 }
 0x263   : > { %v1259_v60 = vpop.xlane.xlu0 %1258 }
 0x264   : > { %1131 = vst.msk [vmem:[%s2797_s3 + $0xf8] sm:$0xff] %vm1099_vm1, %v1098_v59  ;;  %v1291_v61 = vadd.f32 %v1259_v60, %v1163_v58 }
 0x266   : > { %1323 = vst.msk [vmem:[%s2798_s4 + $0xf8] sm:$0xff] %vm1099_vm1, %v1291_v61 }
 0x269   : > { %v1255_v63 = vpop.xlane.xlu1 %1254 }
 0x26a   : > { %v1289_v0 = vadd.f32 %v1255_v63, %v1161_v62 }
 0x26c   : > { %1321 = vst.msk [vmem:[%s2798_s4 + $0xe8] sm:$0xff] %vm1099_vm1, %v1289_v0 }
 0x26d PF: > { %s15_s17 = sadd.s32 1, %s1481_s17   ;;  %s2799_s15 = smov %s1477_s16 }
 0x26e   : > { %p12_p6 = scmp.ge.s32.totalorder %s15_s17, 4   ;;  %s2800_s16 = smov %s2802_s18 }
 0x270   :  { %14 = sbr.rel (!%p12_p6) target bundleno = 2 (0x2), region = 78 }

// kernel: pointer_forward.4
= control target key start
LH: loop header
LB: loop body
LE: loop exit
PB: predicated region body
PF: predicated region fallthrough
CT: control target
= control target key end

     0   :  { %s1312_s21 = smov 0   ;;  %s1314_s22 = smov 0   ;;  %s2014_s0 = inlined_call_operand.vmem [shape: f32[2,256,128], index: 0, kind: input, shape index: {}]   ;;  %s2015_s1 = inlined_call_operand.vmem [shape: f32[64,256], index: 1, kind: input, shape index: {}]   ;;  %s2016_s2 = inlined_call_operand.vmem [shape: f32[256,1], index: 2, kind: input, shape index: {}]   ;;  %s2017_s3 = inlined_call_operand.vmem [shape: f32[256,1], index: 3, kind: input, shape index: {}]   ;;  %s2018_s4 = inlined_call_operand.vmem [shape: f32[2,64,128], index: 4, kind: output, shape index: {0}]   ;;  %s2019_s5 = inlined_call_operand.vmem [shape: f32[64,1], index: 5, kind: output, shape index: {1}]   ;;  %s2020_s6 = inlined_call_operand.vmem [shape: f32[64,1], index: 6, kind: output, shape index: {2}]  }
   0x1   :  { %s1316_s23 = smov 0  }
   0x2 LB: > { %s29_s24 = sadd.s32 1, %s1269_s22  ;;  %p1147_p0 = scmp.ge.s32.totalorder %s1273_s23, 1  ;;  %s1273_s23 = sphi %s1316_s23, %s17_s23   ;;  %s1269_s22 = sphi %s1314_s22, %s2022_s22   ;;  %s1265_s21 = sphi %s1312_s21, %s2021_s21  }
   0x3   : > { %p31_p1 = scmp.ge.s32.totalorder %s29_s24, 2  ;;  %p226_p2 = scmp.lt.s32.totalorder %s1273_s23, 3 }
   0x5   : > { %s2024_s24 = smov (%p31_p1, %s29_s24), 0  ;;  %p227_p3 = pnand %p1147_p0, %p226_p2 }
   0x6   : > { %p262_p4 = scmp.lt.s32.totalorder (!%p227_p3), %s1265_s21, 1  ;;  %p278_p5 = scmp.eq.s32.totalorder (!%p227_p3), %s1265_s21, 0 }
   0x7   : > { %230 = sbr.rel (%p227_p3) target bundleno = 609 (0x261), region = 36 }
   0xc   : > { %s2026_s21 = smov (!%p262_p4, %s1265_s21), 1  ;;  %283 = sbr.rel (!%p278_p5) target bundleno = 29 (0x1d), region = 40  ;;  %vm284_vm0 = vcmask (%p278_p5), 7168   ;;  %v1275_v0 = vmov (%p278_p5), 0.0  }
   0xd   : > { %s1187_s25 = sshll.u32 %s2026_s21, 8  ;;  %s1188_s26 = sshll.u32 %s2026_s21, 6  ;;  %285 = vst.msk [vmem:[%s2019_s5] sm:$0xff] (%p278_p5), %vm284_vm0, %v1275_v0 }
   0xe   : > { %s1333_s29 = scalar_lea.vmem %s2014_s0, %s1187_s25  ;;  %s1338_s8 = scalar_lea.vmem %s2018_s4, %s1188_s26  ;;  %286 = vst.msk [vmem:[%s2019_s5 + $0x8] sm:$0xff] (%p278_p5), %vm284_vm0, %v1275_v0 }
   0xf   : > { %287 = vst.msk [vmem:[%s2019_s5 + $0x10] sm:$0xff] (%p278_p5), %vm284_vm0, %v1275_v0 }
  0x10   : > { %288 = vst.msk [vmem:[%s2019_s5 + $0x18] sm:$0xff] (%p278_p5), %vm284_vm0, %v1275_v0 }
  0x11   : > { %289 = vst.msk [vmem:[%s2019_s5 + $0x20] sm:$0xff] %vm284_vm0, %v1275_v0 }
  0x12   : > { %290 = vst.msk [vmem:[%s2019_s5 + $0x28] sm:$0xff] %vm284_vm0, %v1275_v0 }
  0x13   : > { %291 = vst.msk [vmem:[%s2019_s5 + $0x30] sm:$0xff] %vm284_vm0, %v1275_v0 }
  0x14   : > { %292 = vst.msk [vmem:[%s2019_s5 + $0x38] sm:$0xff] %vm284_vm0, %v1275_v0 }
  0x15   : > { %293 = vst.msk [vmem:[%s2020_s6] sm:$0xff] %vm284_vm0, %v1275_v0 }
  0x16   : > { %294 = vst.msk [vmem:[%s2020_s6 + $0x8] sm:$0xff] %vm284_vm0, %v1275_v0 }
  0x17   : > { %295 = vst.msk [vmem:[%s2020_s6 + $0x10] sm:$0xff] %vm284_vm0, %v1275_v0 }
  0x18   : > { %296 = vst.msk [vmem:[%s2020_s6 + $0x18] sm:$0xff] %vm284_vm0, %v1275_v0 }
  0x19   : > { %297 = vst.msk [vmem:[%s2020_s6 + $0x20] sm:$0xff] %vm284_vm0, %v1275_v0 }
  0x1a   : > { %298 = vst.msk [vmem:[%s2020_s6 + $0x28] sm:$0xff] %vm284_vm0, %v1275_v0 }
  0x1b   : > { %299 = vst.msk [vmem:[%s2020_s6 + $0x30] sm:$0xff] %vm284_vm0, %v1275_v0 }
  0x1c   : > { %300 = vst.msk [vmem:[%s2020_s6 + $0x38] sm:$0xff] %vm284_vm0, %v1275_v0 }
  0x1d PF: > { %v337_v1 = vld [vmem:[%s2016_s2 + $0x20] sm:$0xff]  ;;  %v335_v2 = vld [vmem:[%s2016_s2 + $0x10] sm:$0xff]  ;;  %v1276_v4 = vmov 0   ;;  %v338_v5 = vld [vmem:[%s2016_s2 + $0x28] sm:$0xff]  ;;  %vm991_vm2 = vcmask 7168  }
  0x1e   : > { %v333_v3 = vld [vmem:[%s2016_s2] sm:$0xff]  ;;  %1250 = vset.pattern.permute.xlu2 %v1276_v4  ;;  %1249 = vset.pattern.permute.xlu1 %v1276_v4  ;;  %v336_v6 = vld [vmem:[%s2016_s2 + $0x18] sm:$0xff]  ;;  %v334_v7 = vld [vmem:[%s2016_s2 + $0x8] sm:$0xff] }
  0x1f   : > { %1248 = vset.pattern.permute.xlu0 %v1276_v4  ;;  %387 = vperm.xlu2 %1250, %v337_v1   ;;  %v341_v8 = vld [vmem:[%s2016_s2 + $0x40] sm:$0xff]  ;;  %v340_v9 = vld [vmem:[%s2016_s2 + $0x38] sm:$0xff]  ;;  %v339_v10 = vld [vmem:[%s2016_s2 + $0x30] sm:$0xff] }
  0x20   : > { %377 = vperm.xlu1 %1249, %v335_v2   ;;  %367 = vperm.xlu0 %1248, %v333_v3   ;;  %v344_v11 = vld [vmem:[%s2016_s2 + $0x58] sm:$0xff]  ;;  %v343_v12 = vld [vmem:[%s2016_s2 + $0x50] sm:$0xff]  ;;  %v342_v13 = vld [vmem:[%s2016_s2 + $0x48] sm:$0xff] }
  0x21   : > { %v347_v14 = vld [vmem:[%s2016_s2 + $0x70] sm:$0xff]  ;;  %v346_v15 = vld [vmem:[%s2016_s2 + $0x68] sm:$0xff]  ;;  %v345_v16 = vld [vmem:[%s2016_s2 + $0x60] sm:$0xff] }
  0x22   : > { %v350_v17 = vld [vmem:[%s2016_s2 + $0x88] sm:$0xff]  ;;  %v349_v18 = vld [vmem:[%s2016_s2 + $0x80] sm:$0xff]  ;;  %v348_v19 = vld [vmem:[%s2016_s2 + $0x78] sm:$0xff] }
  0x23   : > { %v353_v20 = vld [vmem:[%s2016_s2 + $0xa0] sm:$0xff]  ;;  %v352_v21 = vld [vmem:[%s2016_s2 + $0x98] sm:$0xff]  ;;  %v351_v22 = vld [vmem:[%s2016_s2 + $0x90] sm:$0xff] }
  0x24   : > { %v356_v23 = vld [vmem:[%s2016_s2 + $0xb8] sm:$0xff]  ;;  %v355_v24 = vld [vmem:[%s2016_s2 + $0xb0] sm:$0xff]  ;;  %v354_v25 = vld [vmem:[%s2016_s2 + $0xa8] sm:$0xff] }
  0x25   : > { %v359_v26 = vld [vmem:[%s2016_s2 + $0xd0] sm:$0xff]  ;;  %v358_v27 = vld [vmem:[%s2016_s2 + $0xc8] sm:$0xff]  ;;  %v357_v28 = vld [vmem:[%s2016_s2 + $0xc0] sm:$0xff] }
  0x26   : > { %v363_v29 = vld [vmem:[%s2016_s2 + $0xf0] sm:$0xff]  ;;  %v364_v30 = vld [vmem:[%s2016_s2 + $0xf8] sm:$0xff]  ;;  %v362_v32 = vld [vmem:[%s2016_s2 + $0xe8] sm:$0xff] }
  0x27   : > { %392 = vperm.xlu2 %1250, %v338_v5   ;;  %v360_v31 = vld [vmem:[%s2016_s2 + $0xd8] sm:$0xff]  ;;  %v361_v35 = vld [vmem:[%s2016_s2 + $0xe0] sm:$0xff]  ;;  %v587_v36 = vld [vmem:[%s2017_s3 + $0xf0] sm:$0xff] }
  0x28   : > { %382 = vperm.xlu1 %1249, %v336_v6   ;;  %372 = vperm.xlu0 %1248, %v334_v7   ;;  %v588_v33 = vld [vmem:[%s2017_s3 + $0xf8] sm:$0xff]  ;;  %v571_v37 = vld [vmem:[%s2017_s3 + $0x70] sm:$0xff]  ;;  %v569_v39 = vld [vmem:[%s2017_s3 + $0x60] sm:$0xff] }
  0x29   : > { %v572_v34 = vld [vmem:[%s2017_s3 + $0x78] sm:$0xff]  ;;  %v586_v40 = vld [vmem:[%s2017_s3 + $0xe8] sm:$0xff]  ;;  %v585_v45 = vld [vmem:[%s2017_s3 + $0xe0] sm:$0xff] }
  0x2a   : > { %v570_v41 = vld [vmem:[%s2017_s3 + $0x68] sm:$0xff]  ;;  %v584_v43 = vld [vmem:[%s2017_s3 + $0xd8] sm:$0xff]  ;;  %v583_v48 = vld [vmem:[%s2017_s3 + $0xd0] sm:$0xff] }
  0x2b   : > { %v568_v44 = vld [vmem:[%s2017_s3 + $0x58] sm:$0xff]  ;;  %v566_v47 = vld [vmem:[%s2017_s3 + $0x48] sm:$0xff]  ;;  %v567_v49 = vld [vmem:[%s2017_s3 + $0x50] sm:$0xff] }
  0x2c   : > { %v581_v53 = vld [vmem:[%s2017_s3 + $0xc0] sm:$0xff]  ;;  %v582_v55 = vld [vmem:[%s2017_s3 + $0xc8] sm:$0xff]  ;;  %v563_v59 = vld [vmem:[%s2017_s3 + $0x30] sm:$0xff] }
  0x2d   : > { %v565_v54 = vld [vmem:[%s2017_s3 + $0x40] sm:$0xff]  ;;  %v580_v60 = vld [vmem:[%s2017_s3 + $0xb8] sm:$0xff]  ;;  %v578_v1 = vld [vmem:[%s2017_s3 + $0xa8] sm:$0xff] }
  0x2e   : > { %v564_v61 = vld [vmem:[%s2017_s3 + $0x38] sm:$0xff]  ;;  %v562_v2 = vld [vmem:[%s2017_s3 + $0x28] sm:$0xff]  ;;  %v579_v3 = vld [vmem:[%s2017_s3 + $0xb0] sm:$0xff] }
  0x2f   : > { %407 = vperm.xlu2 %1250, %v341_v8   ;;  %v560_v7 = vld [vmem:[%s2017_s3 + $0x18] sm:$0xff]  ;;  %v577_v8 = vld [vmem:[%s2017_s3 + $0xa0] sm:$0xff] }
  0x30   : > { %402 = vperm.xlu1 %1249, %v340_v9   ;;  %397 = vperm.xlu0 %1248, %v339_v10   ;;  %v561_v9 = vld [vmem:[%s2017_s3 + $0x20] sm:$0xff] }
  0x37   : > { %422 = vperm.xlu2 %1250, %v344_v11  }
  0x38   : > { %417 = vperm.xlu1 %1249, %v343_v12   ;;  %412 = vperm.xlu0 %1248, %v342_v13   ;;  %v575_v13 = vld [vmem:[%s2017_s3 + $0x90] sm:$0xff] }
  0x3f   : > { %437 = vperm.xlu2 %1250, %v347_v14   ;;  %v559_v14 = vld [vmem:[%s2017_s3 + $0x10] sm:$0xff] }
  0x40   : > { %432 = vperm.xlu1 %1249, %v346_v15   ;;  %427 = vperm.xlu0 %1248, %v345_v16   ;;  %v576_v15 = vld [vmem:[%s2017_s3 + $0x98] sm:$0xff] }
  0x47   : > { %452 = vperm.xlu2 %1250, %v350_v17  }
  0x48   : > { %447 = vperm.xlu1 %1249, %v349_v18   ;;  %442 = vperm.xlu0 %1248, %v348_v19   ;;  %v557_v19 = vld [vmem:[%s2017_s3] sm:$0xff] }
  0x4f   : > { %467 = vperm.xlu2 %1250, %v353_v20   ;;  %v574_v20 = vld [vmem:[%s2017_s3 + $0x88] sm:$0xff] }
  0x50   : > { %462 = vperm.xlu1 %1249, %v352_v21   ;;  %457 = vperm.xlu0 %1248, %v351_v22   ;;  %v558_v21 = vld [vmem:[%s2017_s3 + $0x8] sm:$0xff] }
  0x57   : > { %482 = vperm.xlu2 %1250, %v356_v23  }
  0x58   : > { %477 = vperm.xlu1 %1249, %v355_v24   ;;  %472 = vperm.xlu0 %1248, %v354_v25   ;;  %v573_v25 = vld [vmem:[%s2017_s3 + $0x80] sm:$0xff] }
  0x5f   : > { %497 = vperm.xlu2 %1250, %v359_v26  }
  0x60   : > { %492 = vperm.xlu1 %1249, %v358_v27   ;;  %487 = vperm.xlu0 %1248, %v357_v28  }
  0x67   : > { %517 = vperm.xlu2 %1250, %v363_v29  }
  0x68   : > { %522 = vperm.xlu1 %1249, %v364_v30   ;;  %502 = vperm.xlu0 %1248, %v360_v31  }
  0x6f   : > { %512 = vperm.xlu2 %1250, %v362_v32  }
  0x70   : > { %746 = vperm.xlu1 %1249, %v588_v33   ;;  %666 = vperm.xlu0 %1248, %v572_v34   ;;  %v814_v34 = vlaneseq }
  0x77   : > { %507 = vperm.xlu2 %1250, %v361_v35   ;;  %v316_v35 = vld [vmem:[%s1333_s29 + $0x78] sm:$0xff] }
  0x78   : > { %741 = vperm.xlu1 %1249, %v587_v36   ;;  %661 = vperm.xlu0 %1248, %v571_v37   ;;  %v332_v36 = vld [vmem:[%s1333_s29 + $0xf8] sm:$0xff] }
  0x79   : > { %v1512_v38 = vpop.permute.xlu2 %387 }
  0x7f   : > { %651 = vperm.xlu2 %1250, %v569_v39   ;;  %v1650_v39 = vand.u32 127, %v814_v34 }
  0x80   : > { %736 = vperm.xlu1 %1249, %v586_v40   ;;  %656 = vperm.xlu0 %1248, %v570_v41  }
  0x81   : > { %v1523_v42 = vpop.permute.xlu2 %392  ;;  %vm818_vm1 = vcmp.lt.s32.totalorder %v1650_v39, 8  ;;  %v856_v39 = vld [vmem:[%s2015_s1 + $0x18] sm:$0xff] }
  0x87   : > { %726 = vperm.xlu2 %1250, %v584_v43  }
  0x88   : > { %646 = vperm.xlu1 %1249, %v568_v44   ;;  %731 = vperm.xlu0 %1248, %v585_v45  }
  0x89   : > { %v1534_v46 = vpop.permute.xlu2 %407 }
  0x8f   : > { %636 = vperm.xlu2 %1250, %v566_v47  }
  0x90   : > { %721 = vperm.xlu1 %1249, %v583_v48   ;;  %641 = vperm.xlu0 %1248, %v567_v49  }
  0x91   : > { %v1545_v50 = vpop.permute.xlu2 %422 }
  0x92   : > { %v1547_v51 = vpop.permute.xlu1 %377  ;;  %v1549_v52 = vpop.permute.xlu0 %367 }
  0x97   : > { %711 = vperm.xlu2 %1250, %v581_v53   ;;  %v315_v53 = vld [vmem:[%s1333_s29 + $0x70] sm:$0xff] }
  0x98   : > { %631 = vperm.xlu1 %1249, %v565_v54   ;;  %716 = vperm.xlu0 %1248, %v582_v55   ;;  %v331_v54 = vld [vmem:[%s1333_s29 + $0xf0] sm:$0xff] }
  0x99   : > { %v1560_v56 = vpop.permute.xlu2 %437 }
  0x9a   : > { %v1562_v57 = vpop.permute.xlu1 %382  ;;  %v1564_v58 = vpop.permute.xlu0 %372  ;;  %v539_v55 = vmul.f32 %v1560_v56, %v315_v53 }
  0x9f   : > { %621 = vperm.xlu2 %1250, %v563_v59  }
  0xa0   : > { %706 = vperm.xlu1 %1249, %v580_v60   ;;  %626 = vperm.xlu0 %1248, %v564_v61  }
  0xa1   : > { %v1575_v62 = vpop.permute.xlu2 %452 }
  0xa2   : > { %v1577_v63 = vpop.permute.xlu1 %402  ;;  %v1579_v0 = vpop.permute.xlu0 %397 }
  0xa7   : > { %696 = vperm.xlu2 %1250, %v578_v1  }
  0xa8   : > { %616 = vperm.xlu1 %1249, %v562_v2   ;;  %701 = vperm.xlu0 %1248, %v579_v3  }
  0xa9   : > { %v1590_v4 = vpop.permute.xlu2 %467 }
  0xaa   : > { %v1592_v5 = vpop.permute.xlu1 %417  ;;  %v1594_v6 = vpop.permute.xlu0 %412 }
  0xaf   : > { %606 = vperm.xlu2 %1250, %v560_v7  }
  0xb0   : > { %691 = vperm.xlu1 %1249, %v577_v8   ;;  %611 = vperm.xlu0 %1248, %v561_v9   ;;  %v314_v9 = vld [vmem:[%s1333_s29 + $0x68] sm:$0xff] }
  0xb1   : > { %v1605_v10 = vpop.permute.xlu2 %482 }
  0xb2   : > { %v1607_v11 = vpop.permute.xlu1 %432  ;;  %v1609_v12 = vpop.permute.xlu0 %427 }
  0xb3   : > { %v538_v56 = vmul.f32 %v1607_v11, %v314_v9 }
  0xb7   : > { %681 = vperm.xlu2 %1250, %v575_v13   ;;  %v313_v13 = vld [vmem:[%s1333_s29 + $0x60] sm:$0xff] }
  0xb8   : > { %601 = vperm.xlu1 %1249, %v559_v14   ;;  %686 = vperm.xlu0 %1248, %v576_v15   ;;  %v330_v14 = vld [vmem:[%s1333_s29 + $0xe8] sm:$0xff]  ;;  %v537_v15 = vmul.f32 %v1609_v12, %v313_v13 }
  0xb9   : > { %v1620_v16 = vpop.permute.xlu2 %497 }
  0xba   : > { %v1622_v17 = vpop.permute.xlu1 %447  ;;  %v443_v18 = vpop.permute.xlu0 %442 }
  0xbb   : > { %v540_v40 = vmul.f32 %v443_v18, %v316_v35 }
  0xbf   : > { %591 = vperm.xlu2 %1250, %v557_v19  }
  0xc0   : > { %676 = vperm.xlu1 %1249, %v574_v20   ;;  %596 = vperm.xlu0 %1248, %v558_v21  }
  0xc1   : > { %v518_v22 = vpop.permute.xlu2 %517 }
  0xc2   : > { %v1633_v23 = vpop.permute.xlu1 %462  ;;  %v1635_v24 = vpop.permute.xlu0 %457  ;;  %v555_v59 = vmul.f32 %v518_v22, %v331_v54 }
  0xc8   : > { %671 = vperm.xlu0 %1248, %v573_v25  }
  0xc9   : > { %v513_v28 = vpop.permute.xlu2 %512 }
  0xca   : > { %v1640_v26 = vpop.permute.xlu1 %477  ;;  %v1642_v27 = vpop.permute.xlu0 %472  ;;  %v554_v18 = vmul.f32 %v513_v28, %v330_v14  ;;  %v309_v14 = vld [vmem:[%s1333_s29 + $0x40] sm:$0xff] }
  0xd1   : > { %v508_v31 = vpop.permute.xlu2 %507 }
  0xd2   : > { %v1644_v29 = vpop.permute.xlu1 %492  ;;  %v1646_v30 = vpop.permute.xlu0 %487 }
  0xd9   : > { %v652_v37 = vpop.permute.xlu2 %651 }
  0xda   : > { %v523_v32 = vpop.permute.xlu1 %522  ;;  %v503_v33 = vpop.permute.xlu0 %502  ;;  %v761_v21 = vadd.f32 %v652_v37, %v537_v15 }
  0xdb   : > { %v556_v41 = vmul.f32 %v523_v32, %v332_v36  ;;  %v312_v36 = vld [vmem:[%s1333_s29 + $0x58] sm:$0xff] }
  0xdc   : > { %v536_v11 = vmul.f32 %v1545_v50, %v312_v36  ;;  %v308_v36 = vld [vmem:[%s1333_s29 + $0x38] sm:$0xff] }
  0xe1   : > { %v727_v60 = vpop.permute.xlu2 %726 }
  0xe2   : > { %v747_v43 = vpop.permute.xlu1 %746  ;;  %v667_v44 = vpop.permute.xlu0 %666 }
  0xe3   : > { %v780_v45 = vadd.f32 %v747_v43, %v556_v41  ;;  %v764_v47 = vadd.f32 %v667_v44, %v540_v40  ;;  %v329_v40 = vld [vmem:[%s1333_s29 + $0xe0] sm:$0xff]  ;;  %v793_v41 = vmax.f32 %v761_v21, 0.0  ;;  %v328_v43 = vld [vmem:[%s1333_s29 + $0xd8] sm:$0xff] }
  0xe4   : > { %v553_v12 = vmul.f32 %v508_v31, %v329_v40  ;;  %v552_v28 = vmul.f32 %v503_v33, %v328_v43  ;;  %v307_v40 = vld [vmem:[%s1333_s29 + $0x30] sm:$0xff] }
  0xe5   : > { %v812_v48 = vmax.f32 %v780_v45, 0.0  ;;  %v796_v49 = vmax.f32 %v764_v47, 0.0 }
  0xe7   : > { %1153 = vmatpush.msk.msra.mxu0 %vm818_vm1, %v796_v49  ;;  %1190 = vmatpush.msk.msra.mxu2 %vm818_vm1, %v796_v49 }
  0xe8   : > { %1169 = vmatpush.msk.msra.mxu1 %vm818_vm1, %v812_v48  ;;  %1206 = vmatpush.msk.msra.mxu3 %vm818_vm1, %v812_v48  ;;  %v776_v48 = vadd.f32 %v727_v60, %v552_v28 }
  0xe9   : > { %v637_v22 = vpop.permute.xlu2 %636 }
  0xea   : > { %v742_v61 = vpop.permute.xlu1 %741  ;;  %v662_v1 = vpop.permute.xlu0 %661  ;;  %v808_v50 = vmax.f32 %v776_v48, 0.0 }
  0xeb   : > { %v779_v2 = vadd.f32 %v742_v61, %v555_v59  ;;  %v763_v3 = vadd.f32 %v662_v1, %v539_v55  ;;  %v311_v55 = vld [vmem:[%s1333_s29 + $0x50] sm:$0xff]  ;;  %v310_v59 = vld [vmem:[%s1333_s29 + $0x48] sm:$0xff] }
  0xec   : > { %v327_v61 = vld [vmem:[%s1333_s29 + $0xd0] sm:$0xff]  ;;  %v535_v31 = vmul.f32 %v1592_v5, %v311_v55  ;;  %v534_v33 = vmul.f32 %v1594_v6, %v310_v59  ;;  %v325_v5 = vld [vmem:[%s1333_s29 + $0xc0] sm:$0xff] }
  0xed   : > { %v811_v7 = vmax.f32 %v779_v2, 0.0  ;;  %v795_v8 = vmax.f32 %v763_v3, 0.0  ;;  %v551_v60 = vmul.f32 %v1620_v16, %v327_v61  ;;  %v533_v16 = vmul.f32 %v1534_v46, %v309_v14  ;;  %v324_v46 = vld [vmem:[%s1333_s29 + $0xb8] sm:$0xff] }
  0xee   : > { %v758_v3 = vadd.f32 %v637_v22, %v534_v33  ;;  %v548_v43 = vmul.f32 %v1605_v10, %v324_v46 }
  0xef   : > { %1154 = vmatpush.msk.msra.mxu0 %vm818_vm1, %v795_v8  ;;  %1191 = vmatpush.msk.msra.mxu2 %vm818_vm1, %v795_v8 }
  0xf0   : > { %1170 = vmatpush.msk.msra.mxu1 %vm818_vm1, %v811_v7  ;;  %1207 = vmatpush.msk.msra.mxu3 %vm818_vm1, %v811_v7  ;;  %v790_v15 = vmax.f32 %v758_v3, 0.0  ;;  %v305_v3 = vld [vmem:[%s1333_s29 + $0x20] sm:$0xff] }
  0xf1   : > { %v712_v49 = vpop.permute.xlu2 %711 }
  0xf2   : > { %v737_v19 = vpop.permute.xlu1 %736  ;;  %v657_v20 = vpop.permute.xlu0 %656 }
  0xf3   : > { %v778_v25 = vadd.f32 %v737_v19, %v554_v18  ;;  %v762_v32 = vadd.f32 %v657_v20, %v538_v56  ;;  %v326_v56 = vld [vmem:[%s1333_s29 + $0xc8] sm:$0xff]  ;;  %v549_v19 = vmul.f32 %v1646_v30, %v325_v5  ;;  %v532_v30 = vmul.f32 %v1577_v63, %v308_v36  ;;  %v323_v63 = vld [vmem:[%s1333_s29 + $0xb0] sm:$0xff] }
  0xf4   : > { %v550_v18 = vmul.f32 %v1644_v29, %v326_v56 }
  0xf5   : > { %v810_v34 = vmax.f32 %v778_v25, 0.0  ;;  %v794_v35 = vmax.f32 %v762_v32, 0.0  ;;  %v773_v32 = vadd.f32 %v712_v49, %v549_v19  ;;  %v306_v49 = vld [vmem:[%s1333_s29 + $0x28] sm:$0xff]  ;;  %v320_v19 = vld [vmem:[%s1333_s29 + $0x98] sm:$0xff] }
  0xf6   : > { %v530_v10 = vmul.f32 %v1523_v42, %v306_v49  ;;  %v304_v42 = vld [vmem:[%s1333_s29 + $0x18] sm:$0xff]  ;;  %v317_v49 = vld [vmem:[%s1333_s29 + $0x80] sm:$0xff] }
  0xf7   : > { %1155 = vmatpush.msk.msra.mxu0 %vm818_vm1, %v794_v35  ;;  %1192 = vmatpush.msk.msra.mxu2 %vm818_vm1, %v794_v35  ;;  %v805_v29 = vmax.f32 %v773_v32, 0.0 }
  0xf8   : > { %1171 = vmatpush.msk.msra.mxu1 %vm818_vm1, %v810_v34  ;;  %1208 = vmatpush.msk.msra.mxu3 %vm818_vm1, %v810_v34 }
  0xf9   : > { %1156 = vmatpush.msk.msra.mxu0 %vm818_vm1, %v793_v41  ;;  %1193 = vmatpush.msk.msra.mxu2 %vm818_vm1, %v793_v41  ;;  %v622_v6 = vpop.permute.xlu2 %621  ;;  %v531_v41 = vmul.f32 %v1579_v0, %v307_v40 }
  0xfa   : > { %v647_v37 = vpop.permute.xlu1 %646  ;;  %v732_v44 = vpop.permute.xlu0 %731 }
  0xfb   : > { %v760_v45 = vadd.f32 %v647_v37, %v536_v11  ;;  %v777_v47 = vadd.f32 %v732_v44, %v553_v12  ;;  %v755_v37 = vadd.f32 %v622_v6, %v531_v41 }
  0xfd   : > { %v792_v53 = vmax.f32 %v760_v45, 0.0  ;;  %v809_v54 = vmax.f32 %v777_v47, 0.0  ;;  %v787_v0 = vmax.f32 %v755_v37, 0.0 }
  0xff   : > { %1157 = vmatpush.msk.msra.mxu0 %vm818_vm1, %v792_v53  ;;  %1194 = vmatpush.msk.msra.mxu2 %vm818_vm1, %v792_v53  ;;  %v322_v53 = vld [vmem:[%s1333_s29 + $0xa8] sm:$0xff] }
 0x100   : > { %1172 = vmatpush.msk.msra.mxu1 %vm818_vm1, %v809_v54  ;;  %1209 = vmatpush.msk.msra.mxu3 %vm818_vm1, %v809_v54  ;;  %v547_v54 = vmul.f32 %v1640_v26, %v323_v63  ;;  %v546_v55 = vmul.f32 %v1642_v27, %v322_v53  ;;  %v529_v27 = vmul.f32 %v1512_v38, %v305_v3  ;;  %v868_v3 = vld [vmem:[%s2015_s1 + $0x78] sm:$0xff] }
 0x101   : > { %v697_v11 = vpop.permute.xlu2 %696 }
 0x102   : > { %1173 = vmatpush.msk.msra.mxu1 %vm818_vm1, %v808_v50  ;;  %1210 = vmatpush.msk.msra.mxu3 %vm818_vm1, %v808_v50  ;;  %v722_v1 = vpop.permute.xlu1 %721  ;;  %v642_v2 = vpop.permute.xlu0 %641  ;;  %v770_v33 = vadd.f32 %v697_v11, %v546_v55  ;;  %v862_v55 = vld [vmem:[%s2015_s1 + $0x48] sm:$0xff] }
 0x103   : > { %v775_v7 = vadd.f32 %v722_v1, %v551_v60  ;;  %v759_v8 = vadd.f32 %v642_v2, %v535_v31 }
 0x104   : > { %v802_v26 = vmax.f32 %v770_v33, 0.0  ;;  %v866_v33 = vld [vmem:[%s2015_s1 + $0x68] sm:$0xff] }
 0x105   : > { %v807_v9 = vmax.f32 %v775_v7, 0.0  ;;  %v791_v13 = vmax.f32 %v759_v8, 0.0  ;;  %v321_v7 = vld [vmem:[%s1333_s29 + $0xa0] sm:$0xff]  ;;  %v528_v8 = vmul.f32 %v1562_v57, %v304_v42  ;;  %v860_v42 = vld [vmem:[%s2015_s1 + $0x38] sm:$0xff] }
 0x107   : > { %1158 = vmatpush.msk.msra.mxu0 %vm818_vm1, %v791_v13  ;;  %1195 = vmatpush.msk.msra.mxu2 %vm818_vm1, %v791_v13 }
 0x108   : > { %1174 = vmatpush.msk.msra.mxu1 %vm818_vm1, %v807_v9  ;;  %1211 = vmatpush.msk.msra.mxu3 %vm818_vm1, %v807_v9  ;;  %v545_v9 = vmul.f32 %v1590_v4, %v321_v7 }
 0x109   : > { %1159 = vmatpush.msk.msra.mxu0 %vm818_vm1, %v790_v15  ;;  %1196 = vmatpush.msk.msra.mxu2 %vm818_vm1, %v790_v15  ;;  %v607_v60 = vpop.permute.xlu2 %606 }
 0x10a   : > { %v632_v20 = vpop.permute.xlu1 %631  ;;  %v717_v21 = vpop.permute.xlu0 %716  ;;  %v752_v56 = vadd.f32 %v607_v60, %v528_v8  ;;  %v858_v60 = vld [vmem:[%s2015_s1 + $0x28] sm:$0xff] }
 0x10b   : > { %v757_v22 = vadd.f32 %v632_v20, %v533_v16  ;;  %v774_v25 = vadd.f32 %v717_v21, %v550_v18  ;;  %v303_v18 = vld [vmem:[%s1333_s29 + $0x10] sm:$0xff]  ;;  %v544_v21 = vmul.f32 %v1633_v23, %v320_v19 }
 0x10c   : > { %v319_v20 = vld [vmem:[%s1333_s29 + $0x90] sm:$0xff]  ;;  %v784_v57 = vmax.f32 %v752_v56, 0.0  ;;  %v527_v4 = vmul.f32 %v1547_v51, %v303_v18  ;;  %v318_v51 = vld [vmem:[%s1333_s29 + $0x88] sm:$0xff] }
 0x10d   : > { %v789_v34 = vmax.f32 %v757_v22, 0.0  ;;  %v806_v35 = vmax.f32 %v774_v25, 0.0  ;;  %v543_v22 = vmul.f32 %v1635_v24, %v319_v20  ;;  %v542_v11 = vmul.f32 %v1575_v62, %v318_v51 }
 0x10e   : > { %v541_v62 = vmul.f32 %v1622_v17, %v317_v49  ;;  %v863_v17 = vld [vmem:[%s2015_s1 + $0x50] sm:$0xff]  ;;  %v960_v49 = vld [vmem:[%s2019_s5 + $0x8] sm:$0xff] }
 0x10f   : > { %1160 = vmatpush.msk.msra.mxu0 %vm818_vm1, %v789_v34  ;;  %1197 = vmatpush.msk.msra.mxu2 %vm818_vm1, %v789_v34 }
 0x110   : > { %1175 = vmatpush.msk.msra.mxu1 %vm818_vm1, %v806_v35  ;;  %1212 = vmatpush.msk.msra.mxu3 %vm818_vm1, %v806_v35 }
 0x111   : > { %v682_v38 = vpop.permute.xlu2 %681 }
 0x112   : > { %1176 = vmatpush.msk.msra.mxu1 %vm818_vm1, %v805_v29  ;;  %1213 = vmatpush.msk.msra.mxu3 %vm818_vm1, %v805_v29  ;;  %v707_v12 = vpop.permute.xlu1 %706  ;;  %v627_v28 = vpop.permute.xlu0 %626  ;;  %v767_v36 = vadd.f32 %v682_v38, %v543_v22  ;;  %v301_v29 = vld [vmem:[%s1333_s29] sm:$0xff] }
 0x113   : > { %v772_v44 = vadd.f32 %v707_v12, %v548_v43  ;;  %v756_v45 = vadd.f32 %v627_v28, %v532_v30  ;;  %v302_v30 = vld [vmem:[%s1333_s29 + $0x8] sm:$0xff]  ;;  %v525_v24 = vmul.f32 %v1549_v52, %v301_v29  ;;  %v853_v52 = vld [vmem:[%s2015_s1] sm:$0xff] }
 0x114   : > { %v799_v23 = vmax.f32 %v767_v36, 0.0  ;;  %v526_v43 = vmul.f32 %v1564_v58, %v302_v30  ;;  %v861_v58 = vld [vmem:[%s2015_s1 + $0x40] sm:$0xff] }
 0x115   : > { %v804_v47 = vmax.f32 %v772_v44, 0.0  ;;  %v788_v48 = vmax.f32 %v756_v45, 0.0 }
 0x117   : > { %1161 = vmatpush.msk.msra.mxu0 %vm818_vm1, %v788_v48  ;;  %1198 = vmatpush.msk.msra.mxu2 %vm818_vm1, %v788_v48 }
 0x118   : > { %1177 = vmatpush.msk.msra.mxu1 %vm818_vm1, %v804_v47  ;;  %1214 = vmatpush.msk.msra.mxu3 %vm818_vm1, %v804_v47 }
 0x119   : > { %1162 = vmatpush.msk.msra.mxu0 %vm818_vm1, %v787_v0  ;;  %1199 = vmatpush.msk.msra.mxu2 %vm818_vm1, %v787_v0  ;;  %v592_v41 = vpop.permute.xlu2 %591 }
 0x11a   : > { %v617_v59 = vpop.permute.xlu1 %616  ;;  %v702_v61 = vpop.permute.xlu0 %701  ;;  %v749_v37 = vadd.f32 %v592_v41, %v525_v24  ;;  %v959_v24 = vld [vmem:[%s2019_s5] sm:$0xff] }
 0x11b   : > { %v754_v50 = vadd.f32 %v617_v59, %v530_v10  ;;  %v771_v31 = vadd.f32 %v702_v61, %v547_v54  ;;  %v854_v54 = vld [vmem:[%s2015_s1 + $0x8] sm:$0xff]  ;;  %v855_v59 = vld [vmem:[%s2015_s1 + $0x10] sm:$0xff]  ;;  %v864_v61 = vld [vmem:[%s2015_s1 + $0x58] sm:$0xff] }
 0x11c   : > { %v781_v63 = vmax.f32 %v749_v37, 0.0 }
 0x11d   : > { %v786_v1 = vmax.f32 %v754_v50, 0.0  ;;  %v803_v2 = vmax.f32 %v771_v31, 0.0  ;;  %v865_v50 = vld [vmem:[%s2015_s1 + $0x60] sm:$0xff] }
 0x11e   : > { %v857_v31 = vld [vmem:[%s2015_s1 + $0x20] sm:$0xff] }
 0x11f   : > { %1163 = vmatpush.msk.msra.mxu0 %vm818_vm1, %v786_v1  ;;  %1200 = vmatpush.msk.msra.mxu2 %vm818_vm1, %v786_v1  ;;  %v867_v1 = vld [vmem:[%s2015_s1 + $0x70] sm:$0xff] }
 0x120   : > { %1178 = vmatpush.msk.msra.mxu1 %vm818_vm1, %v803_v2  ;;  %1215 = vmatpush.msk.msra.mxu3 %vm818_vm1, %v803_v2  ;;  %v859_v2 = vld [vmem:[%s2015_s1 + $0x30] sm:$0xff] }
 0x122   : > { %1179 = vmatpush.msk.msra.mxu1 %vm818_vm1, %v802_v26  ;;  %1216 = vmatpush.msk.msra.mxu3 %vm818_vm1, %v802_v26  ;;  %v692_v13 = vpop.permute.xlu1 %691  ;;  %v612_v14 = vpop.permute.xlu0 %611 }
 0x123   : > { %v769_v5 = vadd.f32 %v692_v13, %v545_v9  ;;  %v753_v15 = vadd.f32 %v612_v14, %v529_v27 }
 0x125   : > { %v801_v6 = vmax.f32 %v769_v5, 0.0  ;;  %v785_v16 = vmax.f32 %v753_v15, 0.0 }
 0x127   : > { %1164 = vmatpush.msk.msra.mxu0 %vm818_vm1, %v785_v16  ;;  %1201 = vmatpush.msk.msra.mxu2 %vm818_vm1, %v785_v16 }
 0x128   : > { %1180 = vmatpush.msk.msra.mxu1 %vm818_vm1, %v801_v6  ;;  %1217 = vmatpush.msk.msra.mxu3 %vm818_vm1, %v801_v6 }
 0x129   : > { %1165 = vmatpush.msk.msra.mxu0 %vm818_vm1, %v784_v57  ;;  %1202 = vmatpush.msk.msra.mxu2 %vm818_vm1, %v784_v57 }
 0x12a   : > { %v602_v25 = vpop.permute.xlu1 %601  ;;  %v687_v32 = vpop.permute.xlu0 %686 }
 0x12b   : > { %v751_v34 = vadd.f32 %v602_v25, %v527_v4  ;;  %v768_v35 = vadd.f32 %v687_v32, %v544_v21 }
 0x12d   : > { %v783_v40 = vmax.f32 %v751_v34, 0.0  ;;  %v800_v46 = vmax.f32 %v768_v35, 0.0 }
 0x12f   : > { %1166 = vmatpush.msk.msra.mxu0 %vm818_vm1, %v783_v40  ;;  %1203 = vmatpush.msk.msra.mxu2 %vm818_vm1, %v783_v40 }
 0x130   : > { %1181 = vmatpush.msk.msra.mxu1 %vm818_vm1, %v800_v46  ;;  %1218 = vmatpush.msk.msra.mxu3 %vm818_vm1, %v800_v46 }
 0x132   : > { %1182 = vmatpush.msk.msra.mxu1 %vm818_vm1, %v799_v23  ;;  %1219 = vmatpush.msk.msra.mxu3 %vm818_vm1, %v799_v23  ;;  %v677_v12 = vpop.permute.xlu1 %676  ;;  %v597_v28 = vpop.permute.xlu0 %596 }
 0x133   : > { %v766_v44 = vadd.f32 %v677_v12, %v542_v11  ;;  %v750_v45 = vadd.f32 %v597_v28, %v526_v43  ;;  %v1000_v11 = vld [vmem:[%s2020_s6] sm:$0xff] }
 0x135   : > { %v798_v47 = vmax.f32 %v766_v44, 0.0  ;;  %v782_v48 = vmax.f32 %v750_v45, 0.0  ;;  %v1004_v44 = vld [vmem:[%s2020_s6 + $0x20] sm:$0xff] }
 0x136   : > { %v963_v45 = vld [vmem:[%s2019_s5 + $0x20] sm:$0xff] }
 0x137   : > { %1167 = vmatpush.msk.msra.mxu0 %vm818_vm1, %v782_v48  ;;  %1204 = vmatpush.msk.msra.mxu2 %vm818_vm1, %v782_v48 }
 0x138   : > { %1183 = vmatpush.msk.msra.mxu1 %vm818_vm1, %v798_v47  ;;  %1220 = vmatpush.msk.msra.mxu3 %vm818_vm1, %v798_v47 }
 0x139   : > { %1168 = vmatpush.msk.msra.mxu0 %vm818_vm1, %v781_v63  ;;  %1205 = vmatpush.msk.msra.mxu2 %vm818_vm1, %v781_v63 }
 0x13a   : > { %v672_v53 = vpop.permute.xlu0 %671  ;;  %885 = vmatmul.f32.vlgmr.msra.gmra.mxu0 %v853_v52  ;;  %897 = vmatmul.f32.vlgmr.msra.gmra.mxu2 %v861_v58 }
 0x13b   : > { %v765_v0 = vadd.f32 %v672_v53, %v541_v62  ;;  %v1001_v53 = vld [vmem:[%s2020_s6 + $0x8] sm:$0xff] }
 0x13d   : > { %v797_v10 = vmax.f32 %v765_v0, 0.0 }
 0x13f   : > { %1184 = vmatpush.msk.msra.mxu1 %vm818_vm1, %v797_v10  ;;  %1221 = vmatpush.msk.msra.mxu3 %vm818_vm1, %v797_v10  ;;  %v964_v10 = vld [vmem:[%s2019_s5 + $0x28] sm:$0xff] }
 0x140   : > { %926 = vmatmul.f32.vlgmr.msra.gmra.mxu1 %v854_v54  ;;  %938 = vmatmul.f32.vlgmr.msra.gmra.mxu3 %v862_v55  ;;  %v1002_v54 = vld [vmem:[%s2020_s6 + $0x10] sm:$0xff] }
 0x142   : > { %900 = vmatmul.f32.gmra.mxu2 %v863_v17  ;;  %888 = vmatmul.f32.gmra.mxu0 %v855_v59 }
 0x148   : > { %941 = vmatmul.f32.gmra.mxu3 %v864_v61  ;;  %929 = vmatmul.f32.gmra.mxu1 %v856_v39 }
 0x14a   : > { %903 = vmatmul.f32.gmra.mxu2 %v865_v50  ;;  %891 = vmatmul.f32.gmra.mxu0 %v857_v31  ;;  %v961_v50 = vld [vmem:[%s2019_s5 + $0x10] sm:$0xff] }
 0x150   : > { %944 = vmatmul.f32.gmra.mxu3 %v866_v33  ;;  %932 = vmatmul.f32.gmra.mxu1 %v858_v60  ;;  %v962_v33 = vld [vmem:[%s2019_s5 + $0x18] sm:$0xff] }
 0x152   : > { %906 = vmatmul.f32.gmra.mxu2 %v867_v1  ;;  %894 = vmatmul.f32.gmra.mxu0 %v859_v2 }
 0x158   : > { %947 = vmatmul.f32.gmra.mxu3 %v868_v3  ;;  %935 = vmatmul.f32.gmra.mxu1 %v860_v42  ;;  %v966_v3 = vld [vmem:[%s2019_s5 + $0x38] sm:$0xff] }
 0x1b7   : > { %v886_v7 = vpop.f32.mrf.mxu0 }
 0x1bd   : > { %v927_v26 = vpop.f32.mrf.mxu1  ;;  %v898_v27 = vpop.f32.mrf.mxu2 }
 0x1be   : > { %v928_v8 = vadd.f32 %v927_v26, %v886_v7  ;;  %v965_v7 = vld [vmem:[%s2019_s5 + $0x30] sm:$0xff] }
 0x1bf   : > { %v889_v9 = vpop.f32.mrf.mxu0 }
 0x1c0   : > { %951 = vst [vmem:[%s1338_s8] sm:$0xff] %v928_v8  ;;  %967 = vadd.xlane.f32.xlu1 %v928_v8  ;;  %v1008_v13 = vmul.f32 %v928_v8, %v928_v8  ;;  %v1003_v8 = vld [vmem:[%s2020_s6 + $0x18] sm:$0xff] }
 0x1c2   : > { %1016 = vadd.xlane.f32.xlu2 %v1008_v13 }
 0x1c3   : > { %v939_v14 = vpop.f32.mrf.mxu3 }
 0x1c4   : > { %v940_v56 = vadd.f32 %v939_v14, %v898_v27 }
 0x1c5   : > { %v930_v5 = vpop.f32.mrf.mxu1  ;;  %v901_v15 = vpop.f32.mrf.mxu2 }
 0x1c6   : > { %955 = vst [vmem:[%s1338_s8 + $0x20] sm:$0xff] %v940_v56  ;;  %v931_v6 = vadd.f32 %v930_v5, %v889_v9  ;;  %v1012_v16 = vmul.f32 %v940_v56, %v940_v56 }
 0x1c7   : > { %v892_v18 = vpop.f32.mrf.mxu0 }
 0x1c8   : > { %952 = vst [vmem:[%s1338_s8 + $0x8] sm:$0xff] %v931_v6  ;;  %1024 = vadd.xlane.f32.xlu0 %v1012_v16  ;;  %975 = vadd.xlane.f32.xlu1 %v940_v56  ;;  %v1009_v4 = vmul.f32 %v931_v6, %v931_v6  ;;  %v1005_v56 = vld [vmem:[%s2020_s6 + $0x28] sm:$0xff] }
 0x1ca   : > { %969 = vadd.xlane.f32.xlu2 %v931_v6 }
 0x1cb   : > { %v942_v19 = vpop.f32.mrf.mxu3 }
 0x1cc   : > { %v943_v38 = vadd.f32 %v942_v19, %v901_v15  ;;  %v1007_v15 = vld [vmem:[%s2020_s6 + $0x38] sm:$0xff] }
 0x1cd   : > { %v933_v20 = vpop.f32.mrf.mxu1  ;;  %v904_v21 = vpop.f32.mrf.mxu2 }
 0x1ce   : > { %956 = vst [vmem:[%s1338_s8 + $0x28] sm:$0xff] %v943_v38  ;;  %v934_v57 = vadd.f32 %v933_v20, %v892_v18  ;;  %v1013_v51 = vmul.f32 %v943_v38, %v943_v38  ;;  %v1006_v18 = vld [vmem:[%s2020_s6 + $0x30] sm:$0xff] }
 0x1cf   : > { %v895_v32 = vpop.f32.mrf.mxu0 }
 0x1d0   : > { %953 = vst [vmem:[%s1338_s8 + $0x10] sm:$0xff] %v934_v57  ;;  %1018 = vadd.xlane.f32.xlu0 %v1009_v4  ;;  %v1010_v22 = vmul.f32 %v934_v57, %v934_v57 }
 0x1d2   : > { %977 = vadd.xlane.f32.xlu2 %v943_v38  ;;  %1020 = vadd.xlane.f32.xlu1 %v1010_v22 }
 0x1d3   : > { %v945_v25 = vpop.f32.mrf.mxu3 }
 0x1d4   : > { %v946_v34 = vadd.f32 %v945_v25, %v904_v21 }
 0x1d5   : > { %v936_v35 = vpop.f32.mrf.mxu1  ;;  %v907_v40 = vpop.f32.mrf.mxu2 }
 0x1d6   : > { %957 = vst [vmem:[%s1338_s8 + $0x30] sm:$0xff] %v946_v34  ;;  %v937_v36 = vadd.f32 %v936_v35, %v895_v32  ;;  %v1014_v41 = vmul.f32 %v946_v34, %v946_v34 }
 0x1d8   : > { %954 = vst [vmem:[%s1338_s8 + $0x18] sm:$0xff] %v937_v36  ;;  %971 = vadd.xlane.f32.xlu0 %v934_v57  ;;  %v1011_v30 = vmul.f32 %v937_v36, %v937_v36 }
 0x1da   : > { %973 = vadd.xlane.f32.xlu2 %v937_v36 }
 0x1db   : > { %v948_v46 = vpop.f32.mrf.mxu3 }
 0x1dc   : > { %v949_v29 = vadd.f32 %v948_v46, %v907_v40 }
 0x1de   : > { %958 = vst [vmem:[%s1338_s8 + $0x38] sm:$0xff] %v949_v29  ;;  %981 = vadd.xlane.f32.xlu1 %v949_v29  ;;  %v1015_v23 = vmul.f32 %v949_v29, %v949_v29 }
 0x1e0   : > { %979 = vadd.xlane.f32.xlu0 %v946_v34 }
 0x1e2   : > { %1022 = vadd.xlane.f32.xlu2 %v1011_v30 }
 0x1e6   : > { %1026 = vadd.xlane.f32.xlu1 %v1013_v51 }
 0x1e8   : > { %1030 = vadd.xlane.f32.xlu0 %v1015_v23 }
 0x1ea   : > { %1028 = vadd.xlane.f32.xlu2 %v1014_v41 }
 0x233   : > { %v968_v43 = vpop.xlane.xlu1 %967 }
 0x234   : > { %v983_v12 = vadd.f32 %v968_v43, %v959_v24 }
 0x235   : > { %v1017_v28 = vpop.xlane.xlu2 %1016 }
 0x236   : > { %992 = vst.msk [vmem:[%s2019_s5] sm:$0xff] %vm991_vm2, %v983_v12  ;;  %v1032_v37 = vadd.f32 %v1017_v28, %v1000_v11 }
 0x238   : > { %1040 = vst.msk [vmem:[%s2020_s6] sm:$0xff] %vm991_vm2, %v1032_v37 }
 0x23b   : > { %v1025_v47 = vpop.xlane.xlu0 %1024  ;;  %v976_v48 = vpop.xlane.xlu1 %975 }
 0x23c   : > { %v1036_v63 = vadd.f32 %v1025_v47, %v1004_v44  ;;  %v987_v52 = vadd.f32 %v976_v48, %v963_v45 }
 0x23d   : > { %v970_v58 = vpop.xlane.xlu2 %969 }
 0x23e   : > { %1044 = vst.msk [vmem:[%s2020_s6 + $0x20] sm:$0xff] %vm991_vm2, %v1036_v63  ;;  %v984_v62 = vadd.f32 %v970_v58, %v960_v49 }
 0x23f   : > { %996 = vst.msk [vmem:[%s2019_s5 + $0x20] sm:$0xff] %vm991_vm2, %v987_v52 }
 0x240   : > { %993 = vst.msk [vmem:[%s2019_s5 + $0x8] sm:$0xff] %vm991_vm2, %v984_v62 }
 0x243   : > { %v1019_v0 = vpop.xlane.xlu0 %1018 }
 0x244   : > { %v1033_v55 = vadd.f32 %v1019_v0, %v1001_v53 }
 0x245   : > { %v978_v17 = vpop.xlane.xlu2 %977  ;;  %v1021_v59 = vpop.xlane.xlu1 %1020 }
 0x246   : > { %1041 = vst.msk [vmem:[%s2020_s6 + $0x8] sm:$0xff] %vm991_vm2, %v1033_v55  ;;  %v988_v61 = vadd.f32 %v978_v17, %v964_v10  ;;  %v1034_v39 = vadd.f32 %v1021_v59, %v1002_v54 }
 0x248   : > { %997 = vst.msk [vmem:[%s2019_s5 + $0x28] sm:$0xff] %vm991_vm2, %v988_v61 }
 0x249   : > { %1042 = vst.msk [vmem:[%s2020_s6 + $0x10] sm:$0xff] %vm991_vm2, %v1034_v39 }
 0x24b   : > { %v972_v31 = vpop.xlane.xlu0 %971 }
 0x24c   : > { %v985_v60 = vadd.f32 %v972_v31, %v961_v50 }
 0x24d   : > { %v974_v1 = vpop.xlane.xlu2 %973 }
 0x24e   : > { %994 = vst.msk [vmem:[%s2019_s5 + $0x10] sm:$0xff] %vm991_vm2, %v985_v60  ;;  %v986_v2 = vadd.f32 %v974_v1, %v962_v33 }
 0x250   : > { %995 = vst.msk [vmem:[%s2019_s5 + $0x18] sm:$0xff] %vm991_vm2, %v986_v2 }
 0x251   : > { %v982_v42 = vpop.xlane.xlu1 %981 }
 0x252   : > { %v990_v26 = vadd.f32 %v982_v42, %v966_v3 }
 0x253   : > { %v980_v27 = vpop.xlane.xlu0 %979 }
 0x254   : > { %999 = vst.msk [vmem:[%s2019_s5 + $0x38] sm:$0xff] %vm991_vm2, %v990_v26  ;;  %v989_v9 = vadd.f32 %v980_v27, %v965_v7 }
 0x255   : > { %v1023_v13 = vpop.xlane.xlu2 %1022 }
 0x256   : > { %998 = vst.msk [vmem:[%s2019_s5 + $0x30] sm:$0xff] %vm991_vm2, %v989_v9  ;;  %v1035_v14 = vadd.f32 %v1023_v13, %v1003_v8 }
 0x258   : > { %1043 = vst.msk [vmem:[%s2020_s6 + $0x18] sm:$0xff] %vm991_vm2, %v1035_v14 }
 0x259   : > { %v1027_v5 = vpop.xlane.xlu1 %1026 }
 0x25a   : > { %v1037_v6 = vadd.f32 %v1027_v5, %v1005_v56 }
 0x25b   : > { %v1031_v16 = vpop.xlane.xlu0 %1030 }
 0x25c   : > { %1045 = vst.msk [vmem:[%s2020_s6 + $0x28] sm:$0xff] %vm991_vm2, %v1037_v6  ;;  %v1039_v19 = vadd.f32 %v1031_v16, %v1007_v15 }
 0x25d   : > { %v1029_v38 = vpop.xlane.xlu2 %1028 }
 0x25e   : > { %1047 = vst.msk [vmem:[%s2020_s6 + $0x38] sm:$0xff] %vm991_vm2, %v1039_v19  ;;  %v1038_v20 = vadd.f32 %v1029_v38, %v1006_v18 }
 0x260   : > { %1046 = vst.msk [vmem:[%s2020_s6 + $0x30] sm:$0xff] %vm991_vm2, %v1038_v20 }
 0x261 PF: > { %s17_s23 = sadd.s32 1, %s1273_s23   ;;  %s2021_s21 = smov %s1269_s22 }
 0x262   : > { %p14_p6 = scmp.ge.s32.totalorder %s17_s23, 4   ;;  %s2022_s22 = smov %s2024_s24 }
 0x264   :  { %16 = sbr.rel (!%p14_p6) target bundleno = 2 (0x2), region = 86 }

</bundles_post_ra>
